<compile_context>
chip_gen: v7x
topology: tpu7x:2x2x1
jax: 0.10.0
libtpu: 0.0.40
codegen_flags: <defaults>
</compile_context>

<pallas_src>
import math

import jax
import jax.numpy as jnp
from jax import lax
from jax.experimental import pallas as pl
from jax.experimental.pallas import tpu as pltpu

SLOPE = 1e-4               # leaky_relu negative slope used in the torch forward
X_DIM = 10000              # forced by x.reshape(-1, 10000)
Y_DIM = 16
H1, H2, H3, H4, H5 = 128, 128, 64, 64, 64
Z_DIM = 32
HEAD = 128                 # fused fc61|fc62 head, zero-padded to 128 lanes (lane-dense store)
K_MAIN = (X_DIM // 128) * 128        # 9984: lane-aligned bulk of the fc1 reduction
TAIL = (X_DIM - K_MAIN) + Y_DIM      # 32: x tail columns + y, handled in f32
BM_MAX = 256               # max batch-tile rows (2 x 256x10000 f32 x-buffers ~ 19.5 MiB VMEM)


def _cdiv(a, b):
    return -(-a // b)


def _round_up(n, m):
    return _cdiv(n, m) * m


def _leaky_relu(v):
    return jnp.where(v >= 0, v, SLOPE * v)


def _dot_bf16(a, w_ref):
    # bf16 MXU inputs, f32 accumulation; elementwise math stays f32 outside.
    return jnp.dot(a.astype(jnp.bfloat16), w_ref[...],
                   preferred_element_type=jnp.float32)


def encoder_z_kernel(x_ref, xty_ref,
                     w1m_ref, w1t_ref, b1_ref,
                     w2_ref, b2_ref, w3_ref, b3_ref,
                     w4_ref, b4_ref, w5_ref, b5_ref,
                     w6_ref, b6_ref, z_ref):
    # fc1: cast the f32 x tile to bf16 in-kernel (no HBM round trip), lane-aligned
    # 9984-wide bf16 MXU dot + tiny f32 tail dot over [x[:, 9984:] | y], bias folded in.
    xb = x_ref[...].astype(jnp.bfloat16)
    h = jnp.dot(xb[:, :K_MAIN], w1m_ref[...], preferred_element_type=jnp.float32)
    h = h + jnp.dot(xty_ref[...], w1t_ref[...], preferred_element_type=jnp.float32)
    h = h + b1_ref[...]
    # softplus (beta=1): stable log(1 + exp(h))
    h = jnp.logaddexp(h, 0.0)
    # dropout(p=0.2) == identity in eval mode
    h = _leaky_relu(_dot_bf16(h, w2_ref) + b2_ref[...])
    h = _leaky_relu(_dot_bf16(h, w3_ref) + b3_ref[...])
    h = _leaky_relu(_dot_bf16(h, w4_ref) + b4_ref[...])
    h = _leaky_relu(_dot_bf16(h, w5_ref) + b5_ref[...])
    # Fused fc61|fc62 head (padded to 128 lanes): lanes [0,32) -> z_loc,
    # [32,64) -> exp(.), [64,128) -> padding (sliced off outside).
    zh = _dot_bf16(h, w6_ref) + b6_ref[...]
    col = lax.broadcasted_iota(jnp.int32, zh.shape, 1)
    z_ref[...] = jnp.where(col < Z_DIM, zh, jnp.exp(zh))


def init_params(key):
    """PyTorch-style nn.Linear init: U(-1/sqrt(fan_in), 1/sqrt(fan_in)).

    Weights stored as (in, out) so the kernel computes x @ W; biases (1, out).
    """
    dims = [(X_DIM + Y_DIM, H1), (H1, H2), (H2, H3), (H3, H4), (H4, H5),
            (H5, Z_DIM), (H5, Z_DIM)]
    params = []
    for i, (fan_in, fan_out) in enumerate(dims):
        kw, kb = jax.random.split(jax.random.fold_in(key, i))
        bound = 1.0 / math.sqrt(fan_in)
        w = jax.random.uniform(kw, (fan_in, fan_out), jnp.float32, -bound, bound)
        b = jax.random.uniform(kb, (1, fan_out), jnp.float32, -bound, bound)
        params.append((w, b))
    return params


def pack_params(params):
    """One-time weight prep (hoisted out of the per-call path / cacheable).

    W1 is split into the lane-aligned bf16 bulk (rows [0,9984)) and a small f32
    tail (rows [9984,10016) = x tail + y); fc61/fc62 are fused and zero-padded
    to 128 output lanes.
    """
    (w1, b1), (w2, b2), (w3, b3), (w4, b4), (w5, b5), (w61, b61), (w62, b62) = params
    w1m = w1[:K_MAIN].astype(jnp.bfloat16)                       # (9984, 128) bf16
    w1t = w1[K_MAIN:]                                            # (32, 128)   f32
    w6 = jnp.pad(jnp.concatenate([w61, w62], axis=1),
                 ((0, 0), (0, HEAD - 2 * Z_DIM))).astype(jnp.bfloat16)   # (64, 128)
    b6 = jnp.pad(jnp.concatenate([b61, b62], axis=1),
                 ((0, 0), (0, HEAD - 2 * Z_DIM)))                        # (1, 128) f32
    return (w1m, w1t, b1,
            w2.astype(jnp.bfloat16), b2,
            w3.astype(jnp.bfloat16), b3,
            w4.astype(jnp.bfloat16), b4,
            w5.astype(jnp.bfloat16), b5,
            w6, b6)


def _plan_batch(batch):
    """Adaptive batch tiling: multiple of 8, >=2 tiles when batch>=32 (v7x megacore),
    ragged last tile instead of padding batch up to a multiple of the tile."""
    batch_p = _round_up(max(batch, 8), 8)
    num_m = _cdiv(batch_p, BM_MAX)
    if batch_p >= 32:
        num_m = max(num_m, 2)
    bm = _round_up(_cdiv(batch_p, num_m), 8)
    grid_m = _cdiv(batch_p, bm)
    return batch_p, bm, grid_m


@jax.jit
def encoder_z_forward(x, y, packed):
    x2 = x.reshape(-1, X_DIM).astype(jnp.float32)
    y2 = y.reshape(-1, y.shape[-1]).astype(jnp.float32)
    batch = x2.shape[0]

    # Tiny (batch, 32) side input: x tail columns + y, consumed in f32 by the kernel.
    xty = jnp.concatenate([x2[:, K_MAIN:], y2], axis=1)

    batch_p, bm, grid_m = _plan_batch(batch)
    if batch_p != batch:
        # Only hit when batch % 8 != 0 (or batch < 8); at most 7 extra rows.
        x2 = jnp.pad(x2, ((0, batch_p - batch), (0, 0)))
        xty = jnp.pad(xty, ((0, batch_p - batch), (0, 0)))

    (w1m, w1t, b1, w2, b2, w3, b3, w4, b4, w5, b5, w6, b6) = packed

    def resident(shape):
        # Constant block index every grid step -> fetched once, stays resident in VMEM.
        return pl.BlockSpec(shape, lambda m: (0, 0))

    in_specs = [
        pl.BlockSpec((bm, X_DIM), lambda m: (m, 0)),   # x   (f32, cast in-kernel)
        pl.BlockSpec((bm, TAIL), lambda m: (m, 0)),    # [x tail | y] (f32, tiny)
        resident((K_MAIN, H1)),                        # W1 bulk (bf16, resident)
        resident((TAIL, H1)), resident((1, H1)),       # W1 tail, b1
        resident((H1, H2)), resident((1, H2)),         # W2, b2
        resident((H2, H3)), resident((1, H3)),         # W3, b3
        resident((H3, H4)), resident((1, H4)),         # W4, b4
        resident((H4, H5)), resident((1, H5)),         # W5, b5
        resident((H5, HEAD)), resident((1, HEAD)),     # fused/padded W6, b6
    ]

    z = pl.pallas_call(
        encoder_z_kernel,
        out_shape=jax.ShapeDtypeStruct((batch_p, HEAD), jnp.float32),
        grid_spec=pltpu.PrefetchScalarGridSpec(
            num_scalar_prefetch=0,
            grid=(grid_m,),
            in_specs=in_specs,
            out_specs=pl.BlockSpec((bm, HEAD), lambda m: (m, 0)),
        ),
        compiler_params=pltpu.CompilerParams(
            dimension_semantics=("parallel",),
            vmem_limit_bytes=56 * 1024 * 1024,
        ),
    )(x2, xty, w1m, w1t, b1, w2, b2, w3, b3, w4, b4, w5, b5, w6, b6)

    return z[:batch, :Z_DIM], z[:batch, Z_DIM:2 * Z_DIM]


def encoder_z_reference(x, y, params):
    """Pure-JAX reference mirroring the kernel's bf16-bulk / f32-tail numerics."""
    x2 = x.reshape(-1, X_DIM).astype(jnp.float32)
    y2 = y.reshape(-1, y.shape[-1]).astype(jnp.float32)
    (w1, b1), (w2, b2), (w3, b3), (w4, b4), (w5, b5), (w61, b61), (w62, b62) = params

    def dot_bf16(a, w):
        return jnp.dot(a.astype(jnp.bfloat16), w.astype(jnp.bfloat16),
                       preferred_element_type=jnp.float32)

    tail = jnp.concatenate([x2[:, K_MAIN:], y2], axis=1)
    h = dot_bf16(x2[:, :K_MAIN], w1[:K_MAIN]) + jnp.dot(tail, w1[K_MAIN:]) + b1
    h = jnp.logaddexp(h, 0.0)
    h = _leaky_relu(dot_bf16(h, w2) + b2)
    h = _leaky_relu(dot_bf16(h, w3) + b3)
    h = _leaky_relu(dot_bf16(h, w4) + b4)
    h = _leaky_relu(dot_bf16(h, w5) + b5)
    z_loc = dot_bf16(h, w61) + b61
    z_scale = jnp.exp(dot_bf16(h, w62) + b62)
    return z_loc, z_scale


if __name__ == "__main__":
    key = jax.random.PRNGKey(0)
    k_x, k_y, k_x2, k_y2, k_p = jax.random.split(key, 5)

    params = init_params(k_p)
    packed = pack_params(params)   # one-time weight prep (hoisted out of the call path)

    # Test 1: small batch; x may come in any shape whose rows flatten to 10000.
    x = jax.random.normal(k_x, (2, 100, 100), jnp.float32)
    y = jax.random.normal(k_y, (2, Y_DIM), jnp.float32)
    z_loc, z_scale = encoder_z_forward(x, y, packed)
    jax.block_until_ready((z_loc, z_scale))
    zl_ref, zs_ref = encoder_z_reference(x, y, params)
    assert z_loc.shape == (2, Z_DIM) and z_scale.shape == (2, Z_DIM)
    assert jnp.allclose(z_loc, zl_ref, atol=5e-3, rtol=5e-3)
    assert jnp.allclose(z_scale, zs_ref, atol=5e-3, rtol=5e-3)

    # Test 2: multi-tile + ragged batch (batch % 16 != 0, >1 batch tile).
    xb = jax.random.normal(k_x2, (67, X_DIM), jnp.float32)
    yb = jax.random.normal(k_y2, (67, Y_DIM), jnp.float32)
    zl2, zs2 = encoder_z_forward(xb, yb, packed)
    jax.block_until_ready((zl2, zs2))
    zl2_ref, zs2_ref = encoder_z_reference(xb, yb, params)
    assert zl2.shape == (67, Z_DIM) and zs2.shape == (67, Z_DIM)
    assert jnp.allclose(zl2, zl2_ref, atol=5e-3, rtol=5e-3)
    assert jnp.allclose(zs2, zs2_ref, atol=5e-3, rtol=5e-3)

    print("KERNEL_OK")
</pallas_src>

<mosaic_0001>
module attributes {stable_mosaic.version = 11 : i64} {
  func.func @encoder_z_kernel(%arg0: i32, %arg1: memref<8x10000xf32, #tpu.memory_space<vmem>>, %arg2: memref<8x32xf32, #tpu.memory_space<vmem>>, %arg3: memref<9984x128xbf16, #tpu.memory_space<vmem>>, %arg4: memref<32x128xf32, #tpu.memory_space<vmem>>, %arg5: memref<1x128xf32, #tpu.memory_space<vmem>>, %arg6: memref<128x128xbf16, #tpu.memory_space<vmem>>, %arg7: memref<1x128xf32, #tpu.memory_space<vmem>>, %arg8: memref<128x64xbf16, #tpu.memory_space<vmem>>, %arg9: memref<1x64xf32, #tpu.memory_space<vmem>>, %arg10: memref<64x64xbf16, #tpu.memory_space<vmem>>, %arg11: memref<1x64xf32, #tpu.memory_space<vmem>>, %arg12: memref<64x64xbf16, #tpu.memory_space<vmem>>, %arg13: memref<1x64xf32, #tpu.memory_space<vmem>>, %arg14: memref<64x128xbf16, #tpu.memory_space<vmem>>, %arg15: memref<1x128xf32, #tpu.memory_space<vmem>>, %arg16: memref<8x128xf32, #tpu.memory_space<vmem>>) attributes {dimension_semantics = [#tpu.dimension_semantics<parallel>], iteration_bounds = array<i64: 1>, scalar_prefetch = 0 : i64, scratch_operands = 0 : i64, tpu.core_type = #tpu.core_type<tc>, window_params = [{transform_indices = @transform_0, window_bounds = array<i64: 8, 10000>}, {transform_indices = @transform_1, window_bounds = array<i64: 8, 32>}, {pipeline_mode = #tpu.pipeline_mode<synchronous>, transform_indices = @transform_2, window_bounds = array<i64: 9984, 128>}, {pipeline_mode = #tpu.pipeline_mode<synchronous>, transform_indices = @transform_3, window_bounds = array<i64: 32, 128>}, {pipeline_mode = #tpu.pipeline_mode<synchronous>, transform_indices = @transform_4, window_bounds = array<i64: 1, 128>}, {pipeline_mode = #tpu.pipeline_mode<synchronous>, transform_indices = @transform_5, window_bounds = array<i64: 128, 128>}, {pipeline_mode = #tpu.pipeline_mode<synchronous>, transform_indices = @transform_6, window_bounds = array<i64: 1, 128>}, {pipeline_mode = #tpu.pipeline_mode<synchronous>, transform_indices = @transform_7, window_bounds = array<i64: 128, 64>}, {pipeline_mode = #tpu.pipeline_mode<synchronous>, transform_indices = @transform_8, window_bounds = array<i64: 1, 64>}, {pipeline_mode = #tpu.pipeline_mode<synchronous>, transform_indices = @transform_9, window_bounds = array<i64: 64, 64>}, {pipeline_mode = #tpu.pipeline_mode<synchronous>, transform_indices = @transform_10, window_bounds = array<i64: 1, 64>}, {pipeline_mode = #tpu.pipeline_mode<synchronous>, transform_indices = @transform_11, window_bounds = array<i64: 64, 64>}, {pipeline_mode = #tpu.pipeline_mode<synchronous>, transform_indices = @transform_12, window_bounds = array<i64: 1, 64>}, {pipeline_mode = #tpu.pipeline_mode<synchronous>, transform_indices = @transform_13, window_bounds = array<i64: 64, 128>}, {pipeline_mode = #tpu.pipeline_mode<synchronous>, transform_indices = @transform_14, window_bounds = array<i64: 1, 128>}, {transform_indices = @transform_15, window_bounds = array<i64: 8, 128>}]} {
    %c0 = arith.constant 0 : index
    %c0_0 = arith.constant 0 : index
    %0 = vector.load %arg1[%c0, %c0_0] : memref<8x10000xf32, #tpu.memory_space<vmem>>, vector<8x10000xf32>
    %1 = arith.truncf %0 : vector<8x10000xf32> to vector<8x10000xbf16>
    %2 = vector.extract_strided_slice %1 {offsets = [0, 0], sizes = [8, 9984], strides = [1, 1]} : vector<8x10000xbf16> to vector<8x9984xbf16>
    %c0_1 = arith.constant 0 : index
    %c0_2 = arith.constant 0 : index
    %3 = vector.load %arg3[%c0_1, %c0_2] : memref<9984x128xbf16, #tpu.memory_space<vmem>>, vector<9984x128xbf16>
    %cst = arith.constant dense<0.000000e+00> : vector<8x128xf32>
    %4 = tpu.matmul %2, %3, %cst {dimension_numbers = #tpu.dot_dimension_numbers<[1], [0], [0], [1], [0, 0, 1, 1], [], []>} : vector<8x9984xbf16>, vector<9984x128xbf16>, vector<8x128xf32> -> vector<8x128xf32>
    %c0_3 = arith.constant 0 : index
    %c0_4 = arith.constant 0 : index
    %5 = vector.load %arg2[%c0_3, %c0_4] : memref<8x32xf32, #tpu.memory_space<vmem>>, vector<8x32xf32>
    %c0_5 = arith.constant 0 : index
    %c0_6 = arith.constant 0 : index
    %6 = vector.load %arg4[%c0_5, %c0_6] : memref<32x128xf32, #tpu.memory_space<vmem>>, vector<32x128xf32>
    %cst_7 = arith.constant dense<0.000000e+00> : vector<8x128xf32>
    %7 = tpu.matmul %5, %6, %cst_7 {dimension_numbers = #tpu.dot_dimension_numbers<[1], [0], [0], [1], [0, 0, 1, 1], [], []>} : vector<8x32xf32>, vector<32x128xf32>, vector<8x128xf32> -> vector<8x128xf32>
    %8 = arith.addf %4, %7 : vector<8x128xf32>
    %c0_8 = arith.constant 0 : index
    %c0_9 = arith.constant 0 : index
    %9 = vector.load %arg5[%c0_8, %c0_9] : memref<1x128xf32, #tpu.memory_space<vmem>>, vector<1x128xf32>
    %10 = vector.broadcast %9 : vector<1x128xf32> to vector<8x128xf32>
    %11 = arith.addf %8, %10 : vector<8x128xf32>
    %cst_10 = arith.constant 0.000000e+00 : f32
    %12 = vector.broadcast %cst_10 : f32 to vector<8x128xf32>
    %13 = arith.maximumf %11, %12 : vector<8x128xf32>
    %14 = vector.broadcast %cst_10 : f32 to vector<8x128xf32>
    %15 = arith.subf %11, %14 : vector<8x128xf32>
    %16 = arith.cmpf one, %15, %15 : vector<8x128xf32>
    %17 = vector.broadcast %cst_10 : f32 to vector<8x128xf32>
    %18 = arith.addf %11, %17 : vector<8x128xf32>
    %19 = math.absf %15 : vector<8x128xf32>
    %cst_11 = arith.constant 0.000000e+00 : f32
    %20 = vector.broadcast %cst_11 : f32 to vector<8x128xf32>
    %21 = arith.subf %20, %19 : vector<8x128xf32>
    %22 = math.exp %21 : vector<8x128xf32>
    %23 = math.log1p %22 : vector<8x128xf32>
    %24 = arith.addf %13, %23 : vector<8x128xf32>
    %25 = arith.select %16, %18, %24 : vector<8x128xi1>, vector<8x128xf32>
    %26 = arith.truncf %25 : vector<8x128xf32> to vector<8x128xbf16>
    %c0_12 = arith.constant 0 : index
    %c0_13 = arith.constant 0 : index
    %27 = vector.load %arg6[%c0_12, %c0_13] : memref<128x128xbf16, #tpu.memory_space<vmem>>, vector<128x128xbf16>
    %cst_14 = arith.constant dense<0.000000e+00> : vector<8x128xf32>
    %28 = tpu.matmul %26, %27, %cst_14 {dimension_numbers = #tpu.dot_dimension_numbers<[1], [0], [0], [1], [0, 0, 1, 1], [], []>} : vector<8x128xbf16>, vector<128x128xbf16>, vector<8x128xf32> -> vector<8x128xf32>
    %c0_15 = arith.constant 0 : index
    %c0_16 = arith.constant 0 : index
    %29 = vector.load %arg7[%c0_15, %c0_16] : memref<1x128xf32, #tpu.memory_space<vmem>>, vector<1x128xf32>
    %30 = vector.broadcast %29 : vector<1x128xf32> to vector<8x128xf32>
    %31 = arith.addf %28, %30 : vector<8x128xf32>
    %cst_17 = arith.constant 0.000000e+00 : f32
    %32 = vector.broadcast %cst_17 : f32 to vector<8x128xf32>
    %33 = arith.cmpf oge, %31, %32 : vector<8x128xf32>
    %cst_18 = arith.constant 9.99999974E-5 : f32
    %34 = vector.broadcast %cst_18 : f32 to vector<8x128xf32>
    %35 = arith.mulf %34, %31 : vector<8x128xf32>
    %36 = arith.select %33, %31, %35 : vector<8x128xi1>, vector<8x128xf32>
    %37 = arith.truncf %36 : vector<8x128xf32> to vector<8x128xbf16>
    %c0_19 = arith.constant 0 : index
    %c0_20 = arith.constant 0 : index
    %38 = vector.load %arg8[%c0_19, %c0_20] : memref<128x64xbf16, #tpu.memory_space<vmem>>, vector<128x64xbf16>
    %cst_21 = arith.constant dense<0.000000e+00> : vector<8x64xf32>
    %39 = tpu.matmul %37, %38, %cst_21 {dimension_numbers = #tpu.dot_dimension_numbers<[1], [0], [0], [1], [0, 0, 1, 1], [], []>} : vector<8x128xbf16>, vector<128x64xbf16>, vector<8x64xf32> -> vector<8x64xf32>
    %c0_22 = arith.constant 0 : index
    %c0_23 = arith.constant 0 : index
    %40 = vector.load %arg9[%c0_22, %c0_23] : memref<1x64xf32, #tpu.memory_space<vmem>>, vector<1x64xf32>
    %41 = vector.broadcast %40 : vector<1x64xf32> to vector<8x64xf32>
    %42 = arith.addf %39, %41 : vector<8x64xf32>
    %cst_24 = arith.constant 0.000000e+00 : f32
    %43 = vector.broadcast %cst_24 : f32 to vector<8x64xf32>
    %44 = arith.cmpf oge, %42, %43 : vector<8x64xf32>
    %cst_25 = arith.constant 9.99999974E-5 : f32
    %45 = vector.broadcast %cst_25 : f32 to vector<8x64xf32>
    %46 = arith.mulf %45, %42 : vector<8x64xf32>
    %47 = arith.select %44, %42, %46 : vector<8x64xi1>, vector<8x64xf32>
    %48 = arith.truncf %47 : vector<8x64xf32> to vector<8x64xbf16>
    %c0_26 = arith.constant 0 : index
    %c0_27 = arith.constant 0 : index
    %49 = vector.load %arg10[%c0_26, %c0_27] : memref<64x64xbf16, #tpu.memory_space<vmem>>, vector<64x64xbf16>
    %cst_28 = arith.constant dense<0.000000e+00> : vector<8x64xf32>
    %50 = tpu.matmul %48, %49, %cst_28 {dimension_numbers = #tpu.dot_dimension_numbers<[1], [0], [0], [1], [0, 0, 1, 1], [], []>} : vector<8x64xbf16>, vector<64x64xbf16>, vector<8x64xf32> -> vector<8x64xf32>
    %c0_29 = arith.constant 0 : index
    %c0_30 = arith.constant 0 : index
    %51 = vector.load %arg11[%c0_29, %c0_30] : memref<1x64xf32, #tpu.memory_space<vmem>>, vector<1x64xf32>
    %52 = vector.broadcast %51 : vector<1x64xf32> to vector<8x64xf32>
    %53 = arith.addf %50, %52 : vector<8x64xf32>
    %cst_31 = arith.constant 0.000000e+00 : f32
    %54 = vector.broadcast %cst_31 : f32 to vector<8x64xf32>
    %55 = arith.cmpf oge, %53, %54 : vector<8x64xf32>
    %cst_32 = arith.constant 9.99999974E-5 : f32
    %56 = vector.broadcast %cst_32 : f32 to vector<8x64xf32>
    %57 = arith.mulf %56, %53 : vector<8x64xf32>
    %58 = arith.select %55, %53, %57 : vector<8x64xi1>, vector<8x64xf32>
    %59 = arith.truncf %58 : vector<8x64xf32> to vector<8x64xbf16>
    %c0_33 = arith.constant 0 : index
    %c0_34 = arith.constant 0 : index
    %60 = vector.load %arg12[%c0_33, %c0_34] : memref<64x64xbf16, #tpu.memory_space<vmem>>, vector<64x64xbf16>
    %cst_35 = arith.constant dense<0.000000e+00> : vector<8x64xf32>
    %61 = tpu.matmul %59, %60, %cst_35 {dimension_numbers = #tpu.dot_dimension_numbers<[1], [0], [0], [1], [0, 0, 1, 1], [], []>} : vector<8x64xbf16>, vector<64x64xbf16>, vector<8x64xf32> -> vector<8x64xf32>
    %c0_36 = arith.constant 0 : index
    %c0_37 = arith.constant 0 : index
    %62 = vector.load %arg13[%c0_36, %c0_37] : memref<1x64xf32, #tpu.memory_space<vmem>>, vector<1x64xf32>
    %63 = vector.broadcast %62 : vector<1x64xf32> to vector<8x64xf32>
    %64 = arith.addf %61, %63 : vector<8x64xf32>
    %cst_38 = arith.constant 0.000000e+00 : f32
    %65 = vector.broadcast %cst_38 : f32 to vector<8x64xf32>
    %66 = arith.cmpf oge, %64, %65 : vector<8x64xf32>
    %cst_39 = arith.constant 9.99999974E-5 : f32
    %67 = vector.broadcast %cst_39 : f32 to vector<8x64xf32>
    %68 = arith.mulf %67, %64 : vector<8x64xf32>
    %69 = arith.select %66, %64, %68 : vector<8x64xi1>, vector<8x64xf32>
    %70 = arith.truncf %69 : vector<8x64xf32> to vector<8x64xbf16>
    %c0_40 = arith.constant 0 : index
    %c0_41 = arith.constant 0 : index
    %71 = vector.load %arg14[%c0_40, %c0_41] : memref<64x128xbf16, #tpu.memory_space<vmem>>, vector<64x128xbf16>
    %cst_42 = arith.constant dense<0.000000e+00> : vector<8x128xf32>
    %72 = tpu.matmul %70, %71, %cst_42 {dimension_numbers = #tpu.dot_dimension_numbers<[1], [0], [0], [1], [0, 0, 1, 1], [], []>} : vector<8x64xbf16>, vector<64x128xbf16>, vector<8x128xf32> -> vector<8x128xf32>
    %c0_43 = arith.constant 0 : index
    %c0_44 = arith.constant 0 : index
    %73 = vector.load %arg15[%c0_43, %c0_44] : memref<1x128xf32, #tpu.memory_space<vmem>>, vector<1x128xf32>
    %74 = vector.broadcast %73 : vector<1x128xf32> to vector<8x128xf32>
    %75 = arith.addf %72, %74 : vector<8x128xf32>
    %76 = tpu.iota {dimensions = array<i32: 1>} : vector<8x128xi32>
    %c32_i32 = arith.constant 32 : i32
    %77 = vector.broadcast %c32_i32 : i32 to vector<8x128xi32>
    %78 = arith.cmpi slt, %76, %77 : vector<8x128xi32>
    %79 = math.exp %75 : vector<8x128xf32>
    %80 = arith.select %78, %75, %79 : vector<8x128xi1>, vector<8x128xf32>
    %c0_45 = arith.constant 0 : index
    %c0_46 = arith.constant 0 : index
    %81 = vector.load %arg16[%c0_45, %c0_46] : memref<8x128xf32, #tpu.memory_space<vmem>>, vector<8x128xf32>
    tpu.vector_store %arg16[%c0_45, %c0_46], %80 {strides = array<i32>} : memref<8x128xf32, #tpu.memory_space<vmem>>, vector<8x128xf32>,
    return
  }
  func.func @transform_0(%arg0: i32) -> (i32, i32) {
    %c0_i32 = arith.constant 0 : i32
    %c0_i32_0 = arith.constant 0 : i32
    return %arg0, %c0_i32 : i32, i32
  }
  func.func @transform_1(%arg0: i32) -> (i32, i32) {
    %c0_i32 = arith.constant 0 : i32
    %c0_i32_0 = arith.constant 0 : i32
    return %arg0, %c0_i32 : i32, i32
  }
  func.func @transform_2(%arg0: i32) -> (i32, i32) {
    %c0_i32 = arith.constant 0 : i32
    %c0_i32_0 = arith.constant 0 : i32
    %c0_i32_1 = arith.constant 0 : i32
    return %c0_i32, %c0_i32_0 : i32, i32
  }
  func.func @transform_3(%arg0: i32) -> (i32, i32) {
    %c0_i32 = arith.constant 0 : i32
    %c0_i32_0 = arith.constant 0 : i32
    %c0_i32_1 = arith.constant 0 : i32
    return %c0_i32, %c0_i32_0 : i32, i32
  }
  func.func @transform_4(%arg0: i32) -> (i32, i32) {
    %c0_i32 = arith.constant 0 : i32
    %c0_i32_0 = arith.constant 0 : i32
    %c0_i32_1 = arith.constant 0 : i32
    return %c0_i32, %c0_i32_0 : i32, i32
  }
  func.func @transform_5(%arg0: i32) -> (i32, i32) {
    %c0_i32 = arith.constant 0 : i32
    %c0_i32_0 = arith.constant 0 : i32
    %c0_i32_1 = arith.constant 0 : i32
    return %c0_i32, %c0_i32_0 : i32, i32
  }
  func.func @transform_6(%arg0: i32) -> (i32, i32) {
    %c0_i32 = arith.constant 0 : i32
    %c0_i32_0 = arith.constant 0 : i32
    %c0_i32_1 = arith.constant 0 : i32
    return %c0_i32, %c0_i32_0 : i32, i32
  }
  func.func @transform_7(%arg0: i32) -> (i32, i32) {
    %c0_i32 = arith.constant 0 : i32
    %c0_i32_0 = arith.constant 0 : i32
    %c0_i32_1 = arith.constant 0 : i32
    return %c0_i32, %c0_i32_0 : i32, i32
  }
  func.func @transform_8(%arg0: i32) -> (i32, i32) {
    %c0_i32 = arith.constant 0 : i32
    %c0_i32_0 = arith.constant 0 : i32
    %c0_i32_1 = arith.constant 0 : i32
    return %c0_i32, %c0_i32_0 : i32, i32
  }
  func.func @transform_9(%arg0: i32) -> (i32, i32) {
    %c0_i32 = arith.constant 0 : i32
    %c0_i32_0 = arith.constant 0 : i32
    %c0_i32_1 = arith.constant 0 : i32
    return %c0_i32, %c0_i32_0 : i32, i32
  }
  func.func @transform_10(%arg0: i32) -> (i32, i32) {
    %c0_i32 = arith.constant 0 : i32
    %c0_i32_0 = arith.constant 0 : i32
    %c0_i32_1 = arith.constant 0 : i32
    return %c0_i32, %c0_i32_0 : i32, i32
  }
  func.func @transform_11(%arg0: i32) -> (i32, i32) {
    %c0_i32 = arith.constant 0 : i32
    %c0_i32_0 = arith.constant 0 : i32
    %c0_i32_1 = arith.constant 0 : i32
    return %c0_i32, %c0_i32_0 : i32, i32
  }
  func.func @transform_12(%arg0: i32) -> (i32, i32) {
    %c0_i32 = arith.constant 0 : i32
    %c0_i32_0 = arith.constant 0 : i32
    %c0_i32_1 = arith.constant 0 : i32
    return %c0_i32, %c0_i32_0 : i32, i32
  }
  func.func @transform_13(%arg0: i32) -> (i32, i32) {
    %c0_i32 = arith.constant 0 : i32
    %c0_i32_0 = arith.constant 0 : i32
    %c0_i32_1 = arith.constant 0 : i32
    return %c0_i32, %c0_i32_0 : i32, i32
  }
  func.func @transform_14(%arg0: i32) -> (i32, i32) {
    %c0_i32 = arith.constant 0 : i32
    %c0_i32_0 = arith.constant 0 : i32
    %c0_i32_1 = arith.constant 0 : i32
    return %c0_i32, %c0_i32_0 : i32, i32
  }
  func.func @transform_15(%arg0: i32) -> (i32, i32) {
    %c0_i32 = arith.constant 0 : i32
    %c0_i32_0 = arith.constant 0 : i32
    return %arg0, %c0_i32 : i32, i32
  }
}

</mosaic_0001>

<bundles_post_ra>
// kernel: encoder_z_forward.1
= control target key start
LH: loop header
LB: loop body
LE: loop exit
PB: predicated region body
PF: predicated region fallthrough
CT: control target
= control target key end

     0   :  { %s10726_s0 = inlined_call_operand.vmem [shape: f32[8,10000], index: 0, kind: input, shape index: {}]   ;;  %s10727_s1 = inlined_call_operand.vmem [shape: f32[8,32], index: 1, kind: input, shape index: {}]   ;;  %s10728_s2 = inlined_call_operand.hbm [shape: bf16[9984,128], index: 2, kind: input, shape index: {}]   ;;  %s10729_s3 = inlined_call_operand.hbm [shape: f32[32,128], index: 3, kind: input, shape index: {}]   ;;  %s10730_s4 = inlined_call_operand.hbm [shape: f32[1,128], index: 4, kind: input, shape index: {}]   ;;  %s10731_s5 = inlined_call_operand.hbm [shape: bf16[128,128], index: 5, kind: input, shape index: {}]   ;;  %s10732_s6 = inlined_call_operand.hbm [shape: f32[1,128], index: 6, kind: input, shape index: {}]   ;;  %s10733_s7 = inlined_call_operand.vmem [shape: bf16[128,64], index: 7, kind: input, shape index: {}]   ;;  %s10734_s8 = inlined_call_operand.hbm [shape: f32[1,64], index: 8, kind: input, shape index: {}]   ;;  %s10735_s9 = inlined_call_operand.hbm [shape: bf16[64,64], index: 9, kind: input, shape index: {}]   ;;  %s10736_s10 = inlined_call_operand.hbm [shape: f32[1,64], index: 10, kind: input, shape index: {}]   ;;  %s10737_s11 = inlined_call_operand.hbm [shape: bf16[64,64], index: 11, kind: input, shape index: {}]   ;;  %s10738_s12 = inlined_call_operand.hbm [shape: f32[1,64], index: 12, kind: input, shape index: {}]   ;;  %s10739_s13 = inlined_call_operand.hbm [shape: bf16[64,128], index: 13, kind: input, shape index: {}]   ;;  %s10740_s14 = inlined_call_operand.hbm [shape: f32[1,128], index: 14, kind: input, shape index: {}]   ;;  %s10741_s15 = inlined_call_operand.vmem [shape: f32[8,128], index: 15, kind: output, shape index: {}]  }
   0x1   :  { %10742 = sst [smem:[#allocation28_spill]] %s10741_s15 }
   0x2   :  { %20 = vsyncpa [#allocation3], 0 }
   0x3   :  { %21 = vsyncpa [#allocation5], 0 }
   0x4   :  { %22 = vsyncpa [#allocation8], 0 }
   0x5   :  { %23 = vsyncpa [#allocation11], 0 }
   0x6   :  { %24 = vsyncpa [#allocation14], 0 }
   0x7   :  { %25 = vsyncpa [#allocation17], 0 }
   0x8   :  { %26 = vsyncpa [#allocation20], 0  ;;  %s10125_s18 = smov [#allocation4]   ;;  %s9847_s22 = scalar_lea.hbm %s10729_s3, 512 }
   0x9   :  { %s48_s19 = sshll.u32 %s10125_s18, 4  ;;  %p9848_p0 = scmp.ne.s32.totalorder %s10729_s3, %s9847_s22  ;;  %s49_s19 = int_to_ptr.vmem [resolvable:$true] %s48_s19 }
   0xa   :  { %p9851_p1 = scmp.lt.u32.totalorder %s9847_s22, %s10729_s3 }
   0xc   :  { %p9853_p2 = pnand %p9851_p1, %p9848_p0 }
   0xe   :  { %9856 = shalt.err (!%p9853_p2)
}
   0xf   :  { %s9857_s27 = scalar_lea.vmem %s49_s19, 512  ;;  %p9862_p4 = scmp.lt.s32.totalorder %s49_s19, %s49_s19 }
  0x10   :  { %p9858_p3 = scmp.ne.s32.totalorder %s49_s19, %s9857_s27  ;;  %p9863_p5 = scmp.lt.s32.totalorder %s9857_s27, %s9857_s27 }
  0x12   :  { %p9864_p6 = por %p9863_p5, %p9862_p4 }
  0x14   :  { %p9865_p7 = pnand %p9864_p6, %p9858_p3 }
  0x16   :  { %9868 = shalt.err (!%p9865_p7)
}
  0x17   :  { %s10126_s28 = smov 128   ;;  %s10127_s29 = smov 8  }
  0x18   :  { %54 = dma.hbm_to_vmem [thread:$0]  %s10729_s3, 512, %s49_s19, [#allocation5], %s10126_s28, %s10126_s28, %s10127_s29  }
  0x19   :  { %s10128_s17 = smov [#allocation7]   ;;  %s10129_s20 = smov [#allocation10]  }
  0x1a   :  { %s70_s18 = sshll.u32 %s10128_s17, 4  ;;  %s95_s21 = sshll.u32 %s10129_s20, 4  ;;  %s71_s18 = int_to_ptr.vmem [resolvable:$true] %s70_s18  ;;  %s96_s21 = int_to_ptr.vmem [resolvable:$true] %s95_s21 }
  0x1b   :  { %s9869_s24 = scalar_lea.hbm %s10731_s5, 1024 }
  0x1c   :  { %p9870_p8 = scmp.ne.s32.totalorder %s10731_s5, %s9869_s24  ;;  %p9873_p9 = scmp.lt.u32.totalorder %s9869_s24, %s10731_s5 }
  0x1e   :  { %p9875_p10 = pnand %p9873_p9, %p9870_p8 }
  0x20   :  { %9878 = shalt.err (!%p9875_p10)
}
  0x21   :  { %s9879_s3 = scalar_lea.vmem %s71_s18, 1024  ;;  %p9884_p12 = scmp.lt.s32.totalorder %s71_s18, %s71_s18 }
  0x22   :  { %p9880_p11 = scmp.ne.s32.totalorder %s71_s18, %s9879_s3  ;;  %p9885_p13 = scmp.lt.s32.totalorder %s9879_s3, %s9879_s3 }
  0x24   :  { %p9886_p0 = por %p9885_p13, %p9884_p12 }
  0x26   :  { %p9887_p1 = pnand %p9886_p0, %p9880_p11 }
  0x28   :  { %9890 = shalt.err (!%p9887_p1)
}
  0x29   :  { %s10130_s19 = smov 64   ;;  %s10131_s28 = smov 4  }
  0x2a   :  { %76 = dma.hbm_to_vmem [thread:$0]  %s10731_s5, 1024, %s71_s18, [#allocation8], %s10130_s19, %s10130_s19, %s10131_s28  }
  0x2b   :  { %s9891_s17 = scalar_lea.hbm %s10734_s8, 16 }
  0x2c   :  { %p9892_p2 = scmp.ne.s32.totalorder %s10734_s8, %s9891_s17  ;;  %p9895_p3 = scmp.lt.u32.totalorder %s9891_s17, %s10734_s8 }
  0x2e   :  { %p9897_p4 = pnand %p9895_p3, %p9892_p2 }
  0x30   :  { %9900 = shalt.err (!%p9897_p4)
}
  0x31   :  { %s9901_s25 = scalar_lea.vmem %s96_s21, 16  ;;  %s9905_s26 = scalar_lea.vmem %s96_s21, 32 }
  0x32   :  { %p9902_p5 = scmp.ne.s32.totalorder %s96_s21, %s9901_s25  ;;  %p9906_p6 = scmp.lt.s32.totalorder %s96_s21, %s96_s21 }
  0x33   :  { %p9907_p7 = scmp.lt.s32.totalorder %s9905_s26, %s9901_s25 }
  0x35   :  { %p9908_p8 = por %p9907_p7, %p9906_p6 }
  0x37   :  { %p9909_p9 = pnand %p9908_p8, %p9902_p5 }
  0x39   :  { %9912 = shalt.err (!%p9909_p9)
}
  0x3a   :  { %98 = dma.hbm_to_vmem [thread:$0]  %s10734_s8, 16, %s96_s21, [#allocation11]  }
  0x3b   :  { %s10132_s27 = smov [#allocation13]   ;;  %s10133_s29 = smov [#allocation16]  }
  0x3c   :  { %s117_s3 = sshll.u32 %s10132_s27, 4  ;;  %s139_s30 = sshll.u32 %s10133_s29, 4  ;;  %s118_s3 = int_to_ptr.vmem [resolvable:$true] %s117_s3  ;;  %s140_s30 = int_to_ptr.vmem [resolvable:$true] %s139_s30 }
  0x3d   :  { %s9913_s17 = scalar_lea.hbm %s10736_s10, 16 }
  0x3e   :  { %p9914_p10 = scmp.ne.s32.totalorder %s10736_s10, %s9913_s17  ;;  %p9917_p11 = scmp.lt.u32.totalorder %s9913_s17, %s10736_s10 }
  0x40   :  { %p9919_p12 = pnand %p9917_p11, %p9914_p10 }
  0x42   :  { %9922 = shalt.err (!%p9919_p12)
}
  0x43   :  { %s9923_s8 = scalar_lea.vmem %s118_s3, 16  ;;  %s9927_s21 = scalar_lea.vmem %s118_s3, 32 }
  0x44   :  { %p9924_p13 = scmp.ne.s32.totalorder %s118_s3, %s9923_s8  ;;  %p9928_p0 = scmp.lt.s32.totalorder %s118_s3, %s118_s3 }
  0x45   :  { %p9929_p1 = scmp.lt.s32.totalorder %s9927_s21, %s9923_s8 }
  0x47   :  { %p9930_p2 = por %p9929_p1, %p9928_p0 }
  0x49   :  { %p9931_p3 = pnand %p9930_p2, %p9924_p13 }
  0x4b   :  { %9934 = shalt.err (!%p9931_p3)
}
  0x4c   :  { %120 = dma.hbm_to_vmem [thread:$0]  %s10736_s10, 16, %s118_s3, [#allocation14]  }
  0x4d   :  { %s9935_s27 = scalar_lea.hbm %s10738_s12, 16 }
  0x4e   :  { %p9936_p4 = scmp.ne.s32.totalorder %s10738_s12, %s9935_s27  ;;  %p9939_p5 = scmp.lt.u32.totalorder %s9935_s27, %s10738_s12 }
  0x50   :  { %p9941_p6 = pnand %p9939_p5, %p9936_p4 }
  0x52   :  { %9944 = shalt.err (!%p9941_p6)
}
  0x53   :  { %s9945_s20 = scalar_lea.vmem %s140_s30, 16  ;;  %s9949_s22 = scalar_lea.vmem %s140_s30, 32 }
  0x54   :  { %p9946_p7 = scmp.ne.s32.totalorder %s140_s30, %s9945_s20  ;;  %p9950_p8 = scmp.lt.s32.totalorder %s140_s30, %s140_s30 }
  0x55   :  { %p9951_p9 = scmp.lt.s32.totalorder %s9949_s22, %s9945_s20 }
  0x57   :  { %p9952_p10 = por %p9951_p9, %p9950_p8 }
  0x59   :  { %p9953_p11 = pnand %p9952_p10, %p9946_p7 }
  0x5b   :  { %9956 = shalt.err (!%p9953_p11)
}
  0x5c   :  { %142 = dma.hbm_to_vmem [thread:$0]  %s10738_s12, 16, %s140_s30, [#allocation17]  }
  0x5d   :  { %s10134_s23 = smov [#allocation2]   ;;  %s10135_s8 = smov [#allocation6]  }
  0x5e   :  { %s36_s24 = sshll.u32 %s10134_s23, 4  ;;  %s61_s21 = sshll.u32 %s10135_s8, 4  ;;  %s37_s24 = int_to_ptr.vmem [resolvable:$true] %s36_s24  ;;  %s62_s21 = int_to_ptr.vmem [resolvable:$true] %s61_s21 }
  0x5f   :  { %s9957_s5 = scalar_lea.hbm %s10728_s2, 79872 }
  0x60   :  { %p9958_p12 = scmp.ne.s32.totalorder %s10728_s2, %s9957_s5  ;;  %p9961_p13 = scmp.lt.u32.totalorder %s9957_s5, %s10728_s2 }
  0x62   :  { %p9963_p0 = pnand %p9961_p13, %p9958_p12 }
  0x64   :  { %9966 = shalt.err (!%p9963_p0)
}
  0x65   :  { %s9967_s12 = scalar_lea.vmem %s37_s24, 79872  ;;  %p9972_p2 = scmp.lt.s32.totalorder %s37_s24, %s37_s24 }
  0x66   :  { %p9968_p1 = scmp.ne.s32.totalorder %s37_s24, %s9967_s12  ;;  %p9973_p3 = scmp.lt.s32.totalorder %s9967_s12, %s9967_s12 }
  0x68   :  { %p9974_p4 = por %p9973_p3, %p9972_p2 }
  0x6a   :  { %p9975_p5 = pnand %p9974_p4, %p9968_p1 }
  0x6c   :  { %9978 = shalt.err (!%p9975_p5)
}
  0x6d   :  { %42 = dma.hbm_to_vmem [thread:$0]  %s10728_s2, 79872, %s37_s24, [#allocation3], %s10130_s19, %s10130_s19, %s10131_s28  }
  0x6e   :  { %s9979_s22 = scalar_lea.hbm %s10730_s4, 16 }
  0x6f   :  { %p9980_p6 = scmp.ne.s32.totalorder %s10730_s4, %s9979_s22  ;;  %p9983_p7 = scmp.lt.u32.totalorder %s9979_s22, %s10730_s4 }
  0x71   :  { %p9985_p8 = pnand %p9983_p7, %p9980_p6 }
  0x73   :  { %9988 = shalt.err (!%p9985_p8)
}
  0x74   :  { %s9989_s25 = scalar_lea.vmem %s62_s21, 16  ;;  %s9993_s26 = scalar_lea.vmem %s62_s21, 32 }
  0x75   :  { %p9990_p9 = scmp.ne.s32.totalorder %s62_s21, %s9989_s25  ;;  %p9994_p10 = scmp.lt.s32.totalorder %s62_s21, %s62_s21 }
  0x76   :  { %p9995_p11 = scmp.lt.s32.totalorder %s9993_s26, %s9989_s25 }
  0x78   :  { %p9996_p12 = por %p9995_p11, %p9994_p10 }
  0x7a   :  { %p9997_p13 = pnand %p9996_p12, %p9990_p9 }
  0x7c   :  { %10000 = shalt.err (!%p9997_p13)
}
  0x7d   :  { %64 = dma.hbm_to_vmem [thread:$0]  %s10730_s4, 16, %s62_s21, [#allocation5]  }
  0x7e   :  { %s10136_s5 = smov [#allocation9]   ;;  %s10137_s27 = smov [#allocation12]  }
  0x7f   :  { %s83_s18 = sshll.u32 %s10136_s5, 4  ;;  %s104_s29 = sshll.u32 %s10137_s27, 4  ;;  %s84_s18 = int_to_ptr.vmem [resolvable:$true] %s83_s18  ;;  %s105_s29 = int_to_ptr.vmem [resolvable:$true] %s104_s29 }
  0x80   :  { %s10001_s30 = scalar_lea.hbm %s10732_s6, 16 }
  0x81   :  { %p10002_p0 = scmp.ne.s32.totalorder %s10732_s6, %s10001_s30  ;;  %p10005_p1 = scmp.lt.u32.totalorder %s10001_s30, %s10732_s6 }
  0x83   :  { %p10007_p2 = pnand %p10005_p1, %p10002_p0 }
  0x85   :  { %10010 = shalt.err (!%p10007_p2)
}
  0x86   :  { %s10011_s4 = scalar_lea.vmem %s84_s18, 16  ;;  %s10015_s21 = scalar_lea.vmem %s84_s18, 32 }
  0x87   :  { %p10012_p3 = scmp.ne.s32.totalorder %s84_s18, %s10011_s4  ;;  %p10016_p4 = scmp.lt.s32.totalorder %s84_s18, %s84_s18 }
  0x88   :  { %p10017_p5 = scmp.lt.s32.totalorder %s10015_s21, %s10011_s4 }
  0x8a   :  { %p10018_p6 = por %p10017_p5, %p10016_p4 }
  0x8c   :  { %p10019_p7 = pnand %p10018_p6, %p10012_p3 }
  0x8e   :  { %10022 = shalt.err (!%p10019_p7)
}
  0x8f   :  { %86 = dma.hbm_to_vmem [thread:$0]  %s10732_s6, 16, %s84_s18, [#allocation8]  }
  0x90   :  { %s10023_s25 = scalar_lea.hbm %s10735_s9, 512 }
  0x91   :  { %p10024_p8 = scmp.ne.s32.totalorder %s10735_s9, %s10023_s25  ;;  %p10027_p9 = scmp.lt.u32.totalorder %s10023_s25, %s10735_s9 }
  0x93   :  { %p10029_p10 = pnand %p10027_p9, %p10024_p8 }
  0x95   :  { %10032 = shalt.err (!%p10029_p10)
}
  0x96   :  { %s10033_s27 = scalar_lea.vmem %s105_s29, 512  ;;  %p10038_p12 = scmp.lt.s32.totalorder %s105_s29, %s105_s29 }
  0x97   :  { %p10034_p11 = scmp.ne.s32.totalorder %s105_s29, %s10033_s27  ;;  %p10039_p13 = scmp.lt.s32.totalorder %s10033_s27, %s10033_s27 }
  0x99   :  { %p10040_p0 = por %p10039_p13, %p10038_p12 }
  0x9b   :  { %p10041_p1 = pnand %p10040_p0, %p10034_p11 }
  0x9d   :  { %10044 = shalt.err (!%p10041_p1)
}
  0x9e   :  { %110 = dma.hbm_to_vmem [thread:$0]  %s10735_s9, 512, %s105_s29, [#allocation11], %s10130_s19, %s10130_s19, %s10131_s28  }
  0x9f   :  { %s10138_s15 = smov [#allocation15]   ;;  %s10139_s30 = smov [#allocation18]  }
  0xa0   :  { %s126_s12 = sshll.u32 %s10138_s15, 4  ;;  %s148_s16 = sshll.u32 %s10139_s30, 4  ;;  %s127_s12 = int_to_ptr.vmem [resolvable:$true] %s126_s12  ;;  %s149_s16 = int_to_ptr.vmem [resolvable:$true] %s148_s16 }
  0xa1   :  { %s10045_s22 = scalar_lea.hbm %s10737_s11, 512 }
  0xa2   :  { %p10046_p2 = scmp.ne.s32.totalorder %s10737_s11, %s10045_s22  ;;  %p10049_p3 = scmp.lt.u32.totalorder %s10045_s22, %s10737_s11 }
  0xa4   :  { %p10051_p4 = pnand %p10049_p3, %p10046_p2 }
  0xa6   :  { %10054 = shalt.err (!%p10051_p4)
}
  0xa7   :  { %s10055_s9 = scalar_lea.vmem %s127_s12, 512  ;;  %p10060_p6 = scmp.lt.s32.totalorder %s127_s12, %s127_s12 }
  0xa8   :  { %p10056_p5 = scmp.ne.s32.totalorder %s127_s12, %s10055_s9  ;;  %p10061_p7 = scmp.lt.s32.totalorder %s10055_s9, %s10055_s9 }
  0xaa   :  { %p10062_p8 = por %p10061_p7, %p10060_p6 }
  0xac   :  { %p10063_p9 = pnand %p10062_p8, %p10056_p5 }
  0xae   :  { %10066 = shalt.err (!%p10063_p9)
}
  0xaf   :  { %132 = dma.hbm_to_vmem [thread:$0]  %s10737_s11, 512, %s127_s12, [#allocation14], %s10130_s19, %s10130_s19, %s10131_s28  }
  0xb0   :  { %s10067_s26 = scalar_lea.hbm %s10739_s13, 512 }
  0xb1   :  { %p10068_p10 = scmp.ne.s32.totalorder %s10739_s13, %s10067_s26  ;;  %p10071_p11 = scmp.lt.u32.totalorder %s10067_s26, %s10739_s13 }
  0xb3   :  { %p10073_p12 = pnand %p10071_p11, %p10068_p10 }
  0xb5   :  { %10076 = shalt.err (!%p10073_p12)
}
  0xb6   :  { %s10077_s6 = scalar_lea.vmem %s149_s16, 512  ;;  %p10082_p0 = scmp.lt.s32.totalorder %s149_s16, %s149_s16 }
  0xb7   :  { %p10078_p13 = scmp.ne.s32.totalorder %s149_s16, %s10077_s6  ;;  %p10083_p1 = scmp.lt.s32.totalorder %s10077_s6, %s10077_s6 }
  0xb9   :  { %p10084_p2 = por %p10083_p1, %p10082_p0 }
  0xbb   :  { %p10085_p3 = pnand %p10084_p2, %p10078_p13 }
  0xbd   :  { %10088 = shalt.err (!%p10085_p3)
}
  0xbe   :  { %154 = dma.hbm_to_vmem [thread:$0]  %s10739_s13, 512, %s149_s16, [#allocation17], %s10130_s19, %s10130_s19, %s10131_s28  }
  0xbf   :  { %s10140_s15 = smov [#allocation19]   ;;  %s10089_s20 = scalar_lea.hbm %s10740_s14, 16 }
  0xc0   :  { %s161_s12 = sshll.u32 %s10140_s15, 4  ;;  %p10090_p4 = scmp.ne.s32.totalorder %s10740_s14, %s10089_s20  ;;  %s162_s12 = int_to_ptr.vmem [resolvable:$true] %s161_s12 }
  0xc1   :  { %p10093_p5 = scmp.lt.u32.totalorder %s10089_s20, %s10740_s14 }
  0xc3   :  { %p10095_p6 = pnand %p10093_p5, %p10090_p4 }
  0xc5   :  { %10098 = shalt.err (!%p10095_p6)
}
  0xc6   :  { %s10099_s3 = scalar_lea.vmem %s162_s12, 16  ;;  %s10103_s13 = scalar_lea.vmem %s162_s12, 32 }
  0xc7   :  { %p10100_p7 = scmp.ne.s32.totalorder %s162_s12, %s10099_s3  ;;  %p10104_p8 = scmp.lt.s32.totalorder %s162_s12, %s162_s12 }
  0xc8   :  { %p10105_p9 = scmp.lt.s32.totalorder %s10103_s13, %s10099_s3 }
  0xca   :  { %p10106_p10 = por %p10105_p9, %p10104_p8 }
  0xcc   :  { %p10107_p11 = pnand %p10106_p10, %p10100_p7 }
  0xce   :  { %10110 = shalt.err (!%p10107_p11)
}
  0xcf   :  { %164 = dma.hbm_to_vmem [thread:$0]  %s10740_s14, 16, %s162_s12, [#allocation20]  }
  0xd0   :  { %10111 = dma.done.wait [#allocation3], 79872  }
  0xd1   :  { %10112 = vsyncadd [#allocation3], 4294887424 }
  0xd2   :  { %10113 = dma.done.wait [#allocation5], 528  }
  0xd3   :  { %10114 = vsyncadd [#allocation5], 4294966768 }
  0xd4   :  { %10115 = dma.done.wait [#allocation8], 1040  }
  0xd5   :  { %10116 = vsyncadd [#allocation8], 4294966256 }
  0xd6   :  { %10117 = dma.done.wait [#allocation11], 528  }
  0xd7   :  { %10118 = vsyncadd [#allocation11], 4294966768 }
  0xd8   :  { %10119 = dma.done.wait [#allocation14], 528  }
  0xd9   :  { %10120 = vsyncadd [#allocation14], 4294966768 }
  0xda   :  { %10121 = dma.done.wait [#allocation17], 528  }
  0xdb   :  { %10122 = vsyncadd [#allocation17], 4294966768 }
  0xdc   :  { %10123 = dma.done.wait [#allocation20], 16  }
  0xdd   :  { %10124 = vsyncadd [#allocation20], 4294967280  ;;  %v10141_v0 = vmov 0.0|0.0   ;;  %vm10142_vm0 = vmmov 0   ;;  %v10143_v1 = vmov 0.0   ;;  %v1607_v2 = vld [vmem:[#allocation4] sm:$0xff] }
  0xde   :  { %9164 = vmatprep.subr.bf16.mxu0 %v10141_v0  ;;  %9085 = vmatprep.mubr.msk.f32.mxu0 %vm10142_vm0, %v10143_v1  ;;  %v1608_v3 = vld [vmem:[#allocation4 + $0x8] sm:$0xff]  ;;  %v9189_v5 = vld [vmem:[#allocation2 + $0x40] sm:$0xff]   ;;  %v1609_v7 = vld [vmem:[#allocation4 + $0x10] sm:$0xff]  ;;  %vm1611_vm1 = vcmask 261120   ;;  %vm7285_vm6 = vcmask 523264   ;;  %s10743_s14 = sld [smem:[#allocation28_spill]] }
  0xdf   :  { %v9165_v4 = vpack.c.bf16 %v1608_v3, %v1607_v2  ;;  %v9190_v6 = vld [vmem:[#allocation2] sm:$0xff]   ;;  %8186 = vmatprep.subr.bf16.mxu1 %v9189_v5  ;;  %v1610_v8 = vld [vmem:[#allocation4 + $0x18] sm:$0xff]  ;;  %v9191_v10 = vld [vmem:[#allocation2 + $0x48] sm:$0xff]  }
  0xe0   :  { %8187 = vmatpush3.bf16.msra.mxu1 %v9190_v6  ;;  %v9168_v9 = vpack.c.bf16 %v1610_v8, %v1609_v7  ;;  %v9192_v11 = vld [vmem:[#allocation2 + $0x8] sm:$0xff]   ;;  %v9193_v12 = vld [vmem:[#allocation2 + $0xc0] sm:$0xff]   ;;  %v9194_v14 = vld [vmem:[#allocation2 + $0x50] sm:$0xff]  }
  0xe1   :  { %9166 = vmatpush3.bf16.msra.mxu0 %v9165_v4  ;;  %8188 = vmatprep.subr.bf16.mxu1 %v9191_v10  ;;  %v1606_v13 = vld [vmem:[%s10727_s1] sm:$0xff]  ;;  %v9196_v16 = vld [vmem:[#allocation2 + $0x10] sm:$0xff]   ;;  %v9197_v17 = vld [vmem:[#allocation2 + $0xc8] sm:$0xff]  }
  0xe2   :  { %9167 = vmatprep.subr.bf16.mxu0 %v10141_v0  ;;  %v9195_v15 = vld [vmem:[#allocation2 + $0x80] sm:$0xff]   ;;  %v9198_v18 = vld [vmem:[#allocation2 + $0x58] sm:$0xff]   ;;  %v9199_v19 = vld [vmem:[#allocation2 + $0x88] sm:$0xff]  }
  0xe3   :  { %v9200_v20 = vld [vmem:[#allocation2 + $0x18] sm:$0xff]   ;;  %v9201_v21 = vld [vmem:[#allocation2 + $0xd0] sm:$0xff]   ;;  %v9202_v22 = vld [vmem:[#allocation2 + $0x60] sm:$0xff]  }
  0xe4   :  { %8189 = vmatpush3.bf16.msra.mxu1 %v9192_v11  ;;  %v9203_v23 = vld [vmem:[#allocation2 + $0x90] sm:$0xff]   ;;  %v9204_v24 = vld [vmem:[#allocation2 + $0x20] sm:$0xff]   ;;  %v9205_v25 = vld [vmem:[#allocation2 + $0xd8] sm:$0xff]  }
  0xe5   :  { %9169 = vmatpush3.bf16.msra.mxu0 %v9168_v9  ;;  %8190 = vmatprep.subr.bf16.mxu1 %v9194_v14  ;;  %v9206_v26 = vld [vmem:[#allocation2 + $0x68] sm:$0xff]   ;;  %v9207_v27 = vld [vmem:[#allocation2 + $0x98] sm:$0xff]   ;;  %v9209_v29 = vld [vmem:[#allocation2 + $0xe0] sm:$0xff]  }
  0xe6   :  { %8208 = vmatprep.subr.bf16.mxu0 %v9193_v12  ;;  %v9208_v28 = vld [vmem:[#allocation2 + $0x28] sm:$0xff]   ;;  %v9210_v30 = vld [vmem:[#allocation2 + $0x70] sm:$0xff]   ;;  %v9211_v31 = vld [vmem:[#allocation2 + $0xa0] sm:$0xff]  }
  0xe7   :  { %v9212_v32 = vld [vmem:[#allocation2 + $0x30] sm:$0xff]   ;;  %v9213_v33 = vld [vmem:[#allocation2 + $0xe8] sm:$0xff]   ;;  %v9214_v34 = vld [vmem:[#allocation2 + $0x78] sm:$0xff]  }
  0xe8   :  { %9086 = vmatmul.mubr.msk.f32.vlgmr.msra.gmra.mrb[0].mxu0 %vm1611_vm1, %v1606_v13  ;;  %8191 = vmatpush3.bf16.msra.mxu1 %v9196_v16  ;;  %v9215_v35 = vld [vmem:[#allocation2 + $0xa8] sm:$0xff]   ;;  %v9216_v36 = vld [vmem:[#allocation2 + $0x38] sm:$0xff]   ;;  %v9217_v39 = vld [vmem:[#allocation2 + $0xf0] sm:$0xff]  }
  0xe9   :  { %8209 = vmatpush3.bf16.msra.mxu0 %v9195_v15  ;;  %8192 = vmatprep.subr.bf16.mxu1 %v9198_v18  ;;  %v203_v37 = vld [vmem:[%s10726_s0 + $0x8] sm:$0xff]  ;;  %v202_v40 = vld [vmem:[%s10726_s0] sm:$0xff]  ;;  %v9218_v42 = vld [vmem:[#allocation2 + $0xb0] sm:$0xff]  }
  0xea   :  { %8210 = vmatprep.subr.bf16.mxu0 %v9197_v17  ;;  %v281_v38 = vpack.c.bf16 %v203_v37, %v203_v37  ;;  %v280_v41 = vpack.c.bf16 %v202_v40, %v202_v40  ;;  %v9219_v43 = vld [vmem:[#allocation2 + $0x140] sm:$0xff]   ;;  %v9221_v45 = vld [vmem:[#allocation2 + $0xf8] sm:$0xff]   ;;  %v9223_v47 = vld [vmem:[#allocation2 + $0x148] sm:$0xff]  }
  0xeb   :  { %v9220_v44 = vld [vmem:[#allocation2 + $0x100] sm:$0xff]   ;;  %v9222_v46 = vld [vmem:[#allocation2 + $0xb8] sm:$0xff]   ;;  %v9224_v48 = vld [vmem:[#allocation2 + $0x108] sm:$0xff]  }
  0xec   :  { %8193 = vmatpush3.bf16.msra.mxu1 %v9200_v20  ;;  %5461 = vmatprep.mubr.bf16.mxu1 %v281_v38  ;;  %v205_v49 = vld [vmem:[%s10726_s0 + $0x18] sm:$0xff]  ;;  %v204_v50 = vld [vmem:[%s10726_s0 + $0x10] sm:$0xff]  ;;  %v9225_v53 = vld [vmem:[#allocation2 + $0x1c0] sm:$0xff]  }
  0xed   :  { %8211 = vmatpush3.bf16.msra.mxu0 %v9199_v19  ;;  %8194 = vmatprep.subr.bf16.mxu1 %v9202_v22  ;;  %v283_v51 = vpack.c.bf16 %v205_v49, %v205_v49  ;;  %v282_v52 = vpack.c.bf16 %v204_v50, %v204_v50  ;;  %v9226_v54 = vld [vmem:[#allocation2 + $0x150] sm:$0xff]   ;;  %v9227_v55 = vld [vmem:[#allocation2 + $0x180] sm:$0xff]   ;;  %v9229_v57 = vld [vmem:[#allocation2 + $0x1c8] sm:$0xff]  }
  0xee   :  { %8212 = vmatprep.subr.bf16.mxu0 %v9201_v21  ;;  %v9228_v56 = vld [vmem:[#allocation2 + $0x110] sm:$0xff]   ;;  %v9230_v58 = vld [vmem:[#allocation2 + $0x158] sm:$0xff]   ;;  %v9231_v59 = vld [vmem:[#allocation2 + $0x188] sm:$0xff]  }
  0xef   :  { %5501 = vmatprep.mubr.bf16.mxu0 %v283_v51  ;;  %v9232_v60 = vld [vmem:[#allocation2 + $0x118] sm:$0xff]   ;;  %v9233_v61 = vld [vmem:[#allocation2 + $0x1d0] sm:$0xff]   ;;  %v9234_v62 = vld [vmem:[#allocation2 + $0x160] sm:$0xff]  }
  0xf0   :  { %8195 = vmatpush3.bf16.msra.mxu1 %v9204_v24  ;;  %v9235_v63 = vld [vmem:[#allocation2 + $0x190] sm:$0xff]   ;;  %v9236_v0 = vld [vmem:[#allocation2 + $0x120] sm:$0xff]   ;;  %v9237_v2 = vld [vmem:[#allocation2 + $0x1d8] sm:$0xff]  }
  0xf1   :  { %8213 = vmatpush3.bf16.msra.mxu0 %v9203_v23  ;;  %8196 = vmatprep.subr.bf16.mxu1 %v9206_v26  ;;  %v9238_v3 = vld [vmem:[#allocation2 + $0x168] sm:$0xff]   ;;  %v9239_v4 = vld [vmem:[#allocation2 + $0x198] sm:$0xff]   ;;  %v9241_v6 = vld [vmem:[#allocation2 + $0x1e0] sm:$0xff]  }
  0xf2   :  { %8214 = vmatprep.subr.bf16.mxu0 %v9205_v25  ;;  %v9240_v5 = vld [vmem:[#allocation2 + $0x128] sm:$0xff]   ;;  %v9242_v7 = vld [vmem:[#allocation2 + $0x170] sm:$0xff]   ;;  %v9243_v8 = vld [vmem:[#allocation2 + $0x1a0] sm:$0xff]  }
  0xf3   :  { %v9244_v9 = vld [vmem:[#allocation2 + $0x130] sm:$0xff]   ;;  %v9245_v10 = vld [vmem:[#allocation2 + $0x1e8] sm:$0xff]   ;;  %v9246_v11 = vld [vmem:[#allocation2 + $0x178] sm:$0xff]  }
  0xf4   :  { %8197 = vmatpush3.bf16.msra.mxu1 %v9208_v28  ;;  %v9247_v12 = vld [vmem:[#allocation2 + $0x1a8] sm:$0xff]   ;;  %v9248_v13 = vld [vmem:[#allocation2 + $0x138] sm:$0xff]   ;;  %v9249_v16 = vld [vmem:[#allocation2 + $0x1f0] sm:$0xff]  }
  0xf5   :  { %8215 = vmatpush3.bf16.msra.mxu0 %v9207_v27  ;;  %8198 = vmatprep.subr.bf16.mxu1 %v9210_v30  ;;  %v207_v14 = vld [vmem:[%s10726_s0 + $0x28] sm:$0xff]  ;;  %v206_v17 = vld [vmem:[%s10726_s0 + $0x20] sm:$0xff]  ;;  %v9250_v19 = vld [vmem:[#allocation2 + $0x1b0] sm:$0xff]  }
  0xf6   :  { %8216 = vmatprep.subr.bf16.mxu0 %v9209_v29  ;;  %v285_v15 = vpack.c.bf16 %v207_v14, %v207_v14  ;;  %v284_v18 = vpack.c.bf16 %v206_v17, %v206_v17  ;;  %v9251_v20 = vld [vmem:[#allocation2 + $0x240] sm:$0xff]   ;;  %v9253_v22 = vld [vmem:[#allocation2 + $0x1f8] sm:$0xff]   ;;  %v9255_v24 = vld [vmem:[#allocation2 + $0x248] sm:$0xff]  }
  0xf7   :  { %v9252_v21 = vld [vmem:[#allocation2 + $0x200] sm:$0xff]   ;;  %v9254_v23 = vld [vmem:[#allocation2 + $0x1b8] sm:$0xff]   ;;  %v9256_v25 = vld [vmem:[#allocation2 + $0x208] sm:$0xff]  }
  0xf8   :  { %8199 = vmatpush3.bf16.msra.mxu1 %v9212_v32  ;;  %v209_v26 = vld [vmem:[%s10726_s0 + $0x38] sm:$0xff]  ;;  %v208_v28 = vld [vmem:[%s10726_s0 + $0x30] sm:$0xff]  ;;  %v9257_v30 = vld [vmem:[#allocation2 + $0x2c0] sm:$0xff]  }
  0xf9   :  { %8217 = vmatpush3.bf16.msra.mxu0 %v9211_v31  ;;  %8200 = vmatprep.subr.bf16.mxu1 %v9214_v34  ;;  %v287_v27 = vpack.c.bf16 %v209_v26, %v209_v26  ;;  %v286_v29 = vpack.c.bf16 %v208_v28, %v208_v28  ;;  %v9258_v31 = vld [vmem:[#allocation2 + $0x250] sm:$0xff]   ;;  %v9259_v32 = vld [vmem:[#allocation2 + $0x280] sm:$0xff]   ;;  %v9261_v34 = vld [vmem:[#allocation2 + $0x2c8] sm:$0xff]  }
  0xfa   :  { %8218 = vmatprep.subr.bf16.mxu0 %v9213_v33  ;;  %v9260_v33 = vld [vmem:[#allocation2 + $0x210] sm:$0xff]   ;;  %v9264_v37 = vld [vmem:[#allocation2 + $0x218] sm:$0xff]   ;;  %v9277_v50 = vld [vmem:[#allocation2 + $0x2e8] sm:$0xff]  }
  0xfb   :  { %v9265_v38 = vld [vmem:[#allocation2 + $0x2d0] sm:$0xff]   ;;  %v9278_v51 = vld [vmem:[#allocation2 + $0x278] sm:$0xff]  }
  0xfc   :  { %8201 = vmatpush3.bf16.msra.mxu1 %v9216_v36  ;;  %v9263_v36 = vld [vmem:[#allocation2 + $0x288] sm:$0xff]   ;;  %v9267_v40 = vld [vmem:[#allocation2 + $0x290] sm:$0xff]   ;;  %v9296_v14 = vld [vmem:[#allocation2 + $0x318] sm:$0xff]  }
  0xfd   :  { %8219 = vmatpush3.bf16.msra.mxu0 %v9215_v35  ;;  %8230 = vmatprep.subr.bf16.mxu1 %v9219_v43  ;;  %v9262_v35 = vld [vmem:[#allocation2 + $0x258] sm:$0xff]   ;;  %v9270_v43 = vld [vmem:[#allocation2 + $0x268] sm:$0xff]   ;;  %v9276_v49 = vld [vmem:[#allocation2 + $0x230] sm:$0xff]  }
  0xfe   :  { %8220 = vmatprep.subr.bf16.mxu0 %v9217_v39  ;;  %v9266_v39 = vld [vmem:[#allocation2 + $0x260] sm:$0xff]   ;;  %v9299_v17 = vld [vmem:[#allocation2 + $0x390] sm:$0xff]   ;;  %v9310_v28 = vld [vmem:[#allocation2 + $0x378] sm:$0xff]  }
  0xff   :  { %5462 = vmatmul.mubr.bf16.vlgmr.msra.gmra.mrb[0].mxu1 %v280_v41  ;;  %v9268_v41 = vld [vmem:[#allocation2 + $0x220] sm:$0xff]   ;;  %v9308_v26 = vld [vmem:[#allocation2 + $0x330] sm:$0xff]  }
 0x100   :  { %8231 = vmatpush3.bf16.msra.mxu1 %v9220_v44  ;;  %5541 = vmatprep.mubr.bf16.mxu1 %v285_v15  ;;  %v9271_v44 = vld [vmem:[#allocation2 + $0x298] sm:$0xff]   ;;  %v9297_v15 = vld [vmem:[#allocation2 + $0x3d0] sm:$0xff]  }
 0x101   :  { %8221 = vmatpush3.bf16.msra.mxu0 %v9218_v42  ;;  %8232 = vmatprep.subr.bf16.mxu1 %v9223_v47  ;;  %v9269_v42 = vld [vmem:[#allocation2 + $0x2d8] sm:$0xff]   ;;  %v9274_v47 = vld [vmem:[#allocation2 + $0x270] sm:$0xff]  }
 0x102   :  { %8222 = vmatprep.subr.bf16.mxu0 %v9221_v45  ;;  %v9272_v45 = vld [vmem:[#allocation2 + $0x228] sm:$0xff]  }
 0x104   :  { %8233 = vmatpush3.bf16.msra.mxu1 %v9224_v48  ;;  %v9275_v48 = vld [vmem:[#allocation2 + $0x2a0] sm:$0xff]  }
 0x105   :  { %8223 = vmatpush3.bf16.msra.mxu0 %v9222_v46  ;;  %8234 = vmatprep.subr.bf16.mxu1 %v9226_v54  ;;  %v9273_v46 = vld [vmem:[#allocation2 + $0x2e0] sm:$0xff]   ;;  %v211_v54 = vld [vmem:[%s10726_s0 + $0x48] sm:$0xff] }
 0x106   :  { %8252 = vmatprep.subr.bf16.mxu0 %v9225_v53  ;;  %v9280_v53 = vld [vmem:[#allocation2 + $0x238] sm:$0xff]  }
 0x108   :  { %5502 = vmatmul.mubr.bf16.vlgmr.msra.gmra.mrb[4].mxu0 %v282_v52  ;;  %8235 = vmatpush3.bf16.msra.mxu1 %v9228_v56  ;;  %v9279_v52 = vld [vmem:[#allocation2 + $0x2a8] sm:$0xff]   ;;  %v9281_v56 = vld [vmem:[#allocation2 + $0x2f0] sm:$0xff]  }
 0x109   :  { %8253 = vmatpush3.bf16.msra.mxu0 %v9227_v55  ;;  %8236 = vmatprep.subr.bf16.mxu1 %v9230_v58  ;;  %v289_v55 = vpack.c.bf16 %v211_v54, %v211_v54  ;;  %v9328_v54 = vld [vmem:[#allocation2 + $0x418] sm:$0xff]  }
 0x10a   :  { %8254 = vmatprep.subr.bf16.mxu0 %v9229_v57  ;;  %5581 = vmatprep.mubr.bf16.mxu0 %v287_v27  ;;  %v210_v57 = vld [vmem:[%s10726_s0 + $0x40] sm:$0xff]  ;;  %v9309_v27 = vld [vmem:[#allocation2 + $0x3e8] sm:$0xff]  }
 0x10b   :  { %v288_v58 = vpack.c.bf16 %v210_v57, %v210_v57  ;;  %v9331_v57 = vld [vmem:[#allocation2 + $0x490] sm:$0xff]  }
 0x10c   :  { %8237 = vmatpush3.bf16.msra.mxu1 %v9232_v60  ;;  %v9283_v60 = vld [vmem:[#allocation2 + $0x340] sm:$0xff]  }
 0x10d   :  { %8255 = vmatpush3.bf16.msra.mxu0 %v9231_v59  ;;  %8238 = vmatprep.subr.bf16.mxu1 %v9234_v62  ;;  %v9282_v59 = vld [vmem:[#allocation2 + $0x2b0] sm:$0xff]   ;;  %v9285_v62 = vld [vmem:[#allocation2 + $0x2f8] sm:$0xff]  }
 0x10e   :  { %8256 = vmatprep.subr.bf16.mxu0 %v9233_v61  ;;  %v9284_v61 = vld [vmem:[#allocation2 + $0x300] sm:$0xff]  }
 0x110   :  { %8239 = vmatpush3.bf16.msra.mxu1 %v9236_v0  ;;  %v9287_v0 = vld [vmem:[#allocation2 + $0x348] sm:$0xff]  }
 0x111   :  { %8257 = vmatpush3.bf16.msra.mxu0 %v9235_v63  ;;  %8240 = vmatprep.subr.bf16.mxu1 %v9238_v3  ;;  %v9286_v63 = vld [vmem:[#allocation2 + $0x2b8] sm:$0xff]  }
 0x112   :  { %8258 = vmatprep.subr.bf16.mxu0 %v9237_v2  ;;  %v9288_v2 = vld [vmem:[#allocation2 + $0x308] sm:$0xff]   ;;  %v213_v3 = vld [vmem:[%s10726_s0 + $0x58] sm:$0xff] }
 0x114   :  { %8241 = vmatpush3.bf16.msra.mxu1 %v9240_v5  ;;  %v291_v5 = vpack.c.bf16 %v213_v3, %v213_v3  ;;  %v9340_v3 = vld [vmem:[#allocation2 + $0x430] sm:$0xff]  }
 0x115   :  { %8259 = vmatpush3.bf16.msra.mxu0 %v9239_v4  ;;  %8242 = vmatprep.subr.bf16.mxu1 %v9242_v7  ;;  %v212_v4 = vld [vmem:[%s10726_s0 + $0x50] sm:$0xff]  ;;  %v9289_v7 = vld [vmem:[#allocation2 + $0x3c0] sm:$0xff]  }
 0x116   :  { %8260 = vmatprep.subr.bf16.mxu0 %v9241_v6  ;;  %v290_v6 = vpack.c.bf16 %v212_v4, %v212_v4  ;;  %v9341_v4 = vld [vmem:[#allocation2 + $0x4e8] sm:$0xff]  }
 0x118   :  { %8243 = vmatpush3.bf16.msra.mxu1 %v9244_v9  ;;  %v9291_v9 = vld [vmem:[#allocation2 + $0x380] sm:$0xff]  }
 0x119   :  { %8261 = vmatpush3.bf16.msra.mxu0 %v9243_v8  ;;  %8244 = vmatprep.subr.bf16.mxu1 %v9246_v11  ;;  %v9290_v8 = vld [vmem:[#allocation2 + $0x350] sm:$0xff]   ;;  %v9293_v11 = vld [vmem:[#allocation2 + $0x3c8] sm:$0xff]  }
 0x11a   :  { %8262 = vmatprep.subr.bf16.mxu0 %v9245_v10  ;;  %v9292_v10 = vld [vmem:[#allocation2 + $0x310] sm:$0xff]  }
 0x11c   :  { %8245 = vmatpush3.bf16.msra.mxu1 %v9248_v13  ;;  %v9295_v13 = vld [vmem:[#allocation2 + $0x388] sm:$0xff]  }
 0x11d   :  { %8263 = vmatpush3.bf16.msra.mxu0 %v9247_v12  ;;  %8274 = vmatprep.subr.bf16.mxu1 %v9251_v20  ;;  %v9294_v12 = vld [vmem:[#allocation2 + $0x358] sm:$0xff]   ;;  %v9302_v20 = vld [vmem:[#allocation2 + $0x368] sm:$0xff]  }
 0x11e   :  { %8264 = vmatprep.subr.bf16.mxu0 %v9249_v16  ;;  %v9298_v16 = vld [vmem:[#allocation2 + $0x360] sm:$0xff]  }
 0x11f   :  { %5542 = vmatmul.mubr.bf16.vlgmr.msra.gmra.mrb[4].mxu1 %v284_v18  ;;  %v9300_v18 = vld [vmem:[#allocation2 + $0x320] sm:$0xff]  }
 0x120   :  { %8275 = vmatpush3.bf16.msra.mxu1 %v9252_v21  ;;  %5621 = vmatprep.mubr.bf16.mxu1 %v289_v55  ;;  %v9303_v21 = vld [vmem:[#allocation2 + $0x398] sm:$0xff]   ;;  %v9329_v55 = vld [vmem:[#allocation2 + $0x4d0] sm:$0xff]  }
 0x121   :  { %8265 = vmatpush3.bf16.msra.mxu0 %v9250_v19  ;;  %8276 = vmatprep.subr.bf16.mxu1 %v9255_v24  ;;  %v9301_v19 = vld [vmem:[#allocation2 + $0x3d8] sm:$0xff]   ;;  %v9306_v24 = vld [vmem:[#allocation2 + $0x370] sm:$0xff]  }
 0x122   :  { %8266 = vmatprep.subr.bf16.mxu0 %v9253_v22  ;;  %v9304_v22 = vld [vmem:[#allocation2 + $0x328] sm:$0xff]  }
 0x124   :  { %8277 = vmatpush3.bf16.msra.mxu1 %v9256_v25  ;;  %v9307_v25 = vld [vmem:[#allocation2 + $0x3a0] sm:$0xff]  }
 0x125   :  { %8267 = vmatpush3.bf16.msra.mxu0 %v9254_v23  ;;  %8278 = vmatprep.subr.bf16.mxu1 %v9258_v31  ;;  %v9305_v23 = vld [vmem:[#allocation2 + $0x3e0] sm:$0xff]   ;;  %v215_v31 = vld [vmem:[%s10726_s0 + $0x68] sm:$0xff] }
 0x126   :  { %8296 = vmatprep.subr.bf16.mxu0 %v9257_v30  ;;  %v9312_v30 = vld [vmem:[#allocation2 + $0x338] sm:$0xff]  }
 0x128   :  { %5582 = vmatmul.mubr.bf16.vlgmr.msra.gmra.mrb[8].mxu0 %v286_v29  ;;  %8279 = vmatpush3.bf16.msra.mxu1 %v9260_v33  ;;  %v9311_v29 = vld [vmem:[#allocation2 + $0x3a8] sm:$0xff]   ;;  %v9313_v33 = vld [vmem:[#allocation2 + $0x3f0] sm:$0xff]  }
 0x129   :  { %8297 = vmatpush3.bf16.msra.mxu0 %v9259_v32  ;;  %8280 = vmatprep.subr.bf16.mxu1 %v9262_v35  ;;  %v293_v32 = vpack.c.bf16 %v215_v31, %v215_v31  ;;  %v9360_v31 = vld [vmem:[#allocation2 + $0x518] sm:$0xff]  }
 0x12a   :  { %8298 = vmatprep.subr.bf16.mxu0 %v9261_v34  ;;  %5661 = vmatprep.mubr.bf16.mxu0 %v291_v5  ;;  %v214_v34 = vld [vmem:[%s10726_s0 + $0x60] sm:$0xff]  ;;  %v9342_v5 = vld [vmem:[#allocation2 + $0x478] sm:$0xff]  }
 0x12b   :  { %v292_v35 = vpack.c.bf16 %v214_v34, %v214_v34  ;;  %v9363_v34 = vld [vmem:[#allocation2 + $0x590] sm:$0xff]  }
 0x12c   :  { %8281 = vmatpush3.bf16.msra.mxu1 %v9264_v37  ;;  %v9315_v37 = vld [vmem:[#allocation2 + $0x440] sm:$0xff]  }
 0x12d   :  { %8299 = vmatpush3.bf16.msra.mxu0 %v9263_v36  ;;  %8282 = vmatprep.subr.bf16.mxu1 %v9266_v39  ;;  %v9314_v36 = vld [vmem:[#allocation2 + $0x3b0] sm:$0xff]   ;;  %v9317_v39 = vld [vmem:[#allocation2 + $0x3f8] sm:$0xff]  }
 0x12e   :  { %8300 = vmatprep.subr.bf16.mxu0 %v9265_v38  ;;  %v9316_v38 = vld [vmem:[#allocation2 + $0x400] sm:$0xff]  }
 0x130   :  { %8283 = vmatpush3.bf16.msra.mxu1 %v9268_v41  ;;  %v9319_v41 = vld [vmem:[#allocation2 + $0x448] sm:$0xff]  }
 0x131   :  { %8301 = vmatpush3.bf16.msra.mxu0 %v9267_v40  ;;  %8284 = vmatprep.subr.bf16.mxu1 %v9270_v43  ;;  %v9318_v40 = vld [vmem:[#allocation2 + $0x3b8] sm:$0xff]  }
 0x132   :  { %8302 = vmatprep.subr.bf16.mxu0 %v9269_v42  ;;  %v9320_v42 = vld [vmem:[#allocation2 + $0x408] sm:$0xff]   ;;  %v217_v43 = vld [vmem:[%s10726_s0 + $0x78] sm:$0xff] }
 0x134   :  { %8285 = vmatpush3.bf16.msra.mxu1 %v9272_v45  ;;  %v295_v45 = vpack.c.bf16 %v217_v43, %v217_v43  ;;  %v9372_v43 = vld [vmem:[#allocation2 + $0x530] sm:$0xff]  }
 0x135   :  { %8303 = vmatpush3.bf16.msra.mxu0 %v9271_v44  ;;  %8286 = vmatprep.subr.bf16.mxu1 %v9274_v47  ;;  %v216_v44 = vld [vmem:[%s10726_s0 + $0x70] sm:$0xff]  ;;  %v9321_v47 = vld [vmem:[#allocation2 + $0x4c0] sm:$0xff]  }
 0x136   :  { %8304 = vmatprep.subr.bf16.mxu0 %v9273_v46  ;;  %v294_v46 = vpack.c.bf16 %v216_v44, %v216_v44  ;;  %v9373_v44 = vld [vmem:[#allocation2 + $0x5e8] sm:$0xff]  }
 0x138   :  { %8287 = vmatpush3.bf16.msra.mxu1 %v9276_v49  ;;  %v9323_v49 = vld [vmem:[#allocation2 + $0x480] sm:$0xff]  }
 0x139   :  { %8305 = vmatpush3.bf16.msra.mxu0 %v9275_v48  ;;  %8288 = vmatprep.subr.bf16.mxu1 %v9278_v51  ;;  %v9322_v48 = vld [vmem:[#allocation2 + $0x450] sm:$0xff]   ;;  %v9325_v51 = vld [vmem:[#allocation2 + $0x4c8] sm:$0xff]  }
 0x13a   :  { %8306 = vmatprep.subr.bf16.mxu0 %v9277_v50  ;;  %v9324_v50 = vld [vmem:[#allocation2 + $0x410] sm:$0xff]  }
 0x13c   :  { %8289 = vmatpush3.bf16.msra.mxu1 %v9280_v53  ;;  %v9327_v53 = vld [vmem:[#allocation2 + $0x488] sm:$0xff]  }
 0x13d   :  { %8307 = vmatpush3.bf16.msra.mxu0 %v9279_v52  ;;  %8318 = vmatprep.subr.bf16.mxu1 %v9283_v60  ;;  %v9326_v52 = vld [vmem:[#allocation2 + $0x458] sm:$0xff]   ;;  %v9334_v60 = vld [vmem:[#allocation2 + $0x468] sm:$0xff]  }
 0x13e   :  { %8308 = vmatprep.subr.bf16.mxu0 %v9281_v56  ;;  %v9330_v56 = vld [vmem:[#allocation2 + $0x460] sm:$0xff]  }
 0x13f   :  { %5622 = vmatmul.mubr.bf16.vlgmr.msra.gmra.mrb[8].mxu1 %v288_v58  ;;  %v9332_v58 = vld [vmem:[#allocation2 + $0x420] sm:$0xff]  }
 0x140   :  { %8319 = vmatpush3.bf16.msra.mxu1 %v9284_v61  ;;  %5701 = vmatprep.mubr.bf16.mxu1 %v293_v32  ;;  %v9335_v61 = vld [vmem:[#allocation2 + $0x498] sm:$0xff]   ;;  %v9361_v32 = vld [vmem:[#allocation2 + $0x5d0] sm:$0xff]  }
 0x141   :  { %8309 = vmatpush3.bf16.msra.mxu0 %v9282_v59  ;;  %8320 = vmatprep.subr.bf16.mxu1 %v9287_v0  ;;  %v9333_v59 = vld [vmem:[#allocation2 + $0x4d8] sm:$0xff]   ;;  %v9338_v0 = vld [vmem:[#allocation2 + $0x470] sm:$0xff]  }
 0x142   :  { %8310 = vmatprep.subr.bf16.mxu0 %v9285_v62  ;;  %v9336_v62 = vld [vmem:[#allocation2 + $0x428] sm:$0xff]  }
 0x144   :  { %8321 = vmatpush3.bf16.msra.mxu1 %v9288_v2  ;;  %v9339_v2 = vld [vmem:[#allocation2 + $0x4a0] sm:$0xff]  }
 0x145   :  { %8311 = vmatpush3.bf16.msra.mxu0 %v9286_v63  ;;  %8322 = vmatprep.subr.bf16.mxu1 %v9290_v8  ;;  %v9337_v63 = vld [vmem:[#allocation2 + $0x4e0] sm:$0xff]   ;;  %v219_v8 = vld [vmem:[%s10726_s0 + $0x88] sm:$0xff] }
 0x146   :  { %8340 = vmatprep.subr.bf16.mxu0 %v9289_v7  ;;  %v9344_v7 = vld [vmem:[#allocation2 + $0x438] sm:$0xff]  }
 0x148   :  { %5662 = vmatmul.mubr.bf16.vlgmr.msra.gmra.mrb[12].mxu0 %v290_v6  ;;  %8323 = vmatpush3.bf16.msra.mxu1 %v9292_v10  ;;  %v9343_v6 = vld [vmem:[#allocation2 + $0x4a8] sm:$0xff]   ;;  %v9345_v10 = vld [vmem:[#allocation2 + $0x4f0] sm:$0xff]  }
 0x149   :  { %8341 = vmatpush3.bf16.msra.mxu0 %v9291_v9  ;;  %8324 = vmatprep.subr.bf16.mxu1 %v9294_v12  ;;  %v297_v9 = vpack.c.bf16 %v219_v8, %v219_v8  ;;  %v9392_v8 = vld [vmem:[#allocation2 + $0x618] sm:$0xff]  }
 0x14a   :  { %8342 = vmatprep.subr.bf16.mxu0 %v9293_v11  ;;  %5741 = vmatprep.mubr.bf16.mxu0 %v295_v45  ;;  %v218_v11 = vld [vmem:[%s10726_s0 + $0x80] sm:$0xff]  ;;  %v9374_v45 = vld [vmem:[#allocation2 + $0x578] sm:$0xff]  }
 0x14b   :  { %v296_v12 = vpack.c.bf16 %v218_v11, %v218_v11  ;;  %v9395_v11 = vld [vmem:[#allocation2 + $0x690] sm:$0xff]  }
 0x14c   :  { %8325 = vmatpush3.bf16.msra.mxu1 %v9296_v14  ;;  %v9347_v14 = vld [vmem:[#allocation2 + $0x540] sm:$0xff]  }
 0x14d   :  { %8343 = vmatpush3.bf16.msra.mxu0 %v9295_v13  ;;  %8326 = vmatprep.subr.bf16.mxu1 %v9298_v16  ;;  %v9346_v13 = vld [vmem:[#allocation2 + $0x4b0] sm:$0xff]   ;;  %v9349_v16 = vld [vmem:[#allocation2 + $0x4f8] sm:$0xff]  }
 0x14e   :  { %8344 = vmatprep.subr.bf16.mxu0 %v9297_v15  ;;  %v9348_v15 = vld [vmem:[#allocation2 + $0x500] sm:$0xff]  }
 0x150   :  { %8327 = vmatpush3.bf16.msra.mxu1 %v9300_v18  ;;  %v9351_v18 = vld [vmem:[#allocation2 + $0x548] sm:$0xff]  }
 0x151   :  { %8345 = vmatpush3.bf16.msra.mxu0 %v9299_v17  ;;  %8328 = vmatprep.subr.bf16.mxu1 %v9302_v20  ;;  %v9350_v17 = vld [vmem:[#allocation2 + $0x4b8] sm:$0xff]  }
 0x152   :  { %8346 = vmatprep.subr.bf16.mxu0 %v9301_v19  ;;  %v9352_v19 = vld [vmem:[#allocation2 + $0x508] sm:$0xff]   ;;  %v221_v20 = vld [vmem:[%s10726_s0 + $0x98] sm:$0xff] }
 0x154   :  { %8329 = vmatpush3.bf16.msra.mxu1 %v9304_v22  ;;  %v220_v22 = vld [vmem:[%s10726_s0 + $0x90] sm:$0xff] }
 0x155   :  { %8347 = vmatpush3.bf16.msra.mxu0 %v9303_v21  ;;  %8330 = vmatprep.subr.bf16.mxu1 %v9306_v24  ;;  %v299_v21 = vpack.c.bf16 %v221_v20, %v221_v20  ;;  %v9353_v24 = vld [vmem:[#allocation2 + $0x5c0] sm:$0xff]   ;;  %v9402_v20 = vld [vmem:[#allocation2 + $0x670] sm:$0xff]  }
 0x156   :  { %8348 = vmatprep.subr.bf16.mxu0 %v9305_v23  ;;  %v298_v23 = vpack.c.bf16 %v220_v22, %v220_v22  ;;  %v9404_v22 = vld [vmem:[#allocation2 + $0x630] sm:$0xff]  }
 0x158   :  { %8331 = vmatpush3.bf16.msra.mxu1 %v9308_v26  ;;  %v9355_v26 = vld [vmem:[#allocation2 + $0x580] sm:$0xff]  }
 0x159   :  { %8349 = vmatpush3.bf16.msra.mxu0 %v9307_v25  ;;  %8332 = vmatprep.subr.bf16.mxu1 %v9310_v28  ;;  %v9354_v25 = vld [vmem:[#allocation2 + $0x550] sm:$0xff]   ;;  %v9357_v28 = vld [vmem:[#allocation2 + $0x5c8] sm:$0xff]  }
 0x15a   :  { %8350 = vmatprep.subr.bf16.mxu0 %v9309_v27  ;;  %v9356_v27 = vld [vmem:[#allocation2 + $0x510] sm:$0xff]  }
 0x15c   :  { %8333 = vmatpush3.bf16.msra.mxu1 %v9312_v30  ;;  %v9359_v30 = vld [vmem:[#allocation2 + $0x588] sm:$0xff]  }
 0x15d   :  { %8351 = vmatpush3.bf16.msra.mxu0 %v9311_v29  ;;  %8362 = vmatprep.subr.bf16.mxu1 %v9315_v37  ;;  %v9358_v29 = vld [vmem:[#allocation2 + $0x558] sm:$0xff]   ;;  %v9366_v37 = vld [vmem:[#allocation2 + $0x568] sm:$0xff]  }
 0x15e   :  { %8352 = vmatprep.subr.bf16.mxu0 %v9313_v33  ;;  %v9362_v33 = vld [vmem:[#allocation2 + $0x560] sm:$0xff]  }
 0x15f   :  { %5702 = vmatmul.mubr.bf16.vlgmr.msra.gmra.mrb[12].mxu1 %v292_v35  ;;  %v9364_v35 = vld [vmem:[#allocation2 + $0x520] sm:$0xff]  }
 0x160   :  { %8363 = vmatpush3.bf16.msra.mxu1 %v9316_v38  ;;  %5781 = vmatprep.mubr.bf16.mxu1 %v297_v9  ;;  %v9367_v38 = vld [vmem:[#allocation2 + $0x598] sm:$0xff]   ;;  %v9393_v9 = vld [vmem:[#allocation2 + $0x6d0] sm:$0xff]  }
 0x161   :  { %8353 = vmatpush3.bf16.msra.mxu0 %v9314_v36  ;;  %8364 = vmatprep.subr.bf16.mxu1 %v9319_v41  ;;  %v9365_v36 = vld [vmem:[#allocation2 + $0x5d8] sm:$0xff]   ;;  %v9370_v41 = vld [vmem:[#allocation2 + $0x570] sm:$0xff]  }
 0x162   :  { %8354 = vmatprep.subr.bf16.mxu0 %v9317_v39  ;;  %v9368_v39 = vld [vmem:[#allocation2 + $0x528] sm:$0xff]  }
 0x164   :  { %8365 = vmatpush3.bf16.msra.mxu1 %v9320_v42  ;;  %v9371_v42 = vld [vmem:[#allocation2 + $0x5a0] sm:$0xff]  }
 0x165   :  { %8355 = vmatpush3.bf16.msra.mxu0 %v9318_v40  ;;  %8366 = vmatprep.subr.bf16.mxu1 %v9322_v48  ;;  %v9369_v40 = vld [vmem:[#allocation2 + $0x5e0] sm:$0xff]   ;;  %v223_v48 = vld [vmem:[%s10726_s0 + $0xa8] sm:$0xff] }
 0x166   :  { %8384 = vmatprep.subr.bf16.mxu0 %v9321_v47  ;;  %v9376_v47 = vld [vmem:[#allocation2 + $0x538] sm:$0xff]  }
 0x168   :  { %5742 = vmatmul.mubr.bf16.vlgmr.msra.gmra.mrb[16].mxu0 %v294_v46  ;;  %8367 = vmatpush3.bf16.msra.mxu1 %v9324_v50  ;;  %v9375_v46 = vld [vmem:[#allocation2 + $0x5a8] sm:$0xff]   ;;  %v9377_v50 = vld [vmem:[#allocation2 + $0x5f0] sm:$0xff]  }
 0x169   :  { %8385 = vmatpush3.bf16.msra.mxu0 %v9323_v49  ;;  %8368 = vmatprep.subr.bf16.mxu1 %v9326_v52  ;;  %v301_v49 = vpack.c.bf16 %v223_v48, %v223_v48  ;;  %v9422_v48 = vld [vmem:[#allocation2 + $0x758] sm:$0xff]  }
 0x16a   :  { %8386 = vmatprep.subr.bf16.mxu0 %v9325_v51  ;;  %5821 = vmatprep.mubr.bf16.mxu0 %v299_v21  ;;  %v222_v51 = vld [vmem:[%s10726_s0 + $0xa0] sm:$0xff] }
 0x16b   :  { %v300_v52 = vpack.c.bf16 %v222_v51, %v222_v51  ;;  %v9403_v21 = vld [vmem:[#allocation2 + $0x6a0] sm:$0xff]  }
 0x16c   :  { %8369 = vmatpush3.bf16.msra.mxu1 %v9328_v54  ;;  %v9379_v54 = vld [vmem:[#allocation2 + $0x640] sm:$0xff]  }
 0x16d   :  { %8387 = vmatpush3.bf16.msra.mxu0 %v9327_v53  ;;  %8370 = vmatprep.subr.bf16.mxu1 %v9330_v56  ;;  %v9378_v53 = vld [vmem:[#allocation2 + $0x5b0] sm:$0xff]   ;;  %v9381_v56 = vld [vmem:[#allocation2 + $0x5f8] sm:$0xff]  }
 0x16e   :  { %8388 = vmatprep.subr.bf16.mxu0 %v9329_v55  ;;  %v9380_v55 = vld [vmem:[#allocation2 + $0x600] sm:$0xff]  }
 0x170   :  { %8371 = vmatpush3.bf16.msra.mxu1 %v9332_v58  ;;  %v9383_v58 = vld [vmem:[#allocation2 + $0x648] sm:$0xff]  }
 0x171   :  { %8389 = vmatpush3.bf16.msra.mxu0 %v9331_v57  ;;  %8372 = vmatprep.subr.bf16.mxu1 %v9334_v60  ;;  %v9382_v57 = vld [vmem:[#allocation2 + $0x5b8] sm:$0xff]  }
 0x172   :  { %8390 = vmatprep.subr.bf16.mxu0 %v9333_v59  ;;  %v9384_v59 = vld [vmem:[#allocation2 + $0x608] sm:$0xff]   ;;  %v225_v60 = vld [vmem:[%s10726_s0 + $0xb8] sm:$0xff] }
 0x174   :  { %8373 = vmatpush3.bf16.msra.mxu1 %v9336_v62  ;;  %v303_v62 = vpack.c.bf16 %v225_v60, %v225_v60 }
 0x175   :  { %8391 = vmatpush3.bf16.msra.mxu0 %v9335_v61  ;;  %8374 = vmatprep.subr.bf16.mxu1 %v9338_v0  ;;  %v224_v61 = vld [vmem:[%s10726_s0 + $0xb0] sm:$0xff]  ;;  %v9385_v0 = vld [vmem:[#allocation2 + $0x6c0] sm:$0xff]  }
 0x176   :  { %8392 = vmatprep.subr.bf16.mxu0 %v9337_v63  ;;  %v302_v63 = vpack.c.bf16 %v224_v61, %v224_v61  ;;  %v9429_v61 = vld [vmem:[#allocation2 + $0x7d8] sm:$0xff]  }
 0x178   :  { %8375 = vmatpush3.bf16.msra.mxu1 %v9340_v3  ;;  %v9387_v3 = vld [vmem:[#allocation2 + $0x680] sm:$0xff]  }
 0x179   :  { %8393 = vmatpush3.bf16.msra.mxu0 %v9339_v2  ;;  %8376 = vmatprep.subr.bf16.mxu1 %v9342_v5  ;;  %v9386_v2 = vld [vmem:[#allocation2 + $0x650] sm:$0xff]   ;;  %v9389_v5 = vld [vmem:[#allocation2 + $0x6c8] sm:$0xff]  }
 0x17a   :  { %8394 = vmatprep.subr.bf16.mxu0 %v9341_v4  ;;  %v9388_v4 = vld [vmem:[#allocation2 + $0x610] sm:$0xff]  }
 0x17c   :  { %8377 = vmatpush3.bf16.msra.mxu1 %v9344_v7  ;;  %v9391_v7 = vld [vmem:[#allocation2 + $0x688] sm:$0xff]  }
 0x17d   :  { %8395 = vmatpush3.bf16.msra.mxu0 %v9343_v6  ;;  %8406 = vmatprep.subr.bf16.mxu1 %v9347_v14  ;;  %v9390_v6 = vld [vmem:[#allocation2 + $0x658] sm:$0xff]   ;;  %v9398_v14 = vld [vmem:[#allocation2 + $0x668] sm:$0xff]  }
 0x17e   :  { %8396 = vmatprep.subr.bf16.mxu0 %v9345_v10  ;;  %v9394_v10 = vld [vmem:[#allocation2 + $0x660] sm:$0xff]  }
 0x17f   :  { %5782 = vmatmul.mubr.bf16.vlgmr.msra.gmra.mrb[16].mxu1 %v296_v12  ;;  %v9396_v12 = vld [vmem:[#allocation2 + $0x620] sm:$0xff]  }
 0x180   :  { %8407 = vmatpush3.bf16.msra.mxu1 %v9348_v15  ;;  %5861 = vmatprep.mubr.bf16.mxu1 %v301_v49  ;;  %v9399_v15 = vld [vmem:[#allocation2 + $0x698] sm:$0xff]   ;;  %v9423_v49 = vld [vmem:[#allocation2 + $0x788] sm:$0xff]  }
 0x181   :  { %8397 = vmatpush3.bf16.msra.mxu0 %v9346_v13  ;;  %8408 = vmatprep.subr.bf16.mxu1 %v9351_v18  ;;  %v9397_v13 = vld [vmem:[#allocation2 + $0x6d8] sm:$0xff]   ;;  %v9401_v18 = vld [vmem:[#allocation2 + $0x6e0] sm:$0xff]  }
 0x182   :  { %8398 = vmatprep.subr.bf16.mxu0 %v9349_v16  ;;  %v9400_v16 = vld [vmem:[#allocation2 + $0x628] sm:$0xff]  }
 0x184   :  { %8409 = vmatpush3.bf16.msra.mxu1 %v9352_v19 }
 0x185   :  { %8399 = vmatpush3.bf16.msra.mxu0 %v9350_v17  ;;  %8410 = vmatprep.subr.bf16.mxu1 %v9354_v25  ;;  %v9407_v25 = vld [vmem:[#allocation2 + $0x6a8] sm:$0xff]  }
 0x186   :  { %8428 = vmatprep.subr.bf16.mxu0 %v9353_v24  ;;  %v9406_v24 = vld [vmem:[#allocation2 + $0x678] sm:$0xff]  }
 0x188   :  { %5822 = vmatmul.mubr.bf16.vlgmr.msra.gmra.mrb[20].mxu0 %v298_v23  ;;  %8411 = vmatpush3.bf16.msra.mxu1 %v9356_v27  ;;  %v9405_v23 = vld [vmem:[#allocation2 + $0x6e8] sm:$0xff]  }
 0x189   :  { %8429 = vmatpush3.bf16.msra.mxu0 %v9355_v26  ;;  %8412 = vmatprep.subr.bf16.mxu1 %v9358_v29  ;;  %v9408_v26 = vld [vmem:[#allocation2 + $0x638] sm:$0xff]   ;;  %v227_v27 = vld [vmem:[%s10726_s0 + $0xc8] sm:$0xff]  ;;  %v9409_v29 = vld [vmem:[#allocation2 + $0x6f0] sm:$0xff]  }
 0x18a   :  { %8430 = vmatprep.subr.bf16.mxu0 %v9357_v28  ;;  %5901 = vmatprep.mubr.bf16.mxu0 %v303_v62  ;;  %v305_v28 = vpack.c.bf16 %v227_v27, %v227_v27  ;;  %v9430_v62 = vld [vmem:[#allocation2 + $0x768] sm:$0xff]  }
 0x18b   :  { %v9448_v27 = vld [vmem:[#allocation2 + $0x808] sm:$0xff]  }
 0x18c   :  { %8413 = vmatpush3.bf16.msra.mxu1 %v9360_v31 }
 0x18d   :  { %8431 = vmatpush3.bf16.msra.mxu0 %v9359_v30  ;;  %8414 = vmatprep.subr.bf16.mxu1 %v9362_v33  ;;  %v226_v30 = vld [vmem:[%s10726_s0 + $0xc0] sm:$0xff] }
 0x18e   :  { %8432 = vmatprep.subr.bf16.mxu0 %v9361_v32  ;;  %v304_v31 = vpack.c.bf16 %v226_v30, %v226_v30  ;;  %v9410_v32 = vld [vmem:[#allocation2 + $0x6b0] sm:$0xff]   ;;  %v9411_v33 = vld [vmem:[#allocation2 + $0x740] sm:$0xff]  }
 0x18f   :  { %v232_v30 = vld [vmem:[%s10726_s0 + $0xf0] sm:$0xff] }
 0x190   :  { %8415 = vmatpush3.bf16.msra.mxu1 %v9364_v35  ;;  %v9413_v35 = vld [vmem:[#allocation2 + $0x6f8] sm:$0xff]  }
 0x191   :  { %8433 = vmatpush3.bf16.msra.mxu0 %v9363_v34  ;;  %8416 = vmatprep.subr.bf16.mxu1 %v9366_v37  ;;  %v9412_v34 = vld [vmem:[#allocation2 + $0x700] sm:$0xff]   ;;  %v9415_v37 = vld [vmem:[#allocation2 + $0x748] sm:$0xff]  }
 0x192   :  { %8434 = vmatprep.subr.bf16.mxu0 %v9365_v36  ;;  %v9414_v36 = vld [vmem:[#allocation2 + $0x6b8] sm:$0xff]  }
 0x194   :  { %8417 = vmatpush3.bf16.msra.mxu1 %v9368_v39  ;;  %v229_v39 = vld [vmem:[%s10726_s0 + $0xd8] sm:$0xff] }
 0x195   :  { %8435 = vmatpush3.bf16.msra.mxu0 %v9367_v38  ;;  %8418 = vmatprep.subr.bf16.mxu1 %v9370_v41  ;;  %v9416_v38 = vld [vmem:[#allocation2 + $0x708] sm:$0xff]   ;;  %v307_v41 = vpack.c.bf16 %v229_v39, %v229_v39 }
 0x196   :  { %8436 = vmatprep.subr.bf16.mxu0 %v9369_v40  ;;  %v228_v40 = vld [vmem:[%s10726_s0 + $0xd0] sm:$0xff] }
 0x198   :  { %8419 = vmatpush3.bf16.msra.mxu1 %v9372_v43  ;;  %v9417_v43 = vld [vmem:[#allocation2 + $0x7c0] sm:$0xff]  }
 0x199   :  { %8437 = vmatpush3.bf16.msra.mxu0 %v9371_v42  ;;  %8420 = vmatprep.subr.bf16.mxu1 %v9374_v45  ;;  %v306_v42 = vpack.c.bf16 %v228_v40, %v228_v40  ;;  %v9419_v45 = vld [vmem:[#allocation2 + $0x780] sm:$0xff]   ;;  %v9456_v40 = vld [vmem:[#allocation2 + $0x818] sm:$0xff]  }
 0x19a   :  { %8438 = vmatprep.subr.bf16.mxu0 %v9373_v44  ;;  %v9418_v44 = vld [vmem:[#allocation2 + $0x750] sm:$0xff]  }
 0x19c   :  { %8421 = vmatpush3.bf16.msra.mxu1 %v9376_v47  ;;  %v9421_v47 = vld [vmem:[#allocation2 + $0x7c8] sm:$0xff]  }
 0x19d   :  { %8439 = vmatpush3.bf16.msra.mxu0 %v9375_v46  ;;  %8450 = vmatprep.subr.bf16.mxu1 %v9379_v54  ;;  %v9420_v46 = vld [vmem:[#allocation2 + $0x710] sm:$0xff]   ;;  %v9426_v54 = vld [vmem:[#allocation2 + $0x760] sm:$0xff]  }
 0x19e   :  { %8440 = vmatprep.subr.bf16.mxu0 %v9377_v50  ;;  %v9424_v50 = vld [vmem:[#allocation2 + $0x718] sm:$0xff]  }
 0x19f   :  { %5862 = vmatmul.mubr.bf16.vlgmr.msra.gmra.mrb[20].mxu1 %v300_v52  ;;  %v9425_v52 = vld [vmem:[#allocation2 + $0x7d0] sm:$0xff]  }
 0x1a0   :  { %8451 = vmatpush3.bf16.msra.mxu1 %v9380_v55  ;;  %5941 = vmatprep.mubr.bf16.mxu1 %v305_v28  ;;  %v233_v28 = vld [vmem:[%s10726_s0 + $0xf8] sm:$0xff] }
 0x1a1   :  { %8441 = vmatpush3.bf16.msra.mxu0 %v9378_v53  ;;  %8452 = vmatprep.subr.bf16.mxu1 %v9383_v58 }
 0x1a2   :  { %8442 = vmatprep.subr.bf16.mxu0 %v9381_v56 }
 0x1a4   :  { %8453 = vmatpush3.bf16.msra.mxu1 %v9384_v59  ;;  %v9428_v59 = vld [vmem:[#allocation2 + $0x720] sm:$0xff]  }
 0x1a5   :  { %8443 = vmatpush3.bf16.msra.mxu0 %v9382_v57  ;;  %8454 = vmatprep.subr.bf16.mxu1 %v9386_v2  ;;  %v9427_v57 = vld [vmem:[#allocation2 + $0x790] sm:$0xff]   ;;  %v9432_v2 = vld [vmem:[#allocation2 + $0x728] sm:$0xff]  }
 0x1a6   :  { %8472 = vmatprep.subr.bf16.mxu0 %v9385_v0 }
 0x1a8   :  { %5902 = vmatmul.mubr.bf16.vlgmr.msra.gmra.mrb[24].mxu0 %v302_v63  ;;  %8455 = vmatpush3.bf16.msra.mxu1 %v9388_v4  ;;  %v9431_v63 = vld [vmem:[#allocation2 + $0x798] sm:$0xff]   ;;  %v9433_v4 = vld [vmem:[#allocation2 + $0x7e0] sm:$0xff]  }
 0x1a9   :  { %8473 = vmatpush3.bf16.msra.mxu0 %v9387_v3  ;;  %8456 = vmatprep.subr.bf16.mxu1 %v9390_v6 }
 0x1aa   :  { %8474 = vmatprep.subr.bf16.mxu0 %v9389_v5  ;;  %5981 = vmatprep.mubr.bf16.mxu0 %v307_v41 }
 0x1ac   :  { %8457 = vmatpush3.bf16.msra.mxu1 %v9392_v8 }
 0x1ad   :  { %8475 = vmatpush3.bf16.msra.mxu0 %v9391_v7  ;;  %8458 = vmatprep.subr.bf16.mxu1 %v9394_v10  ;;  %v9434_v7 = vld [vmem:[#allocation2 + $0x770] sm:$0xff]  }
 0x1ae   :  { %8476 = vmatprep.subr.bf16.mxu0 %v9393_v9  ;;  %v9435_v9 = vld [vmem:[#allocation2 + $0x7a0] sm:$0xff]  }
 0x1b0   :  { %8459 = vmatpush3.bf16.msra.mxu1 %v9396_v12  ;;  %v9437_v12 = vld [vmem:[#allocation2 + $0x7e8] sm:$0xff]  }
 0x1b1   :  { %8477 = vmatpush3.bf16.msra.mxu0 %v9395_v11  ;;  %8460 = vmatprep.subr.bf16.mxu1 %v9398_v14  ;;  %v9436_v11 = vld [vmem:[#allocation2 + $0x730] sm:$0xff]   ;;  %v9439_v14 = vld [vmem:[#allocation2 + $0x7a8] sm:$0xff]  }
 0x1b2   :  { %8478 = vmatprep.subr.bf16.mxu0 %v9397_v13  ;;  %v9438_v13 = vld [vmem:[#allocation2 + $0x778] sm:$0xff]  }
 0x1b4   :  { %8461 = vmatpush3.bf16.msra.mxu1 %v9400_v16  ;;  %v231_v16 = vld [vmem:[%s10726_s0 + $0xe8] sm:$0xff] }
 0x1b5   :  { %8479 = vmatpush3.bf16.msra.mxu0 %v9399_v15  ;;  %8462 = vmatprep.subr.bf16.mxu1 %v9402_v20  ;;  %v9440_v15 = vld [vmem:[#allocation2 + $0x738] sm:$0xff]  }
 0x1b6   :  { %8480 = vmatprep.subr.bf16.mxu0 %v9401_v18  ;;  %v9441_v18 = vld [vmem:[#allocation2 + $0x7f0] sm:$0xff]  }
 0x1b8   :  { %8463 = vmatpush3.bf16.msra.mxu1 %v9404_v22  ;;  %v9443_v22 = vld [vmem:[#allocation2 + $0x840] sm:$0xff]  }
 0x1b9   :  { %8481 = vmatpush3.bf16.msra.mxu0 %v9403_v21  ;;  %8464 = vmatprep.subr.bf16.mxu1 %v9406_v24  ;;  %v9442_v21 = vld [vmem:[#allocation2 + $0x7b0] sm:$0xff]   ;;  %v9445_v24 = vld [vmem:[#allocation2 + $0x7f8] sm:$0xff]  }
 0x1ba   :  { %8482 = vmatprep.subr.bf16.mxu0 %v9405_v23  ;;  %v9444_v23 = vld [vmem:[#allocation2 + $0x800] sm:$0xff]  }
 0x1bb   :  { %v10460_v17 = vpop.f32.mrb[0].mxu0 }
 0x1bc   :  { %v9087_v19 = vpop.f32.mrb[1].mxu0  ;;  %8465 = vmatpush3.bf16.msra.mxu1 %v9408_v26  ;;  %v9447_v26 = vld [vmem:[#allocation2 + $0x848] sm:$0xff]  }
 0x1bd   :  { %8483 = vmatpush3.bf16.msra.mxu0 %v9407_v25  ;;  %8494 = vmatprep.subr.bf16.mxu1 %v9411_v33  ;;  %v230_v19 = vld [vmem:[%s10726_s0 + $0xe0] sm:$0xff]  ;;  %v9446_v25 = vld [vmem:[#allocation2 + $0x7b8] sm:$0xff]   ;;  %v9450_v33 = vld [vmem:[#allocation2 + $0x850] sm:$0xff]  }
 0x1be   :  { %8484 = vmatprep.subr.bf16.mxu0 %v9409_v29  ;;  %v308_v20 = vpack.c.bf16 %v230_v19, %v230_v19  ;;  %v311_v29 = vpack.c.bf16 %v233_v28, %v233_v28 }
 0x1bf   :  { %5942 = vmatmul.mubr.bf16.vlgmr.msra.gmra.mrb[24].mxu1 %v304_v31  ;;  %v310_v31 = vpack.c.bf16 %v232_v30, %v232_v30 }
 0x1c0   :  { %8495 = vmatpush3.bf16.msra.mxu1 %v9412_v34  ;;  %v9451_v34 = vld [vmem:[#allocation2 + $0x880] sm:$0xff]  }
 0x1c1   :  { %8485 = vmatpush3.bf16.msra.mxu0 %v9410_v32  ;;  %8496 = vmatprep.subr.bf16.mxu1 %v9415_v37  ;;  %v9449_v32 = vld [vmem:[#allocation2 + $0x8c0] sm:$0xff]   ;;  %v9454_v37 = vld [vmem:[#allocation2 + $0x858] sm:$0xff]  }
 0x1c2   :  { %8486 = vmatprep.subr.bf16.mxu0 %v9413_v35  ;;  %v9452_v35 = vld [vmem:[#allocation2 + $0x810] sm:$0xff]  }
 0x1c4   :  { %8497 = vmatpush3.bf16.msra.mxu1 %v9416_v38  ;;  %v9455_v38 = vld [vmem:[#allocation2 + $0x888] sm:$0xff]  }
 0x1c5   :  { %8487 = vmatpush3.bf16.msra.mxu0 %v9414_v36  ;;  %8498 = vmatprep.subr.bf16.mxu1 %v9418_v44  ;;  %v9453_v36 = vld [vmem:[#allocation2 + $0x8c8] sm:$0xff]  }
 0x1c6   :  { %8516 = vmatprep.subr.bf16.mxu0 %v9417_v43 }
 0x1c8   :  { %5982 = vmatmul.mubr.bf16.vlgmr.msra.gmra.mrb[28].mxu0 %v306_v42  ;;  %8499 = vmatpush3.bf16.msra.mxu1 %v9420_v46  ;;  %v9457_v42 = vld [vmem:[#allocation2 + $0x8d0] sm:$0xff]  }
 0x1c9   :  { %8517 = vmatpush3.bf16.msra.mxu0 %v9419_v45  ;;  %8500 = vmatprep.subr.bf16.mxu1 %v9422_v48  ;;  %v9458_v45 = vld [vmem:[#allocation2 + $0x860] sm:$0xff]  }
 0x1ca   :  { %8518 = vmatprep.subr.bf16.mxu0 %v9421_v47  ;;  %6061 = vmatprep.mubr.bf16.mxu0 %v311_v29  ;;  %v9459_v47 = vld [vmem:[#allocation2 + $0x890] sm:$0xff]   ;;  %v9488_v29 = vld [vmem:[#allocation2 + $0x918] sm:$0xff]  }
 0x1cc   :  { %8501 = vmatpush3.bf16.msra.mxu1 %v9424_v50  ;;  %v9461_v50 = vld [vmem:[#allocation2 + $0x8d8] sm:$0xff]  }
 0x1cd   :  { %8519 = vmatpush3.bf16.msra.mxu0 %v9423_v49  ;;  %8502 = vmatprep.subr.bf16.mxu1 %v9426_v54  ;;  %v9460_v49 = vld [vmem:[#allocation2 + $0x820] sm:$0xff]  }
 0x1ce   :  { %8520 = vmatprep.subr.bf16.mxu0 %v9425_v52 }
 0x1d0   :  { %8503 = vmatpush3.bf16.msra.mxu1 %v9428_v59 }
 0x1d1   :  { %8521 = vmatpush3.bf16.msra.mxu0 %v9427_v57  ;;  %8504 = vmatprep.subr.bf16.mxu1 %v9430_v62  ;;  %v9467_v62 = vld [vmem:[#allocation2 + $0x8a0] sm:$0xff]  }
 0x1d2   :  { %v8202_v51 = vpop.f32.mrb[0].mxu1  ;;  %8522 = vmatprep.subr.bf16.mxu0 %v9429_v61 }
 0x1d3   :  { %v8203_v53 = vpop.f32.mrb[1].mxu1 }
 0x1d4   :  { %v8204_v55 = vadd.f32 %v8203_v53, %v8202_v51  ;;  %v8205_v56 = vpop.f32.mrb[2].mxu1  ;;  %8505 = vmatpush3.bf16.msra.mxu1 %v9432_v2  ;;  %v9462_v51 = vld [vmem:[#allocation2 + $0x868] sm:$0xff]   ;;  %v9463_v53 = vld [vmem:[#allocation2 + $0x898] sm:$0xff]  }
 0x1d5   :  { %v8206_v58 = vpop.f32.mrb[3].mxu1  ;;  %8523 = vmatpush3.bf16.msra.mxu0 %v9431_v63  ;;  %8506 = vmatprep.subr.bf16.mxu1 %v9434_v7  ;;  %v9468_v63 = vld [vmem:[#allocation2 + $0x830] sm:$0xff]   ;;  %v9470_v2 = vld [vmem:[#allocation2 + $0x878] sm:$0xff]  }
 0x1d6   :  { %v5464_v60 = vadd.f32 %v8204_v55, %v10460_v17  ;;  %8524 = vmatprep.subr.bf16.mxu0 %v9433_v4  ;;  %v309_v17 = vpack.c.bf16 %v231_v16, %v231_v16  ;;  %v9464_v55 = vld [vmem:[#allocation2 + $0x828] sm:$0xff]   ;;  %v9465_v58 = vld [vmem:[#allocation2 + $0x8e0] sm:$0xff]   ;;  %v9472_v4 = vld [vmem:[#allocation2 + $0x838] sm:$0xff]  }
 0x1d7   :  { %v9473_v7 = vld [vmem:[#allocation2 + $0x8f0] sm:$0xff]   ;;  %v9480_v16 = vld [vmem:[#allocation2 + $0x908] sm:$0xff]  }
 0x1d8   :  { %8507 = vmatpush3.bf16.msra.mxu1 %v9436_v11  ;;  %6021 = vmatprep.mubr.bf16.mxu1 %v309_v17  ;;  %v9475_v11 = vld [vmem:[#allocation2 + $0x940] sm:$0xff]   ;;  %v237_v17 = vld [vmem:[%s10726_s0 + $0x118] sm:$0xff] }
 0x1d9   :  { %8525 = vmatpush3.bf16.msra.mxu0 %v9435_v9  ;;  %8508 = vmatprep.subr.bf16.mxu1 %v9438_v13  ;;  %v9477_v13 = vld [vmem:[#allocation2 + $0x8f8] sm:$0xff]   ;;  %v315_v19 = vpack.c.bf16 %v237_v17, %v237_v17 }
 0x1da   :  { %8526 = vmatprep.subr.bf16.mxu0 %v9437_v12  ;;  %v9476_v12 = vld [vmem:[#allocation2 + $0x900] sm:$0xff]  }
 0x1db   :  { %v8224_v0 = vpop.f32.mrb[4].mxu0 }
 0x1dc   :  { %v8225_v3 = vpop.f32.mrb[5].mxu0  ;;  %8509 = vmatpush3.bf16.msra.mxu1 %v9440_v15  ;;  %v9479_v15 = vld [vmem:[#allocation2 + $0x948] sm:$0xff]  }
 0x1dd   :  { %v8226_v5 = vadd.f32 %v8225_v3, %v8224_v0  ;;  %v8227_v6 = vpop.f32.mrb[6].mxu0  ;;  %8527 = vmatpush3.bf16.msra.mxu0 %v9439_v14  ;;  %8538 = vmatprep.subr.bf16.mxu1 %v9443_v22  ;;  %v9469_v0 = vld [vmem:[#allocation2 + $0x8e8] sm:$0xff]   ;;  %v9478_v14 = vld [vmem:[#allocation2 + $0x8b8] sm:$0xff]   ;;  %v9482_v22 = vld [vmem:[#allocation2 + $0x950] sm:$0xff]  }
 0x1de   :  { %v8228_v8 = vpop.f32.mrb[7].mxu0  ;;  %8528 = vmatprep.subr.bf16.mxu0 %v9441_v18  ;;  %v9471_v3 = vld [vmem:[#allocation2 + $0x8a8] sm:$0xff]   ;;  %v236_v18 = vld [vmem:[%s10726_s0 + $0x110] sm:$0xff] }
 0x1df   :  { %v10475_v10 = vadd.f32 %v8226_v5, %v5464_v60  ;;  %6022 = vmatmul.mubr.bf16.vlgmr.msra.gmra.mrb[28].mxu1 %v308_v20  ;;  %v9466_v60 = vld [vmem:[#allocation2 + $0x870] sm:$0xff]   ;;  %v235_v5 = vld [vmem:[%s10726_s0 + $0x108] sm:$0xff]  ;;  %v234_v8 = vld [vmem:[%s10726_s0 + $0x100] sm:$0xff]  ;;  %v314_v20 = vpack.c.bf16 %v236_v18, %v236_v18 }
 0x1e0   :  { %8539 = vmatpush3.bf16.msra.mxu1 %v9444_v23  ;;  %v313_v6 = vpack.c.bf16 %v235_v5, %v235_v5  ;;  %v312_v9 = vpack.c.bf16 %v234_v8, %v234_v8  ;;  %v9483_v23 = vld [vmem:[#allocation2 + $0x980] sm:$0xff]   ;;  %v9512_v5 = vld [vmem:[#allocation2 + $0xa08] sm:$0xff]   ;;  %v9520_v18 = vld [vmem:[#allocation2 + $0xa18] sm:$0xff]  }
 0x1e1   :  { %8529 = vmatpush3.bf16.msra.mxu0 %v9442_v21  ;;  %8540 = vmatprep.subr.bf16.mxu1 %v9447_v26  ;;  %v9481_v21 = vld [vmem:[#allocation2 + $0x9c0] sm:$0xff]   ;;  %v9486_v26 = vld [vmem:[#allocation2 + $0x958] sm:$0xff]  }
 0x1e2   :  { %8530 = vmatprep.subr.bf16.mxu0 %v9445_v24  ;;  %6101 = vmatprep.mubr.bf16.mxu1 %v313_v6  ;;  %v9484_v24 = vld [vmem:[#allocation2 + $0x910] sm:$0xff]   ;;  %v241_v6 = vld [vmem:[%s10726_s0 + $0x138] sm:$0xff] }
 0x1e3   :  { %v319_v8 = vpack.c.bf16 %v241_v6, %v241_v6  ;;  %v9551_v6 = vld [vmem:[#allocation2 + $0xb88] sm:$0xff]  }
 0x1e4   :  { %8541 = vmatpush3.bf16.msra.mxu1 %v9448_v27  ;;  %v9487_v27 = vld [vmem:[#allocation2 + $0x988] sm:$0xff]  }
 0x1e5   :  { %8531 = vmatpush3.bf16.msra.mxu0 %v9446_v25  ;;  %8542 = vmatprep.subr.bf16.mxu1 %v9450_v33  ;;  %v9485_v25 = vld [vmem:[#allocation2 + $0x9c8] sm:$0xff]  }
 0x1e6   :  { %8560 = vmatprep.subr.bf16.mxu0 %v9449_v32 }
 0x1e8   :  { %6062 = vmatmul.mubr.bf16.vlgmr.msra.gmra.mrb[32].mxu0 %v310_v31  ;;  %8543 = vmatpush3.bf16.msra.mxu1 %v9452_v35  ;;  %v9489_v31 = vld [vmem:[#allocation2 + $0x9d0] sm:$0xff]  }
 0x1e9   :  { %8561 = vmatpush3.bf16.msra.mxu0 %v9451_v34  ;;  %8544 = vmatprep.subr.bf16.mxu1 %v9454_v37  ;;  %v9490_v34 = vld [vmem:[#allocation2 + $0x960] sm:$0xff]  }
 0x1ea   :  { %8562 = vmatprep.subr.bf16.mxu0 %v9453_v36  ;;  %6141 = vmatprep.mubr.bf16.mxu0 %v315_v19  ;;  %v9491_v36 = vld [vmem:[#allocation2 + $0x990] sm:$0xff]  }
 0x1ec   :  { %8545 = vmatpush3.bf16.msra.mxu1 %v9456_v40  ;;  %v9494_v40 = vld [vmem:[#allocation2 + $0x968] sm:$0xff]  }
 0x1ed   :  { %8563 = vmatpush3.bf16.msra.mxu0 %v9455_v38  ;;  %8546 = vmatprep.subr.bf16.mxu1 %v9458_v45  ;;  %v9492_v38 = vld [vmem:[#allocation2 + $0x920] sm:$0xff]  }
 0x1ee   :  { %8564 = vmatprep.subr.bf16.mxu0 %v9457_v42  ;;  %v9497_v45 = vld [vmem:[#allocation2 + $0x9e0] sm:$0xff]  }
 0x1f0   :  { %8547 = vmatpush3.bf16.msra.mxu1 %v9460_v49 }
 0x1f1   :  { %8565 = vmatpush3.bf16.msra.mxu0 %v9459_v47  ;;  %8548 = vmatprep.subr.bf16.mxu1 %v9462_v51 }
 0x1f2   :  { %v8246_v39 = vpop.f32.mrb[4].mxu1  ;;  %8566 = vmatprep.subr.bf16.mxu0 %v9461_v50  ;;  %v9499_v50 = vld [vmem:[#allocation2 + $0x9a0] sm:$0xff]  }
 0x1f3   :  { %v8247_v41 = vpop.f32.mrb[5].mxu1 }
 0x1f4   :  { %v8248_v43 = vadd.f32 %v8247_v41, %v8246_v39  ;;  %v8249_v44 = vpop.f32.mrb[6].mxu1  ;;  %8549 = vmatpush3.bf16.msra.mxu1 %v9464_v55  ;;  %v9493_v39 = vld [vmem:[#allocation2 + $0x9d8] sm:$0xff]   ;;  %v9503_v55 = vld [vmem:[#allocation2 + $0x9a8] sm:$0xff]  }
 0x1f5   :  { %v8250_v46 = vpop.f32.mrb[7].mxu1  ;;  %8567 = vmatpush3.bf16.msra.mxu0 %v9463_v53  ;;  %8550 = vmatprep.subr.bf16.mxu1 %v9466_v60  ;;  %v9495_v41 = vld [vmem:[#allocation2 + $0x998] sm:$0xff]   ;;  %v9501_v53 = vld [vmem:[#allocation2 + $0x9e8] sm:$0xff]   ;;  %v238_v60 = vld [vmem:[%s10726_s0 + $0x120] sm:$0xff] }
 0x1f6   :  { %v5544_v48 = vadd.f32 %v8248_v43, %v10475_v10  ;;  %8568 = vmatprep.subr.bf16.mxu0 %v9465_v58  ;;  %v9474_v10 = vld [vmem:[#allocation2 + $0x8b0] sm:$0xff]   ;;  %v9496_v43 = vld [vmem:[#allocation2 + $0x928] sm:$0xff]  }
 0x1f8   :  { %8551 = vmatpush3.bf16.msra.mxu1 %v9468_v63  ;;  %v9507_v63 = vld [vmem:[#allocation2 + $0xa40] sm:$0xff]  }
 0x1f9   :  { %8569 = vmatpush3.bf16.msra.mxu0 %v9467_v62  ;;  %8552 = vmatprep.subr.bf16.mxu1 %v9470_v2  ;;  %v9506_v62 = vld [vmem:[#allocation2 + $0x9b0] sm:$0xff]   ;;  %v9509_v2 = vld [vmem:[#allocation2 + $0x9f8] sm:$0xff]  }
 0x1fa   :  { %8570 = vmatprep.subr.bf16.mxu0 %v9469_v0  ;;  %v9508_v0 = vld [vmem:[#allocation2 + $0xa00] sm:$0xff]  }
 0x1fb   :  { %v8268_v52 = vpop.f32.mrb[8].mxu0 }
 0x1fc   :  { %v8269_v54 = vpop.f32.mrb[9].mxu0  ;;  %8553 = vmatpush3.bf16.msra.mxu1 %v9472_v4  ;;  %v9511_v4 = vld [vmem:[#allocation2 + $0xa48] sm:$0xff]  }
 0x1fd   :  { %v8270_v56 = vadd.f32 %v8269_v54, %v8268_v52  ;;  %v8271_v57 = vpop.f32.mrb[10].mxu0  ;;  %8571 = vmatpush3.bf16.msra.mxu0 %v9471_v3  ;;  %8582 = vmatprep.subr.bf16.mxu1 %v9475_v11  ;;  %v9500_v52 = vld [vmem:[#allocation2 + $0x930] sm:$0xff]   ;;  %v9502_v54 = vld [vmem:[#allocation2 + $0x978] sm:$0xff]  }
 0x1fe   :  { %v8272_v59 = vpop.f32.mrb[11].mxu0  ;;  %8572 = vmatprep.subr.bf16.mxu0 %v9473_v7  ;;  %v239_v57 = vld [vmem:[%s10726_s0 + $0x128] sm:$0xff]  ;;  %v9510_v3 = vld [vmem:[#allocation2 + $0x9b8] sm:$0xff]   ;;  %v240_v7 = vld [vmem:[%s10726_s0 + $0x130] sm:$0xff] }
 0x1ff   :  { %v10490_v61 = vadd.f32 %v8270_v56, %v5544_v48  ;;  %6102 = vmatmul.mubr.bf16.vlgmr.msra.gmra.mrb[32].mxu1 %v312_v9  ;;  %v9498_v48 = vld [vmem:[#allocation2 + $0x970] sm:$0xff]   ;;  %v9504_v56 = vld [vmem:[#allocation2 + $0x938] sm:$0xff]   ;;  %v317_v58 = vpack.c.bf16 %v239_v57, %v239_v57  ;;  %v318_v9 = vpack.c.bf16 %v240_v7, %v240_v7  ;;  %v9544_v57 = vld [vmem:[#allocation2 + $0xb08] sm:$0xff]  }
 0x200   :  { %8583 = vmatpush3.bf16.msra.mxu1 %v9476_v12  ;;  %v9505_v59 = vld [vmem:[#allocation2 + $0x9f0] sm:$0xff]   ;;  %v9515_v12 = vld [vmem:[#allocation2 + $0xa80] sm:$0xff]  }
 0x201   :  { %8573 = vmatpush3.bf16.msra.mxu0 %v9474_v10  ;;  %8584 = vmatprep.subr.bf16.mxu1 %v9479_v15  ;;  %v9513_v10 = vld [vmem:[#allocation2 + $0xac0] sm:$0xff]   ;;  %v9514_v11 = vld [vmem:[#allocation2 + $0xa50] sm:$0xff]   ;;  %v9518_v15 = vld [vmem:[#allocation2 + $0xa58] sm:$0xff]  }
 0x202   :  { %8574 = vmatprep.subr.bf16.mxu0 %v9477_v13  ;;  %6181 = vmatprep.mubr.bf16.mxu1 %v317_v58  ;;  %v9516_v13 = vld [vmem:[#allocation2 + $0xa10] sm:$0xff]   ;;  %v245_v58 = vld [vmem:[%s10726_s0 + $0x158] sm:$0xff] }
 0x204   :  { %8585 = vmatpush3.bf16.msra.mxu1 %v9480_v16  ;;  %v9519_v16 = vld [vmem:[#allocation2 + $0xa88] sm:$0xff]  }
 0x205   :  { %8575 = vmatpush3.bf16.msra.mxu0 %v9478_v14  ;;  %8586 = vmatprep.subr.bf16.mxu1 %v9482_v22  ;;  %v9517_v14 = vld [vmem:[#allocation2 + $0xac8] sm:$0xff]  }
 0x206   :  { %8604 = vmatprep.subr.bf16.mxu0 %v9481_v21 }
 0x208   :  { %6142 = vmatmul.mubr.bf16.vlgmr.msra.gmra.mrb[36].mxu0 %v314_v20  ;;  %8587 = vmatpush3.bf16.msra.mxu1 %v9484_v24  ;;  %v9521_v20 = vld [vmem:[#allocation2 + $0xad0] sm:$0xff]  }
 0x209   :  { %8605 = vmatpush3.bf16.msra.mxu0 %v9483_v23  ;;  %8588 = vmatprep.subr.bf16.mxu1 %v9486_v26  ;;  %v9522_v23 = vld [vmem:[#allocation2 + $0xa60] sm:$0xff]  }
 0x20a   :  { %8606 = vmatprep.subr.bf16.mxu0 %v9485_v25  ;;  %6221 = vmatprep.mubr.bf16.mxu0 %v319_v8  ;;  %v9523_v25 = vld [vmem:[#allocation2 + $0xa90] sm:$0xff]   ;;  %v9552_v8 = vld [vmem:[#allocation2 + $0xb18] sm:$0xff]  }
 0x20c   :  { %8589 = vmatpush3.bf16.msra.mxu1 %v9488_v29  ;;  %v9526_v29 = vld [vmem:[#allocation2 + $0xa68] sm:$0xff]  }
 0x20d   :  { %8607 = vmatpush3.bf16.msra.mxu0 %v9487_v27  ;;  %8590 = vmatprep.subr.bf16.mxu1 %v9490_v34  ;;  %v9524_v27 = vld [vmem:[#allocation2 + $0xa20] sm:$0xff]  }
 0x20e   :  { %8608 = vmatprep.subr.bf16.mxu0 %v9489_v31  ;;  %v9529_v34 = vld [vmem:[#allocation2 + $0xae0] sm:$0xff]  }
 0x210   :  { %8591 = vmatpush3.bf16.msra.mxu1 %v9492_v38 }
 0x211   :  { %8609 = vmatpush3.bf16.msra.mxu0 %v9491_v36  ;;  %8592 = vmatprep.subr.bf16.mxu1 %v9494_v40 }
 0x212   :  { %v8290_v28 = vpop.f32.mrb[8].mxu1  ;;  %8610 = vmatprep.subr.bf16.mxu0 %v9493_v39  ;;  %v9531_v39 = vld [vmem:[#allocation2 + $0xaa0] sm:$0xff]  }
 0x213   :  { %v8291_v30 = vpop.f32.mrb[9].mxu1 }
 0x214   :  { %v8292_v32 = vadd.f32 %v8291_v30, %v8290_v28  ;;  %v8293_v33 = vpop.f32.mrb[10].mxu1  ;;  %8593 = vmatpush3.bf16.msra.mxu1 %v9496_v43  ;;  %v9525_v28 = vld [vmem:[#allocation2 + $0xad8] sm:$0xff]  }
 0x215   :  { %v8294_v35 = vpop.f32.mrb[11].mxu1  ;;  %8611 = vmatpush3.bf16.msra.mxu0 %v9495_v41  ;;  %8594 = vmatprep.subr.bf16.mxu1 %v9498_v48  ;;  %v9527_v30 = vld [vmem:[#allocation2 + $0xa98] sm:$0xff]   ;;  %v9532_v41 = vld [vmem:[#allocation2 + $0xa30] sm:$0xff]  }
 0x216   :  { %v5624_v37 = vadd.f32 %v8292_v32, %v10490_v61  ;;  %8612 = vmatprep.subr.bf16.mxu0 %v9497_v45  ;;  %v316_v61 = vpack.c.bf16 %v238_v60, %v238_v60  ;;  %v9528_v32 = vld [vmem:[#allocation2 + $0xa28] sm:$0xff]   ;;  %v9534_v43 = vld [vmem:[#allocation2 + $0xa78] sm:$0xff]   ;;  %v9537_v48 = vld [vmem:[#allocation2 + $0xaf0] sm:$0xff]  }
 0x217   :  { %v9536_v45 = vld [vmem:[#allocation2 + $0xa38] sm:$0xff]   ;;  %v244_v60 = vld [vmem:[%s10726_s0 + $0x150] sm:$0xff] }
 0x218   :  { %8595 = vmatpush3.bf16.msra.mxu1 %v9500_v52  ;;  %v9539_v52 = vld [vmem:[#allocation2 + $0xb40] sm:$0xff]  }
 0x219   :  { %8613 = vmatpush3.bf16.msra.mxu0 %v9499_v50  ;;  %8596 = vmatprep.subr.bf16.mxu1 %v9502_v54  ;;  %v9541_v54 = vld [vmem:[#allocation2 + $0xaf8] sm:$0xff]  }
 0x21a   :  { %8614 = vmatprep.subr.bf16.mxu0 %v9501_v53  ;;  %v9540_v53 = vld [vmem:[#allocation2 + $0xb00] sm:$0xff]  }
 0x21b   :  { %v8312_v42 = vpop.f32.mrb[12].mxu0 }
 0x21c   :  { %v8313_v44 = vpop.f32.mrb[13].mxu0  ;;  %8597 = vmatpush3.bf16.msra.mxu1 %v9504_v56  ;;  %v9543_v56 = vld [vmem:[#allocation2 + $0xb48] sm:$0xff]  }
 0x21d   :  { %v8314_v46 = vadd.f32 %v8313_v44, %v8312_v42  ;;  %v8315_v47 = vpop.f32.mrb[14].mxu0  ;;  %8615 = vmatpush3.bf16.msra.mxu0 %v9503_v55  ;;  %8626 = vmatprep.subr.bf16.mxu1 %v9507_v63  ;;  %v9533_v42 = vld [vmem:[#allocation2 + $0xae8] sm:$0xff]   ;;  %v9542_v55 = vld [vmem:[#allocation2 + $0xab8] sm:$0xff]   ;;  %v9546_v63 = vld [vmem:[#allocation2 + $0xb50] sm:$0xff]  }
 0x21e   :  { %v8316_v49 = vpop.f32.mrb[15].mxu0  ;;  %8616 = vmatprep.subr.bf16.mxu0 %v9505_v59  ;;  %v9535_v44 = vld [vmem:[#allocation2 + $0xaa8] sm:$0xff]   ;;  %v323_v59 = vpack.c.bf16 %v245_v58, %v245_v58 }
 0x21f   :  { %v10505_v51 = vadd.f32 %v8314_v46, %v5624_v37  ;;  %6182 = vmatmul.mubr.bf16.vlgmr.msra.gmra.mrb[36].mxu1 %v316_v61  ;;  %v9530_v37 = vld [vmem:[#allocation2 + $0xa70] sm:$0xff]   ;;  %v243_v46 = vld [vmem:[%s10726_s0 + $0x148] sm:$0xff]  ;;  %v242_v49 = vld [vmem:[%s10726_s0 + $0x140] sm:$0xff]  ;;  %v322_v61 = vpack.c.bf16 %v244_v60, %v244_v60 }
 0x220   :  { %8627 = vmatpush3.bf16.msra.mxu1 %v9508_v0  ;;  %v321_v47 = vpack.c.bf16 %v243_v46, %v243_v46  ;;  %v320_v50 = vpack.c.bf16 %v242_v49, %v242_v49  ;;  %v9547_v0 = vld [vmem:[#allocation2 + $0xb80] sm:$0xff]   ;;  %v9576_v46 = vld [vmem:[#allocation2 + $0xc08] sm:$0xff]  }
 0x221   :  { %8617 = vmatpush3.bf16.msra.mxu0 %v9506_v62  ;;  %8628 = vmatprep.subr.bf16.mxu1 %v9511_v4  ;;  %v9545_v62 = vld [vmem:[#allocation2 + $0xbc0] sm:$0xff]   ;;  %v9550_v4 = vld [vmem:[#allocation2 + $0xb58] sm:$0xff]  }
 0x222   :  { %8618 = vmatprep.subr.bf16.mxu0 %v9509_v2  ;;  %6261 = vmatprep.mubr.bf16.mxu1 %v321_v47  ;;  %v9548_v2 = vld [vmem:[#allocation2 + $0xb10] sm:$0xff]   ;;  %v249_v47 = vld [vmem:[%s10726_s0 + $0x178] sm:$0xff] }
 0x223   :  { %v327_v49 = vpack.c.bf16 %v249_v47, %v249_v47 }
 0x224   :  { %8629 = vmatpush3.bf16.msra.mxu1 %v9512_v5 }
 0x225   :  { %8619 = vmatpush3.bf16.msra.mxu0 %v9510_v3  ;;  %8630 = vmatprep.subr.bf16.mxu1 %v9514_v11  ;;  %v9549_v3 = vld [vmem:[#allocation2 + $0xbc8] sm:$0xff]   ;;  %v9553_v11 = vld [vmem:[#allocation2 + $0xbd0] sm:$0xff]  }
 0x226   :  { %8648 = vmatprep.subr.bf16.mxu0 %v9513_v10 }
 0x228   :  { %6222 = vmatmul.mubr.bf16.vlgmr.msra.gmra.mrb[40].mxu0 %v318_v9  ;;  %8631 = vmatpush3.bf16.msra.mxu1 %v9516_v13  ;;  %v9554_v13 = vld [vmem:[#allocation2 + $0xb60] sm:$0xff]  }
 0x229   :  { %8649 = vmatpush3.bf16.msra.mxu0 %v9515_v12  ;;  %8632 = vmatprep.subr.bf16.mxu1 %v9518_v15  ;;  %v9555_v15 = vld [vmem:[#allocation2 + $0xb90] sm:$0xff]  }
 0x22a   :  { %8650 = vmatprep.subr.bf16.mxu0 %v9517_v14  ;;  %6301 = vmatprep.mubr.bf16.mxu0 %v323_v59  ;;  %v9584_v59 = vld [vmem:[#allocation2 + $0xc18] sm:$0xff]  }
 0x22c   :  { %8633 = vmatpush3.bf16.msra.mxu1 %v9520_v18  ;;  %v9558_v18 = vld [vmem:[#allocation2 + $0xb68] sm:$0xff]  }
 0x22d   :  { %8651 = vmatpush3.bf16.msra.mxu0 %v9519_v16  ;;  %8634 = vmatprep.subr.bf16.mxu1 %v9522_v23  ;;  %v9556_v16 = vld [vmem:[#allocation2 + $0xb20] sm:$0xff]  }
 0x22e   :  { %8652 = vmatprep.subr.bf16.mxu0 %v9521_v20  ;;  %v9559_v20 = vld [vmem:[#allocation2 + $0xb98] sm:$0xff]  }
 0x230   :  { %8635 = vmatpush3.bf16.msra.mxu1 %v9524_v27  ;;  %v9562_v27 = vld [vmem:[#allocation2 + $0xb70] sm:$0xff]  }
 0x231   :  { %8653 = vmatpush3.bf16.msra.mxu0 %v9523_v25  ;;  %8636 = vmatprep.subr.bf16.mxu1 %v9526_v29  ;;  %v9561_v25 = vld [vmem:[#allocation2 + $0xbe0] sm:$0xff]  }
 0x232   :  { %v8334_v17 = vpop.f32.mrb[12].mxu1  ;;  %8654 = vmatprep.subr.bf16.mxu0 %v9525_v28  ;;  %v9563_v29 = vld [vmem:[#allocation2 + $0xba0] sm:$0xff]  }
 0x233   :  { %v8335_v19 = vpop.f32.mrb[13].mxu1 }
 0x234   :  { %v8336_v21 = vadd.f32 %v8335_v19, %v8334_v17  ;;  %v8337_v22 = vpop.f32.mrb[14].mxu1  ;;  %8637 = vmatpush3.bf16.msra.mxu1 %v9528_v32  ;;  %v9557_v17 = vld [vmem:[#allocation2 + $0xbd8] sm:$0xff]  }
 0x235   :  { %v8338_v24 = vpop.f32.mrb[15].mxu1  ;;  %8655 = vmatpush3.bf16.msra.mxu0 %v9527_v30  ;;  %8638 = vmatprep.subr.bf16.mxu1 %v9530_v37  ;;  %v9560_v22 = vld [vmem:[#allocation2 + $0xb28] sm:$0xff]   ;;  %v9564_v30 = vld [vmem:[#allocation2 + $0xb30] sm:$0xff]   ;;  %v9566_v32 = vld [vmem:[#allocation2 + $0xb78] sm:$0xff]  }
 0x236   :  { %v5704_v26 = vadd.f32 %v8336_v21, %v10505_v51  ;;  %8656 = vmatprep.subr.bf16.mxu0 %v9529_v34  ;;  %v9538_v51 = vld [vmem:[#allocation2 + $0xab0] sm:$0xff]   ;;  %v9568_v34 = vld [vmem:[#allocation2 + $0xb38] sm:$0xff]  }
 0x237   :  { %v9569_v37 = vld [vmem:[#allocation2 + $0xbf0] sm:$0xff]  }
 0x238   :  { %8639 = vmatpush3.bf16.msra.mxu1 %v9532_v41  ;;  %v9571_v41 = vld [vmem:[#allocation2 + $0xc40] sm:$0xff]  }
 0x239   :  { %8657 = vmatpush3.bf16.msra.mxu0 %v9531_v39  ;;  %8640 = vmatprep.subr.bf16.mxu1 %v9534_v43  ;;  %v9573_v43 = vld [vmem:[#allocation2 + $0xbf8] sm:$0xff]  }
 0x23a   :  { %8658 = vmatprep.subr.bf16.mxu0 %v9533_v42  ;;  %v9572_v42 = vld [vmem:[#allocation2 + $0xc00] sm:$0xff]  }
 0x23b   :  { %v8356_v31 = vpop.f32.mrb[16].mxu0 }
 0x23c   :  { %v8357_v33 = vpop.f32.mrb[17].mxu0  ;;  %8641 = vmatpush3.bf16.msra.mxu1 %v9536_v45  ;;  %v9575_v45 = vld [vmem:[#allocation2 + $0xc48] sm:$0xff]  }
 0x23d   :  { %v8358_v35 = vadd.f32 %v8357_v33, %v8356_v31  ;;  %v8359_v36 = vpop.f32.mrb[18].mxu0  ;;  %8659 = vmatpush3.bf16.msra.mxu0 %v9535_v44  ;;  %8670 = vmatprep.subr.bf16.mxu1 %v9539_v52  ;;  %v9565_v31 = vld [vmem:[#allocation2 + $0xbe8] sm:$0xff]   ;;  %v9574_v44 = vld [vmem:[#allocation2 + $0xbb8] sm:$0xff]   ;;  %v9578_v52 = vld [vmem:[#allocation2 + $0xc50] sm:$0xff]  }
 0x23e   :  { %v8360_v38 = vpop.f32.mrb[19].mxu0  ;;  %8660 = vmatprep.subr.bf16.mxu0 %v9537_v48  ;;  %v9567_v33 = vld [vmem:[#allocation2 + $0xba8] sm:$0xff]   ;;  %v248_v48 = vld [vmem:[%s10726_s0 + $0x170] sm:$0xff] }
 0x23f   :  { %v10520_v40 = vadd.f32 %v8358_v35, %v5704_v26  ;;  %6262 = vmatmul.mubr.bf16.vlgmr.msra.gmra.mrb[40].mxu1 %v320_v50  ;;  %v247_v35 = vld [vmem:[%s10726_s0 + $0x168] sm:$0xff]  ;;  %v246_v38 = vld [vmem:[%s10726_s0 + $0x160] sm:$0xff]  ;;  %v326_v50 = vpack.c.bf16 %v248_v48, %v248_v48  ;;  %v9616_v48 = vld [vmem:[#allocation2 + $0xd18] sm:$0xff]  }
 0x240   :  { %8671 = vmatpush3.bf16.msra.mxu1 %v9540_v53  ;;  %v325_v36 = vpack.c.bf16 %v247_v35, %v247_v35  ;;  %v324_v39 = vpack.c.bf16 %v246_v38, %v246_v38  ;;  %v9579_v53 = vld [vmem:[#allocation2 + $0xc80] sm:$0xff]   ;;  %v9608_v35 = vld [vmem:[#allocation2 + $0xd08] sm:$0xff]  }
 0x241   :  { %8661 = vmatpush3.bf16.msra.mxu0 %v9538_v51  ;;  %8672 = vmatprep.subr.bf16.mxu1 %v9543_v56  ;;  %v9577_v51 = vld [vmem:[#allocation2 + $0xcc0] sm:$0xff]   ;;  %v9582_v56 = vld [vmem:[#allocation2 + $0xc58] sm:$0xff]  }
 0x242   :  { %8662 = vmatprep.subr.bf16.mxu0 %v9541_v54  ;;  %6341 = vmatprep.mubr.bf16.mxu1 %v325_v36  ;;  %v9580_v54 = vld [vmem:[#allocation2 + $0xc10] sm:$0xff]   ;;  %v253_v36 = vld [vmem:[%s10726_s0 + $0x198] sm:$0xff] }
 0x243   :  { %v331_v38 = vpack.c.bf16 %v253_v36, %v253_v36  ;;  %v9647_v36 = vld [vmem:[#allocation2 + $0xe88] sm:$0xff]  }
 0x244   :  { %8673 = vmatpush3.bf16.msra.mxu1 %v9544_v57  ;;  %v9583_v57 = vld [vmem:[#allocation2 + $0xc88] sm:$0xff]  }
 0x245   :  { %8663 = vmatpush3.bf16.msra.mxu0 %v9542_v55  ;;  %8674 = vmatprep.subr.bf16.mxu1 %v9546_v63  ;;  %v9581_v55 = vld [vmem:[#allocation2 + $0xcc8] sm:$0xff]  }
 0x246   :  { %8692 = vmatprep.subr.bf16.mxu0 %v9545_v62 }
 0x248   :  { %6302 = vmatmul.mubr.bf16.vlgmr.msra.gmra.mrb[44].mxu0 %v322_v61  ;;  %8675 = vmatpush3.bf16.msra.mxu1 %v9548_v2  ;;  %v9585_v61 = vld [vmem:[#allocation2 + $0xcd0] sm:$0xff]  }
 0x249   :  { %8693 = vmatpush3.bf16.msra.mxu0 %v9547_v0  ;;  %8676 = vmatprep.subr.bf16.mxu1 %v9550_v4  ;;  %v9586_v0 = vld [vmem:[#allocation2 + $0xc60] sm:$0xff]  }
 0x24a   :  { %8694 = vmatprep.subr.bf16.mxu0 %v9549_v3  ;;  %6381 = vmatprep.mubr.bf16.mxu0 %v327_v49  ;;  %v9587_v3 = vld [vmem:[#allocation2 + $0xc90] sm:$0xff]  }
 0x24c   :  { %8677 = vmatpush3.bf16.msra.mxu1 %v9552_v8  ;;  %v9591_v8 = vld [vmem:[#allocation2 + $0xc98] sm:$0xff]  }
 0x24d   :  { %8695 = vmatpush3.bf16.msra.mxu0 %v9551_v6  ;;  %8678 = vmatprep.subr.bf16.mxu1 %v9554_v13  ;;  %v9589_v6 = vld [vmem:[#allocation2 + $0xcd8] sm:$0xff]  }
 0x24e   :  { %8696 = vmatprep.subr.bf16.mxu0 %v9553_v11 }
 0x250   :  { %8679 = vmatpush3.bf16.msra.mxu1 %v9556_v16 }
 0x251   :  { %8697 = vmatpush3.bf16.msra.mxu0 %v9555_v15  ;;  %8680 = vmatprep.subr.bf16.mxu1 %v9558_v18  ;;  %v9594_v15 = vld [vmem:[#allocation2 + $0xc70] sm:$0xff]  }
 0x252   :  { %v8378_v5 = vpop.f32.mrb[16].mxu1  ;;  %8698 = vmatprep.subr.bf16.mxu0 %v9557_v17  ;;  %v9595_v17 = vld [vmem:[#allocation2 + $0xca0] sm:$0xff]  }
 0x253   :  { %v8379_v7 = vpop.f32.mrb[17].mxu1 }
 0x254   :  { %v8380_v9 = vadd.f32 %v8379_v7, %v8378_v5  ;;  %v8381_v10 = vpop.f32.mrb[18].mxu1  ;;  %8681 = vmatpush3.bf16.msra.mxu1 %v9560_v22  ;;  %v9588_v5 = vld [vmem:[#allocation2 + $0xc20] sm:$0xff]   ;;  %v9590_v7 = vld [vmem:[#allocation2 + $0xc68] sm:$0xff]  }
 0x255   :  { %v8382_v12 = vpop.f32.mrb[19].mxu1  ;;  %8699 = vmatpush3.bf16.msra.mxu0 %v9559_v20  ;;  %8682 = vmatprep.subr.bf16.mxu1 %v9562_v27  ;;  %v9592_v10 = vld [vmem:[#allocation2 + $0xc28] sm:$0xff]   ;;  %v250_v27 = vld [vmem:[%s10726_s0 + $0x180] sm:$0xff] }
 0x256   :  { %v5784_v14 = vadd.f32 %v8380_v9, %v10520_v40  ;;  %8700 = vmatprep.subr.bf16.mxu0 %v9561_v25  ;;  %v9570_v40 = vld [vmem:[#allocation2 + $0xbb0] sm:$0xff]   ;;  %v9593_v12 = vld [vmem:[#allocation2 + $0xce0] sm:$0xff]   ;;  %v9597_v20 = vld [vmem:[#allocation2 + $0xce8] sm:$0xff]  }
 0x257   :  { %v9599_v22 = vld [vmem:[#allocation2 + $0xca8] sm:$0xff]  }
 0x258   :  { %8683 = vmatpush3.bf16.msra.mxu1 %v9564_v30  ;;  %v9603_v30 = vld [vmem:[#allocation2 + $0xd40] sm:$0xff]  }
 0x259   :  { %8701 = vmatpush3.bf16.msra.mxu0 %v9563_v29  ;;  %8684 = vmatprep.subr.bf16.mxu1 %v9566_v32  ;;  %v9602_v29 = vld [vmem:[#allocation2 + $0xcb0] sm:$0xff]   ;;  %v9605_v32 = vld [vmem:[#allocation2 + $0xcf8] sm:$0xff]  }
 0x25a   :  { %8702 = vmatprep.subr.bf16.mxu0 %v9565_v31  ;;  %v9604_v31 = vld [vmem:[#allocation2 + $0xd00] sm:$0xff]  }
 0x25b   :  { %v8400_v19 = vpop.f32.mrb[20].mxu0 }
 0x25c   :  { %v8401_v21 = vpop.f32.mrb[21].mxu0  ;;  %8685 = vmatpush3.bf16.msra.mxu1 %v9568_v34  ;;  %v9607_v34 = vld [vmem:[#allocation2 + $0xd48] sm:$0xff]  }
 0x25d   :  { %v8402_v23 = vadd.f32 %v8401_v21, %v8400_v19  ;;  %v8403_v24 = vpop.f32.mrb[22].mxu0  ;;  %8703 = vmatpush3.bf16.msra.mxu0 %v9567_v33  ;;  %8714 = vmatprep.subr.bf16.mxu1 %v9571_v41  ;;  %v9596_v19 = vld [vmem:[#allocation2 + $0xc30] sm:$0xff]   ;;  %v9598_v21 = vld [vmem:[#allocation2 + $0xc78] sm:$0xff]  }
 0x25e   :  { %v8404_v26 = vpop.f32.mrb[23].mxu0  ;;  %8704 = vmatprep.subr.bf16.mxu0 %v9569_v37  ;;  %v251_v24 = vld [vmem:[%s10726_s0 + $0x188] sm:$0xff]  ;;  %v9606_v33 = vld [vmem:[#allocation2 + $0xcb8] sm:$0xff]   ;;  %v252_v37 = vld [vmem:[%s10726_s0 + $0x190] sm:$0xff] }
 0x25f   :  { %v10535_v28 = vadd.f32 %v8402_v23, %v5784_v14  ;;  %6342 = vmatmul.mubr.bf16.vlgmr.msra.gmra.mrb[44].mxu1 %v324_v39  ;;  %v9600_v23 = vld [vmem:[#allocation2 + $0xc38] sm:$0xff]   ;;  %v329_v25 = vpack.c.bf16 %v251_v24, %v251_v24  ;;  %v9601_v26 = vld [vmem:[#allocation2 + $0xcf0] sm:$0xff]   ;;  %v330_v39 = vpack.c.bf16 %v252_v37, %v252_v37  ;;  %v9640_v24 = vld [vmem:[#allocation2 + $0xe08] sm:$0xff]  }
 0x260   :  { %8715 = vmatpush3.bf16.msra.mxu1 %v9572_v42  ;;  %v9610_v41 = vld [vmem:[#allocation2 + $0xd50] sm:$0xff]   ;;  %v9611_v42 = vld [vmem:[#allocation2 + $0xd80] sm:$0xff]  }
 0x261   :  { %8705 = vmatpush3.bf16.msra.mxu0 %v9570_v40  ;;  %8716 = vmatprep.subr.bf16.mxu1 %v9575_v45  ;;  %v9609_v40 = vld [vmem:[#allocation2 + $0xdc0] sm:$0xff]   ;;  %v9614_v45 = vld [vmem:[#allocation2 + $0xd58] sm:$0xff]  }
 0x262   :  { %8706 = vmatprep.subr.bf16.mxu0 %v9573_v43  ;;  %6421 = vmatprep.mubr.bf16.mxu1 %v329_v25  ;;  %v9612_v43 = vld [vmem:[#allocation2 + $0xd10] sm:$0xff]   ;;  %v257_v25 = vld [vmem:[%s10726_s0 + $0x1b8] sm:$0xff] }
 0x264   :  { %8717 = vmatpush3.bf16.msra.mxu1 %v9576_v46  ;;  %v9615_v46 = vld [vmem:[#allocation2 + $0xd88] sm:$0xff]  }
 0x265   :  { %8707 = vmatpush3.bf16.msra.mxu0 %v9574_v44  ;;  %8718 = vmatprep.subr.bf16.mxu1 %v9578_v52  ;;  %v9613_v44 = vld [vmem:[#allocation2 + $0xdc8] sm:$0xff]  }
 0x266   :  { %8736 = vmatprep.subr.bf16.mxu0 %v9577_v51 }
 0x268   :  { %6382 = vmatmul.mubr.bf16.vlgmr.msra.gmra.mrb[48].mxu0 %v326_v50  ;;  %8719 = vmatpush3.bf16.msra.mxu1 %v9580_v54  ;;  %v9617_v50 = vld [vmem:[#allocation2 + $0xdd0] sm:$0xff]  }
 0x269   :  { %8737 = vmatpush3.bf16.msra.mxu0 %v9579_v53  ;;  %8720 = vmatprep.subr.bf16.mxu1 %v9582_v56  ;;  %v9618_v53 = vld [vmem:[#allocation2 + $0xd60] sm:$0xff]  }
 0x26a   :  { %8738 = vmatprep.subr.bf16.mxu0 %v9581_v55  ;;  %6461 = vmatprep.mubr.bf16.mxu0 %v331_v38  ;;  %v9619_v55 = vld [vmem:[#allocation2 + $0xd90] sm:$0xff]   ;;  %v9648_v38 = vld [vmem:[#allocation2 + $0xe18] sm:$0xff]  }
 0x26c   :  { %8721 = vmatpush3.bf16.msra.mxu1 %v9584_v59  ;;  %v9622_v59 = vld [vmem:[#allocation2 + $0xd68] sm:$0xff]  }
 0x26d   :  { %8739 = vmatpush3.bf16.msra.mxu0 %v9583_v57  ;;  %8722 = vmatprep.subr.bf16.mxu1 %v9586_v0  ;;  %v9620_v57 = vld [vmem:[#allocation2 + $0xd20] sm:$0xff]  }
 0x26e   :  { %8740 = vmatprep.subr.bf16.mxu0 %v9585_v61  ;;  %v9625_v0 = vld [vmem:[#allocation2 + $0xde0] sm:$0xff]  }
 0x270   :  { %8723 = vmatpush3.bf16.msra.mxu1 %v9588_v5 }
 0x271   :  { %8741 = vmatpush3.bf16.msra.mxu0 %v9587_v3  ;;  %8724 = vmatprep.subr.bf16.mxu1 %v9590_v7 }
 0x272   :  { %v8422_v58 = vpop.f32.mrb[20].mxu1  ;;  %8742 = vmatprep.subr.bf16.mxu0 %v9589_v6  ;;  %v9627_v6 = vld [vmem:[#allocation2 + $0xda0] sm:$0xff]  }
 0x273   :  { %v8423_v60 = vpop.f32.mrb[21].mxu1 }
 0x274   :  { %v8424_v62 = vadd.f32 %v8423_v60, %v8422_v58  ;;  %v8425_v63 = vpop.f32.mrb[22].mxu1  ;;  %8725 = vmatpush3.bf16.msra.mxu1 %v9592_v10  ;;  %v9621_v58 = vld [vmem:[#allocation2 + $0xdd8] sm:$0xff]  }
 0x275   :  { %v8426_v2 = vpop.f32.mrb[23].mxu1  ;;  %8743 = vmatpush3.bf16.msra.mxu0 %v9591_v8  ;;  %8726 = vmatprep.subr.bf16.mxu1 %v9594_v15  ;;  %v9623_v60 = vld [vmem:[#allocation2 + $0xd98] sm:$0xff]   ;;  %v9628_v8 = vld [vmem:[#allocation2 + $0xd30] sm:$0xff]  }
 0x276   :  { %v5864_v4 = vadd.f32 %v8424_v62, %v10535_v28  ;;  %8744 = vmatprep.subr.bf16.mxu0 %v9593_v12  ;;  %v328_v28 = vpack.c.bf16 %v250_v27, %v250_v27  ;;  %v9624_v62 = vld [vmem:[#allocation2 + $0xd28] sm:$0xff]   ;;  %v9630_v10 = vld [vmem:[#allocation2 + $0xd78] sm:$0xff]   ;;  %v9633_v15 = vld [vmem:[#allocation2 + $0xdf0] sm:$0xff]  }
 0x277   :  { %v9632_v12 = vld [vmem:[#allocation2 + $0xd38] sm:$0xff]   ;;  %v256_v27 = vld [vmem:[%s10726_s0 + $0x1b0] sm:$0xff] }
 0x278   :  { %8727 = vmatpush3.bf16.msra.mxu1 %v9596_v19  ;;  %v9635_v19 = vld [vmem:[#allocation2 + $0xe40] sm:$0xff]  }
 0x279   :  { %8745 = vmatpush3.bf16.msra.mxu0 %v9595_v17  ;;  %8728 = vmatprep.subr.bf16.mxu1 %v9598_v21  ;;  %v9637_v21 = vld [vmem:[#allocation2 + $0xdf8] sm:$0xff]  }
 0x27a   :  { %8746 = vmatprep.subr.bf16.mxu0 %v9597_v20  ;;  %v9636_v20 = vld [vmem:[#allocation2 + $0xe00] sm:$0xff]  }
 0x27b   :  { %v8444_v9 = vpop.f32.mrb[24].mxu0 }
 0x27c   :  { %v8445_v11 = vpop.f32.mrb[25].mxu0  ;;  %8729 = vmatpush3.bf16.msra.mxu1 %v9600_v23  ;;  %v9639_v23 = vld [vmem:[#allocation2 + $0xe48] sm:$0xff]  }
 0x27d   :  { %v8446_v13 = vadd.f32 %v8445_v11, %v8444_v9  ;;  %v8447_v14 = vpop.f32.mrb[26].mxu0  ;;  %8747 = vmatpush3.bf16.msra.mxu0 %v9599_v22  ;;  %8758 = vmatprep.subr.bf16.mxu1 %v9603_v30  ;;  %v9629_v9 = vld [vmem:[#allocation2 + $0xde8] sm:$0xff]   ;;  %v9638_v22 = vld [vmem:[#allocation2 + $0xdb8] sm:$0xff]   ;;  %v9642_v30 = vld [vmem:[#allocation2 + $0xe50] sm:$0xff]  }
 0x27e   :  { %v8448_v16 = vpop.f32.mrb[27].mxu0  ;;  %8748 = vmatprep.subr.bf16.mxu0 %v9601_v26  ;;  %v9631_v11 = vld [vmem:[#allocation2 + $0xda8] sm:$0xff]   ;;  %v335_v26 = vpack.c.bf16 %v257_v25, %v257_v25 }
 0x27f   :  { %v10550_v18 = vadd.f32 %v8446_v13, %v5864_v4  ;;  %6422 = vmatmul.mubr.bf16.vlgmr.msra.gmra.mrb[48].mxu1 %v328_v28  ;;  %v9626_v4 = vld [vmem:[#allocation2 + $0xd70] sm:$0xff]   ;;  %v255_v13 = vld [vmem:[%s10726_s0 + $0x1a8] sm:$0xff]  ;;  %v254_v16 = vld [vmem:[%s10726_s0 + $0x1a0] sm:$0xff]  ;;  %v334_v28 = vpack.c.bf16 %v256_v27, %v256_v27 }
 0x280   :  { %8759 = vmatpush3.bf16.msra.mxu1 %v9604_v31  ;;  %v333_v14 = vpack.c.bf16 %v255_v13, %v255_v13  ;;  %v332_v17 = vpack.c.bf16 %v254_v16, %v254_v16  ;;  %v9643_v31 = vld [vmem:[#allocation2 + $0xe80] sm:$0xff]   ;;  %v9672_v13 = vld [vmem:[#allocation2 + $0xf08] sm:$0xff]  }
 0x281   :  { %8749 = vmatpush3.bf16.msra.mxu0 %v9602_v29  ;;  %8760 = vmatprep.subr.bf16.mxu1 %v9607_v34  ;;  %v9641_v29 = vld [vmem:[#allocation2 + $0xec0] sm:$0xff]   ;;  %v9646_v34 = vld [vmem:[#allocation2 + $0xe58] sm:$0xff]  }
 0x282   :  { %8750 = vmatprep.subr.bf16.mxu0 %v9605_v32  ;;  %6501 = vmatprep.mubr.bf16.mxu1 %v333_v14  ;;  %v9644_v32 = vld [vmem:[#allocation2 + $0xe10] sm:$0xff]   ;;  %v261_v14 = vld [vmem:[%s10726_s0 + $0x1d8] sm:$0xff] }
 0x283   :  { %v339_v16 = vpack.c.bf16 %v261_v14, %v261_v14 }
 0x284   :  { %8761 = vmatpush3.bf16.msra.mxu1 %v9608_v35 }
 0x285   :  { %8751 = vmatpush3.bf16.msra.mxu0 %v9606_v33  ;;  %8762 = vmatprep.subr.bf16.mxu1 %v9610_v41  ;;  %v9645_v33 = vld [vmem:[#allocation2 + $0xec8] sm:$0xff]   ;;  %v9649_v41 = vld [vmem:[#allocation2 + $0xed0] sm:$0xff]  }
 0x286   :  { %8780 = vmatprep.subr.bf16.mxu0 %v9609_v40 }
 0x288   :  { %6462 = vmatmul.mubr.bf16.vlgmr.msra.gmra.mrb[52].mxu0 %v330_v39  ;;  %8763 = vmatpush3.bf16.msra.mxu1 %v9612_v43  ;;  %v9650_v43 = vld [vmem:[#allocation2 + $0xe60] sm:$0xff]  }
 0x289   :  { %8781 = vmatpush3.bf16.msra.mxu0 %v9611_v42  ;;  %8764 = vmatprep.subr.bf16.mxu1 %v9614_v45  ;;  %v9651_v45 = vld [vmem:[#allocation2 + $0xe90] sm:$0xff]  }
 0x28a   :  { %8782 = vmatprep.subr.bf16.mxu0 %v9613_v44  ;;  %6541 = vmatprep.mubr.bf16.mxu0 %v335_v26  ;;  %v9680_v26 = vld [vmem:[#allocation2 + $0xf18] sm:$0xff]  }
 0x28c   :  { %8765 = vmatpush3.bf16.msra.mxu1 %v9616_v48  ;;  %v9654_v48 = vld [vmem:[#allocation2 + $0xe68] sm:$0xff]  }
 0x28d   :  { %8783 = vmatpush3.bf16.msra.mxu0 %v9615_v46  ;;  %8766 = vmatprep.subr.bf16.mxu1 %v9618_v53  ;;  %v9652_v46 = vld [vmem:[#allocation2 + $0xe20] sm:$0xff]  }
 0x28e   :  { %8784 = vmatprep.subr.bf16.mxu0 %v9617_v50  ;;  %v9655_v50 = vld [vmem:[#allocation2 + $0xe98] sm:$0xff]  }
 0x290   :  { %8767 = vmatpush3.bf16.msra.mxu1 %v9620_v57  ;;  %v9658_v57 = vld [vmem:[#allocation2 + $0xe70] sm:$0xff]  }
 0x291   :  { %8785 = vmatpush3.bf16.msra.mxu0 %v9619_v55  ;;  %8768 = vmatprep.subr.bf16.mxu1 %v9622_v59  ;;  %v9657_v55 = vld [vmem:[#allocation2 + $0xee0] sm:$0xff]  }
 0x292   :  { %v8466_v47 = vpop.f32.mrb[24].mxu1  ;;  %8786 = vmatprep.subr.bf16.mxu0 %v9621_v58  ;;  %v9659_v59 = vld [vmem:[#allocation2 + $0xea0] sm:$0xff]  }
 0x293   :  { %v8467_v49 = vpop.f32.mrb[25].mxu1 }
 0x294   :  { %v8468_v51 = vadd.f32 %v8467_v49, %v8466_v47  ;;  %v8469_v52 = vpop.f32.mrb[26].mxu1  ;;  %8769 = vmatpush3.bf16.msra.mxu1 %v9624_v62  ;;  %v9653_v47 = vld [vmem:[#allocation2 + $0xed8] sm:$0xff]  }
 0x295   :  { %v8470_v54 = vpop.f32.mrb[27].mxu1  ;;  %8787 = vmatpush3.bf16.msra.mxu0 %v9623_v60  ;;  %8770 = vmatprep.subr.bf16.mxu1 %v9626_v4  ;;  %v9656_v52 = vld [vmem:[#allocation2 + $0xe28] sm:$0xff]   ;;  %v9660_v60 = vld [vmem:[#allocation2 + $0xe30] sm:$0xff]   ;;  %v9662_v62 = vld [vmem:[#allocation2 + $0xe78] sm:$0xff]  }
 0x296   :  { %v5944_v56 = vadd.f32 %v8468_v51, %v10550_v18  ;;  %8788 = vmatprep.subr.bf16.mxu0 %v9625_v0  ;;  %v9634_v18 = vld [vmem:[#allocation2 + $0xdb0] sm:$0xff]   ;;  %v9664_v0 = vld [vmem:[#allocation2 + $0xe38] sm:$0xff]  }
 0x297   :  { %v9665_v4 = vld [vmem:[#allocation2 + $0xef0] sm:$0xff]  }
 0x298   :  { %8771 = vmatpush3.bf16.msra.mxu1 %v9628_v8  ;;  %v9667_v8 = vld [vmem:[#allocation2 + $0xf40] sm:$0xff]  }
 0x299   :  { %8789 = vmatpush3.bf16.msra.mxu0 %v9627_v6  ;;  %8772 = vmatprep.subr.bf16.mxu1 %v9630_v10  ;;  %v9669_v10 = vld [vmem:[#allocation2 + $0xef8] sm:$0xff]  }
 0x29a   :  { %8790 = vmatprep.subr.bf16.mxu0 %v9629_v9  ;;  %v9668_v9 = vld [vmem:[#allocation2 + $0xf00] sm:$0xff]  }
 0x29b   :  { %v8488_v61 = vpop.f32.mrb[28].mxu0 }
 0x29c   :  { %v8489_v63 = vpop.f32.mrb[29].mxu0  ;;  %8773 = vmatpush3.bf16.msra.mxu1 %v9632_v12  ;;  %v9671_v12 = vld [vmem:[#allocation2 + $0xf48] sm:$0xff]  }
 0x29d   :  { %v8490_v2 = vadd.f32 %v8489_v63, %v8488_v61  ;;  %v8491_v3 = vpop.f32.mrb[30].mxu0  ;;  %8791 = vmatpush3.bf16.msra.mxu0 %v9631_v11  ;;  %8802 = vmatprep.subr.bf16.mxu1 %v9635_v19  ;;  %v9661_v61 = vld [vmem:[#allocation2 + $0xee8] sm:$0xff]   ;;  %v9670_v11 = vld [vmem:[#allocation2 + $0xeb8] sm:$0xff]   ;;  %v9674_v19 = vld [vmem:[#allocation2 + $0xf50] sm:$0xff]  }
 0x29e   :  { %v8492_v5 = vpop.f32.mrb[31].mxu0  ;;  %8792 = vmatprep.subr.bf16.mxu0 %v9633_v15  ;;  %v9663_v63 = vld [vmem:[#allocation2 + $0xea8] sm:$0xff]   ;;  %v260_v15 = vld [vmem:[%s10726_s0 + $0x1d0] sm:$0xff] }
 0x29f   :  { %v10565_v7 = vadd.f32 %v8490_v2, %v5944_v56  ;;  %6502 = vmatmul.mubr.bf16.vlgmr.msra.gmra.mrb[52].mxu1 %v332_v17  ;;  %v259_v2 = vld [vmem:[%s10726_s0 + $0x1c8] sm:$0xff]  ;;  %v258_v5 = vld [vmem:[%s10726_s0 + $0x1c0] sm:$0xff]  ;;  %v338_v17 = vpack.c.bf16 %v260_v15, %v260_v15  ;;  %v9712_v15 = vld [vmem:[#allocation2 + $0x1018] sm:$0xff]  }
 0x2a0   :  { %8803 = vmatpush3.bf16.msra.mxu1 %v9636_v20  ;;  %v337_v3 = vpack.c.bf16 %v259_v2, %v259_v2  ;;  %v336_v6 = vpack.c.bf16 %v258_v5, %v258_v5  ;;  %v9675_v20 = vld [vmem:[#allocation2 + $0xf80] sm:$0xff]   ;;  %v9704_v2 = vld [vmem:[#allocation2 + $0x1008] sm:$0xff]  }
 0x2a1   :  { %8793 = vmatpush3.bf16.msra.mxu0 %v9634_v18  ;;  %8804 = vmatprep.subr.bf16.mxu1 %v9639_v23  ;;  %v9673_v18 = vld [vmem:[#allocation2 + $0xfc0] sm:$0xff]   ;;  %v9678_v23 = vld [vmem:[#allocation2 + $0xf58] sm:$0xff]  }
 0x2a2   :  { %8794 = vmatprep.subr.bf16.mxu0 %v9637_v21  ;;  %6581 = vmatprep.mubr.bf16.mxu1 %v337_v3  ;;  %v9676_v21 = vld [vmem:[#allocation2 + $0xf10] sm:$0xff]   ;;  %v265_v3 = vld [vmem:[%s10726_s0 + $0x1f8] sm:$0xff] }
 0x2a3   :  { %v343_v5 = vpack.c.bf16 %v265_v3, %v265_v3  ;;  %v9743_v3 = vld [vmem:[#allocation2 + $0x1188] sm:$0xff]  }
 0x2a4   :  { %8805 = vmatpush3.bf16.msra.mxu1 %v9640_v24  ;;  %v9679_v24 = vld [vmem:[#allocation2 + $0xf88] sm:$0xff]  }
 0x2a5   :  { %8795 = vmatpush3.bf16.msra.mxu0 %v9638_v22  ;;  %8806 = vmatprep.subr.bf16.mxu1 %v9642_v30  ;;  %v9677_v22 = vld [vmem:[#allocation2 + $0xfc8] sm:$0xff]  }
 0x2a6   :  { %8824 = vmatprep.subr.bf16.mxu0 %v9641_v29 }
 0x2a8   :  { %6542 = vmatmul.mubr.bf16.vlgmr.msra.gmra.mrb[56].mxu0 %v334_v28  ;;  %8807 = vmatpush3.bf16.msra.mxu1 %v9644_v32  ;;  %v9681_v28 = vld [vmem:[#allocation2 + $0xfd0] sm:$0xff]  }
 0x2a9   :  { %8825 = vmatpush3.bf16.msra.mxu0 %v9643_v31  ;;  %8808 = vmatprep.subr.bf16.mxu1 %v9646_v34  ;;  %v9682_v31 = vld [vmem:[#allocation2 + $0xf60] sm:$0xff]  }
 0x2aa   :  { %8826 = vmatprep.subr.bf16.mxu0 %v9645_v33  ;;  %6621 = vmatprep.mubr.bf16.mxu0 %v339_v16  ;;  %v9683_v33 = vld [vmem:[#allocation2 + $0xf90] sm:$0xff]  }
 0x2ac   :  { %8809 = vmatpush3.bf16.msra.mxu1 %v9648_v38  ;;  %v9687_v38 = vld [vmem:[#allocation2 + $0xf98] sm:$0xff]  }
 0x2ad   :  { %8827 = vmatpush3.bf16.msra.mxu0 %v9647_v36  ;;  %8810 = vmatprep.subr.bf16.mxu1 %v9650_v43  ;;  %v9685_v36 = vld [vmem:[#allocation2 + $0xfd8] sm:$0xff]  }
 0x2ae   :  { %8828 = vmatprep.subr.bf16.mxu0 %v9649_v41 }
 0x2b0   :  { %8811 = vmatpush3.bf16.msra.mxu1 %v9652_v46 }
 0x2b1   :  { %8829 = vmatpush3.bf16.msra.mxu0 %v9651_v45  ;;  %8812 = vmatprep.subr.bf16.mxu1 %v9654_v48  ;;  %v9690_v45 = vld [vmem:[#allocation2 + $0xf70] sm:$0xff]  }
 0x2b2   :  { %v8510_v35 = vpop.f32.mrb[28].mxu1  ;;  %8830 = vmatprep.subr.bf16.mxu0 %v9653_v47  ;;  %v9691_v47 = vld [vmem:[#allocation2 + $0xfa0] sm:$0xff]  }
 0x2b3   :  { %v8511_v37 = vpop.f32.mrb[29].mxu1 }
 0x2b4   :  { %v8512_v39 = vadd.f32 %v8511_v37, %v8510_v35  ;;  %v8513_v40 = vpop.f32.mrb[30].mxu1  ;;  %8813 = vmatpush3.bf16.msra.mxu1 %v9656_v52  ;;  %v9684_v35 = vld [vmem:[#allocation2 + $0xf20] sm:$0xff]   ;;  %v9686_v37 = vld [vmem:[#allocation2 + $0xf68] sm:$0xff]  }
 0x2b5   :  { %v8514_v42 = vpop.f32.mrb[31].mxu1  ;;  %8831 = vmatpush3.bf16.msra.mxu0 %v9655_v50  ;;  %8814 = vmatprep.subr.bf16.mxu1 %v9658_v57  ;;  %v9688_v40 = vld [vmem:[#allocation2 + $0xf28] sm:$0xff]   ;;  %v262_v57 = vld [vmem:[%s10726_s0 + $0x1e0] sm:$0xff] }
 0x2b6   :  { %v6024_v44 = vadd.f32 %v8512_v39, %v10565_v7  ;;  %8832 = vmatprep.subr.bf16.mxu0 %v9657_v55  ;;  %v9666_v7 = vld [vmem:[#allocation2 + $0xeb0] sm:$0xff]   ;;  %v9689_v42 = vld [vmem:[#allocation2 + $0xfe0] sm:$0xff]   ;;  %v9693_v50 = vld [vmem:[#allocation2 + $0xfe8] sm:$0xff]  }
 0x2b7   :  { %v9695_v52 = vld [vmem:[#allocation2 + $0xfa8] sm:$0xff]  }
 0x2b8   :  { %8815 = vmatpush3.bf16.msra.mxu1 %v9660_v60  ;;  %v9699_v60 = vld [vmem:[#allocation2 + $0x1040] sm:$0xff]  }
 0x2b9   :  { %8833 = vmatpush3.bf16.msra.mxu0 %v9659_v59  ;;  %8816 = vmatprep.subr.bf16.mxu1 %v9662_v62  ;;  %v9698_v59 = vld [vmem:[#allocation2 + $0xfb0] sm:$0xff]   ;;  %v9701_v62 = vld [vmem:[#allocation2 + $0xff8] sm:$0xff]  }
 0x2ba   :  { %8834 = vmatprep.subr.bf16.mxu0 %v9661_v61  ;;  %v9700_v61 = vld [vmem:[#allocation2 + $0x1000] sm:$0xff]  }
 0x2bb   :  { %v8532_v49 = vpop.f32.mrb[32].mxu0 }
 0x2bc   :  { %v8533_v51 = vpop.f32.mrb[33].mxu0  ;;  %8817 = vmatpush3.bf16.msra.mxu1 %v9664_v0  ;;  %v9703_v0 = vld [vmem:[#allocation2 + $0x1048] sm:$0xff]  }
 0x2bd   :  { %v8534_v53 = vadd.f32 %v8533_v51, %v8532_v49  ;;  %v8535_v54 = vpop.f32.mrb[34].mxu0  ;;  %8835 = vmatpush3.bf16.msra.mxu0 %v9663_v63  ;;  %8846 = vmatprep.subr.bf16.mxu1 %v9667_v8  ;;  %v9692_v49 = vld [vmem:[#allocation2 + $0xf30] sm:$0xff]   ;;  %v9694_v51 = vld [vmem:[#allocation2 + $0xf78] sm:$0xff]  }
 0x2be   :  { %v8536_v56 = vpop.f32.mrb[35].mxu0  ;;  %8836 = vmatprep.subr.bf16.mxu0 %v9665_v4  ;;  %v263_v54 = vld [vmem:[%s10726_s0 + $0x1e8] sm:$0xff]  ;;  %v9702_v63 = vld [vmem:[#allocation2 + $0xfb8] sm:$0xff]   ;;  %v264_v4 = vld [vmem:[%s10726_s0 + $0x1f0] sm:$0xff] }
 0x2bf   :  { %v10580_v58 = vadd.f32 %v8534_v53, %v6024_v44  ;;  %6582 = vmatmul.mubr.bf16.vlgmr.msra.gmra.mrb[56].mxu1 %v336_v6  ;;  %v9696_v53 = vld [vmem:[#allocation2 + $0xf38] sm:$0xff]   ;;  %v341_v55 = vpack.c.bf16 %v263_v54, %v263_v54  ;;  %v9697_v56 = vld [vmem:[#allocation2 + $0xff0] sm:$0xff]   ;;  %v342_v6 = vpack.c.bf16 %v264_v4, %v264_v4  ;;  %v9736_v54 = vld [vmem:[#allocation2 + $0x1108] sm:$0xff]  }
 0x2c0   :  { %8847 = vmatpush3.bf16.msra.mxu1 %v9668_v9  ;;  %v9706_v8 = vld [vmem:[#allocation2 + $0x1050] sm:$0xff]   ;;  %v9707_v9 = vld [vmem:[#allocation2 + $0x1080] sm:$0xff]  }
 0x2c1   :  { %8837 = vmatpush3.bf16.msra.mxu0 %v9666_v7  ;;  %8848 = vmatprep.subr.bf16.mxu1 %v9671_v12  ;;  %v9705_v7 = vld [vmem:[#allocation2 + $0x10c0] sm:$0xff]   ;;  %v9710_v12 = vld [vmem:[#allocation2 + $0x1058] sm:$0xff]  }
 0x2c2   :  { %8838 = vmatprep.subr.bf16.mxu0 %v9669_v10  ;;  %6661 = vmatprep.mubr.bf16.mxu1 %v341_v55  ;;  %v9708_v10 = vld [vmem:[#allocation2 + $0x1010] sm:$0xff]   ;;  %v269_v55 = vld [vmem:[%s10726_s0 + $0x218] sm:$0xff] }
 0x2c4   :  { %8849 = vmatpush3.bf16.msra.mxu1 %v9672_v13  ;;  %v9711_v13 = vld [vmem:[#allocation2 + $0x1088] sm:$0xff]  }
 0x2c5   :  { %8839 = vmatpush3.bf16.msra.mxu0 %v9670_v11  ;;  %8850 = vmatprep.subr.bf16.mxu1 %v9674_v19  ;;  %v9709_v11 = vld [vmem:[#allocation2 + $0x10c8] sm:$0xff]  }
 0x2c6   :  { %8868 = vmatprep.subr.bf16.mxu0 %v9673_v18 }
 0x2c8   :  { %6622 = vmatmul.mubr.bf16.vlgmr.msra.gmra.mrb[60].mxu0 %v338_v17  ;;  %8851 = vmatpush3.bf16.msra.mxu1 %v9676_v21  ;;  %v9713_v17 = vld [vmem:[#allocation2 + $0x10d0] sm:$0xff]  }
 0x2c9   :  { %8869 = vmatpush3.bf16.msra.mxu0 %v9675_v20  ;;  %8852 = vmatprep.subr.bf16.mxu1 %v9678_v23  ;;  %v9714_v20 = vld [vmem:[#allocation2 + $0x1060] sm:$0xff]  }
 0x2ca   :  { %8870 = vmatprep.subr.bf16.mxu0 %v9677_v22  ;;  %6701 = vmatprep.mubr.bf16.mxu0 %v343_v5  ;;  %v9715_v22 = vld [vmem:[#allocation2 + $0x1090] sm:$0xff]   ;;  %v9744_v5 = vld [vmem:[#allocation2 + $0x1118] sm:$0xff]  }
 0x2cc   :  { %8853 = vmatpush3.bf16.msra.mxu1 %v9680_v26  ;;  %v9718_v26 = vld [vmem:[#allocation2 + $0x1068] sm:$0xff]  }
 0x2cd   :  { %8871 = vmatpush3.bf16.msra.mxu0 %v9679_v24  ;;  %8854 = vmatprep.subr.bf16.mxu1 %v9682_v31  ;;  %v9716_v24 = vld [vmem:[#allocation2 + $0x1020] sm:$0xff]  }
 0x2ce   :  { %8872 = vmatprep.subr.bf16.mxu0 %v9681_v28  ;;  %v9721_v31 = vld [vmem:[#allocation2 + $0x10e0] sm:$0xff]  }
 0x2d0   :  { %8855 = vmatpush3.bf16.msra.mxu1 %v9684_v35 }
 0x2d1   :  { %8873 = vmatpush3.bf16.msra.mxu0 %v9683_v33  ;;  %8856 = vmatprep.subr.bf16.mxu1 %v9686_v37 }
 0x2d2   :  { %v8554_v25 = vpop.f32.mrb[32].mxu1  ;;  %8874 = vmatprep.subr.bf16.mxu0 %v9685_v36  ;;  %v9723_v36 = vld [vmem:[#allocation2 + $0x10a0] sm:$0xff]  }
 0x2d3   :  { %v8555_v27 = vpop.f32.mrb[33].mxu1 }
 0x2d4   :  { %v8556_v29 = vadd.f32 %v8555_v27, %v8554_v25  ;;  %v8557_v30 = vpop.f32.mrb[34].mxu1  ;;  %8857 = vmatpush3.bf16.msra.mxu1 %v9688_v40  ;;  %v9717_v25 = vld [vmem:[#allocation2 + $0x10d8] sm:$0xff]  }
 0x2d5   :  { %v8558_v32 = vpop.f32.mrb[35].mxu1  ;;  %8875 = vmatpush3.bf16.msra.mxu0 %v9687_v38  ;;  %8858 = vmatprep.subr.bf16.mxu1 %v9690_v45  ;;  %v9719_v27 = vld [vmem:[#allocation2 + $0x1098] sm:$0xff]   ;;  %v9724_v38 = vld [vmem:[#allocation2 + $0x1030] sm:$0xff]  }
 0x2d6   :  { %v6104_v34 = vadd.f32 %v8556_v29, %v10580_v58  ;;  %8876 = vmatprep.subr.bf16.mxu0 %v9689_v42  ;;  %v340_v58 = vpack.c.bf16 %v262_v57, %v262_v57  ;;  %v9720_v29 = vld [vmem:[#allocation2 + $0x1028] sm:$0xff]   ;;  %v9726_v40 = vld [vmem:[#allocation2 + $0x1078] sm:$0xff]   ;;  %v9729_v45 = vld [vmem:[#allocation2 + $0x10f0] sm:$0xff]  }
 0x2d7   :  { %v9728_v42 = vld [vmem:[#allocation2 + $0x1038] sm:$0xff]   ;;  %v268_v57 = vld [vmem:[%s10726_s0 + $0x210] sm:$0xff] }
 0x2d8   :  { %8859 = vmatpush3.bf16.msra.mxu1 %v9692_v49  ;;  %v9731_v49 = vld [vmem:[#allocation2 + $0x1140] sm:$0xff]  }
 0x2d9   :  { %8877 = vmatpush3.bf16.msra.mxu0 %v9691_v47  ;;  %8860 = vmatprep.subr.bf16.mxu1 %v9694_v51  ;;  %v9733_v51 = vld [vmem:[#allocation2 + $0x10f8] sm:$0xff]  }
 0x2da   :  { %8878 = vmatprep.subr.bf16.mxu0 %v9693_v50  ;;  %v9732_v50 = vld [vmem:[#allocation2 + $0x1100] sm:$0xff]  }
 0x2db   :  { %v8576_v39 = vpop.f32.mrb[36].mxu0 }
 0x2dc   :  { %v8577_v41 = vpop.f32.mrb[37].mxu0  ;;  %8861 = vmatpush3.bf16.msra.mxu1 %v9696_v53  ;;  %v9735_v53 = vld [vmem:[#allocation2 + $0x1148] sm:$0xff]  }
 0x2dd   :  { %v8578_v43 = vadd.f32 %v8577_v41, %v8576_v39  ;;  %v8579_v44 = vpop.f32.mrb[38].mxu0  ;;  %8879 = vmatpush3.bf16.msra.mxu0 %v9695_v52  ;;  %8890 = vmatprep.subr.bf16.mxu1 %v9699_v60  ;;  %v9725_v39 = vld [vmem:[#allocation2 + $0x10e8] sm:$0xff]   ;;  %v9734_v52 = vld [vmem:[#allocation2 + $0x10b8] sm:$0xff]   ;;  %v9738_v60 = vld [vmem:[#allocation2 + $0x1150] sm:$0xff]  }
 0x2de   :  { %v8580_v46 = vpop.f32.mrb[39].mxu0  ;;  %8880 = vmatprep.subr.bf16.mxu0 %v9697_v56  ;;  %v9727_v41 = vld [vmem:[#allocation2 + $0x10a8] sm:$0xff]   ;;  %v347_v56 = vpack.c.bf16 %v269_v55, %v269_v55 }
 0x2df   :  { %v10595_v48 = vadd.f32 %v8578_v43, %v6104_v34  ;;  %6662 = vmatmul.mubr.bf16.vlgmr.msra.gmra.mrb[60].mxu1 %v340_v58  ;;  %v9722_v34 = vld [vmem:[#allocation2 + $0x1070] sm:$0xff]   ;;  %v267_v43 = vld [vmem:[%s10726_s0 + $0x208] sm:$0xff]  ;;  %v266_v46 = vld [vmem:[%s10726_s0 + $0x200] sm:$0xff]  ;;  %v346_v58 = vpack.c.bf16 %v268_v57, %v268_v57 }
 0x2e0   :  { %8891 = vmatpush3.bf16.msra.mxu1 %v9700_v61  ;;  %v345_v44 = vpack.c.bf16 %v267_v43, %v267_v43  ;;  %v344_v47 = vpack.c.bf16 %v266_v46, %v266_v46  ;;  %v9739_v61 = vld [vmem:[#allocation2 + $0x1180] sm:$0xff]   ;;  %v9768_v43 = vld [vmem:[#allocation2 + $0x1208] sm:$0xff]  }
 0x2e1   :  { %8881 = vmatpush3.bf16.msra.mxu0 %v9698_v59  ;;  %8892 = vmatprep.subr.bf16.mxu1 %v9703_v0  ;;  %v9737_v59 = vld [vmem:[#allocation2 + $0x11c0] sm:$0xff]   ;;  %v9742_v0 = vld [vmem:[#allocation2 + $0x1158] sm:$0xff]  }
 0x2e2   :  { %8882 = vmatprep.subr.bf16.mxu0 %v9701_v62  ;;  %6741 = vmatprep.mubr.bf16.mxu1 %v345_v44  ;;  %v9740_v62 = vld [vmem:[#allocation2 + $0x1110] sm:$0xff]   ;;  %v273_v44 = vld [vmem:[%s10726_s0 + $0x238] sm:$0xff] }
 0x2e3   :  { %v351_v46 = vpack.c.bf16 %v273_v44, %v273_v44 }
 0x2e4   :  { %8893 = vmatpush3.bf16.msra.mxu1 %v9704_v2 }
 0x2e5   :  { %8883 = vmatpush3.bf16.msra.mxu0 %v9702_v63  ;;  %8894 = vmatprep.subr.bf16.mxu1 %v9706_v8  ;;  %v9741_v63 = vld [vmem:[#allocation2 + $0x11c8] sm:$0xff]   ;;  %v9745_v8 = vld [vmem:[#allocation2 + $0x11d0] sm:$0xff]  }
 0x2e6   :  { %8912 = vmatprep.subr.bf16.mxu0 %v9705_v7 }
 0x2e8   :  { %6702 = vmatmul.mubr.bf16.vlgmr.msra.gmra.mrb[64].mxu0 %v342_v6  ;;  %8895 = vmatpush3.bf16.msra.mxu1 %v9708_v10  ;;  %v9746_v10 = vld [vmem:[#allocation2 + $0x1160] sm:$0xff]  }
 0x2e9   :  { %8913 = vmatpush3.bf16.msra.mxu0 %v9707_v9  ;;  %8896 = vmatprep.subr.bf16.mxu1 %v9710_v12  ;;  %v9747_v12 = vld [vmem:[#allocation2 + $0x1190] sm:$0xff]  }
 0x2ea   :  { %8914 = vmatprep.subr.bf16.mxu0 %v9709_v11  ;;  %6781 = vmatprep.mubr.bf16.mxu0 %v347_v56  ;;  %v9776_v56 = vld [vmem:[#allocation2 + $0x1218] sm:$0xff]  }
 0x2ec   :  { %8897 = vmatpush3.bf16.msra.mxu1 %v9712_v15  ;;  %v9750_v15 = vld [vmem:[#allocation2 + $0x1168] sm:$0xff]  }
 0x2ed   :  { %8915 = vmatpush3.bf16.msra.mxu0 %v9711_v13  ;;  %8898 = vmatprep.subr.bf16.mxu1 %v9714_v20  ;;  %v9748_v13 = vld [vmem:[#allocation2 + $0x1120] sm:$0xff]  }
 0x2ee   :  { %8916 = vmatprep.subr.bf16.mxu0 %v9713_v17  ;;  %v9751_v17 = vld [vmem:[#allocation2 + $0x1198] sm:$0xff]  }
 0x2f0   :  { %8899 = vmatpush3.bf16.msra.mxu1 %v9716_v24  ;;  %v9754_v24 = vld [vmem:[#allocation2 + $0x1170] sm:$0xff]  }
 0x2f1   :  { %8917 = vmatpush3.bf16.msra.mxu0 %v9715_v22  ;;  %8900 = vmatprep.subr.bf16.mxu1 %v9718_v26  ;;  %v9753_v22 = vld [vmem:[#allocation2 + $0x11e0] sm:$0xff]  }
 0x2f2   :  { %v8598_v14 = vpop.f32.mrb[36].mxu1  ;;  %8918 = vmatprep.subr.bf16.mxu0 %v9717_v25  ;;  %v9755_v26 = vld [vmem:[#allocation2 + $0x11a0] sm:$0xff]  }
 0x2f3   :  { %v8599_v16 = vpop.f32.mrb[37].mxu1 }
 0x2f4   :  { %v8600_v18 = vadd.f32 %v8599_v16, %v8598_v14  ;;  %v8601_v19 = vpop.f32.mrb[38].mxu1  ;;  %8901 = vmatpush3.bf16.msra.mxu1 %v9720_v29  ;;  %v9749_v14 = vld [vmem:[#allocation2 + $0x11d8] sm:$0xff]  }
 0x2f5   :  { %v8602_v21 = vpop.f32.mrb[39].mxu1  ;;  %8919 = vmatpush3.bf16.msra.mxu0 %v9719_v27  ;;  %8902 = vmatprep.subr.bf16.mxu1 %v9722_v34  ;;  %v9752_v19 = vld [vmem:[#allocation2 + $0x1128] sm:$0xff]   ;;  %v9756_v27 = vld [vmem:[#allocation2 + $0x1130] sm:$0xff]   ;;  %v9758_v29 = vld [vmem:[#allocation2 + $0x1178] sm:$0xff]  }
 0x2f6   :  { %v6184_v23 = vadd.f32 %v8600_v18, %v10595_v48  ;;  %8920 = vmatprep.subr.bf16.mxu0 %v9721_v31  ;;  %v9730_v48 = vld [vmem:[#allocation2 + $0x10b0] sm:$0xff]   ;;  %v9760_v31 = vld [vmem:[#allocation2 + $0x1138] sm:$0xff]  }
 0x2f7   :  { %v9761_v34 = vld [vmem:[#allocation2 + $0x11f0] sm:$0xff]  }
 0x2f8   :  { %8903 = vmatpush3.bf16.msra.mxu1 %v9724_v38  ;;  %v9763_v38 = vld [vmem:[#allocation2 + $0x1240] sm:$0xff]  }
 0x2f9   :  { %8921 = vmatpush3.bf16.msra.mxu0 %v9723_v36  ;;  %8904 = vmatprep.subr.bf16.mxu1 %v9726_v40  ;;  %v9765_v40 = vld [vmem:[#allocation2 + $0x11f8] sm:$0xff]  }
 0x2fa   :  { %8922 = vmatprep.subr.bf16.mxu0 %v9725_v39  ;;  %v9764_v39 = vld [vmem:[#allocation2 + $0x1200] sm:$0xff]  }
 0x2fb   :  { %v8620_v28 = vpop.f32.mrb[40].mxu0 }
 0x2fc   :  { %v8621_v30 = vpop.f32.mrb[41].mxu0  ;;  %8905 = vmatpush3.bf16.msra.mxu1 %v9728_v42  ;;  %v9767_v42 = vld [vmem:[#allocation2 + $0x1248] sm:$0xff]  }
 0x2fd   :  { %v8622_v32 = vadd.f32 %v8621_v30, %v8620_v28  ;;  %v8623_v33 = vpop.f32.mrb[42].mxu0  ;;  %8923 = vmatpush3.bf16.msra.mxu0 %v9727_v41  ;;  %8934 = vmatprep.subr.bf16.mxu1 %v9731_v49  ;;  %v9757_v28 = vld [vmem:[#allocation2 + $0x11e8] sm:$0xff]   ;;  %v9766_v41 = vld [vmem:[#allocation2 + $0x11b8] sm:$0xff]   ;;  %v9770_v49 = vld [vmem:[#allocation2 + $0x1250] sm:$0xff]  }
 0x2fe   :  { %v8624_v35 = vpop.f32.mrb[43].mxu0  ;;  %8924 = vmatprep.subr.bf16.mxu0 %v9729_v45  ;;  %v9759_v30 = vld [vmem:[#allocation2 + $0x11a8] sm:$0xff]   ;;  %v272_v45 = vld [vmem:[%s10726_s0 + $0x230] sm:$0xff] }
 0x2ff   :  { %v10610_v37 = vadd.f32 %v8622_v32, %v6184_v23  ;;  %6742 = vmatmul.mubr.bf16.vlgmr.msra.gmra.mrb[64].mxu1 %v344_v47  ;;  %v271_v32 = vld [vmem:[%s10726_s0 + $0x228] sm:$0xff]  ;;  %v270_v35 = vld [vmem:[%s10726_s0 + $0x220] sm:$0xff]  ;;  %v350_v47 = vpack.c.bf16 %v272_v45, %v272_v45 }
 0x300   :  { %8935 = vmatpush3.bf16.msra.mxu1 %v9732_v50  ;;  %v349_v33 = vpack.c.bf16 %v271_v32, %v271_v32  ;;  %v348_v36 = vpack.c.bf16 %v270_v35, %v270_v35  ;;  %v9771_v50 = vld [vmem:[#allocation2 + $0x1280] sm:$0xff]   ;;  %v9800_v32 = vld [vmem:[#allocation2 + $0x1308] sm:$0xff]  }
 0x301   :  { %8925 = vmatpush3.bf16.msra.mxu0 %v9730_v48  ;;  %8936 = vmatprep.subr.bf16.mxu1 %v9735_v53  ;;  %v9769_v48 = vld [vmem:[#allocation2 + $0x12c0] sm:$0xff]   ;;  %v9774_v53 = vld [vmem:[#allocation2 + $0x1258] sm:$0xff]  }
 0x302   :  { %8926 = vmatprep.subr.bf16.mxu0 %v9733_v51  ;;  %6821 = vmatprep.mubr.bf16.mxu1 %v349_v33  ;;  %v9772_v51 = vld [vmem:[#allocation2 + $0x1210] sm:$0xff]   ;;  %v277_v33 = vld [vmem:[%s10726_s0 + $0x258] sm:$0xff] }
 0x303   :  { %v355_v35 = vpack.c.bf16 %v277_v33, %v277_v33 }
 0x304   :  { %8937 = vmatpush3.bf16.msra.mxu1 %v9736_v54  ;;  %v9775_v54 = vld [vmem:[#allocation2 + $0x1288] sm:$0xff]  }
 0x305   :  { %8927 = vmatpush3.bf16.msra.mxu0 %v9734_v52  ;;  %8938 = vmatprep.subr.bf16.mxu1 %v9738_v60  ;;  %v9773_v52 = vld [vmem:[#allocation2 + $0x12c8] sm:$0xff]  }
 0x306   :  { %8956 = vmatprep.subr.bf16.mxu0 %v9737_v59 }
 0x308   :  { %6782 = vmatmul.mubr.bf16.vlgmr.msra.gmra.mrb[68].mxu0 %v346_v58  ;;  %8939 = vmatpush3.bf16.msra.mxu1 %v9740_v62  ;;  %v9777_v58 = vld [vmem:[#allocation2 + $0x12d0] sm:$0xff]  }
 0x309   :  { %8957 = vmatpush3.bf16.msra.mxu0 %v9739_v61  ;;  %8940 = vmatprep.subr.bf16.mxu1 %v9742_v0  ;;  %v9778_v61 = vld [vmem:[#allocation2 + $0x1260] sm:$0xff]  }
 0x30a   :  { %8958 = vmatprep.subr.bf16.mxu0 %v9741_v63  ;;  %6861 = vmatprep.mubr.bf16.mxu0 %v351_v46  ;;  %v9779_v63 = vld [vmem:[#allocation2 + $0x1290] sm:$0xff]   ;;  %v9806_v46 = vld [vmem:[#allocation2 + $0x1320] sm:$0xff]  }
 0x30c   :  { %8941 = vmatpush3.bf16.msra.mxu1 %v9744_v5  ;;  %v9783_v5 = vld [vmem:[#allocation2 + $0x1298] sm:$0xff]  }
 0x30d   :  { %8959 = vmatpush3.bf16.msra.mxu0 %v9743_v3  ;;  %8942 = vmatprep.subr.bf16.mxu1 %v9746_v10  ;;  %v9781_v3 = vld [vmem:[#allocation2 + $0x12d8] sm:$0xff]  }
 0x30e   :  { %8960 = vmatprep.subr.bf16.mxu0 %v9745_v8 }
 0x310   :  { %8943 = vmatpush3.bf16.msra.mxu1 %v9748_v13 }
 0x311   :  { %8961 = vmatpush3.bf16.msra.mxu0 %v9747_v12  ;;  %8944 = vmatprep.subr.bf16.mxu1 %v9750_v15  ;;  %v9786_v12 = vld [vmem:[#allocation2 + $0x1270] sm:$0xff]  }
 0x312   :  { %v8642_v2 = vpop.f32.mrb[40].mxu1  ;;  %8962 = vmatprep.subr.bf16.mxu0 %v9749_v14  ;;  %v9787_v14 = vld [vmem:[#allocation2 + $0x12a0] sm:$0xff]  }
 0x313   :  { %v8643_v4 = vpop.f32.mrb[41].mxu1 }
 0x314   :  { %v8644_v6 = vadd.f32 %v8643_v4, %v8642_v2  ;;  %v8645_v7 = vpop.f32.mrb[42].mxu1  ;;  %8945 = vmatpush3.bf16.msra.mxu1 %v9752_v19  ;;  %v9780_v2 = vld [vmem:[#allocation2 + $0x1220] sm:$0xff]   ;;  %v9782_v4 = vld [vmem:[#allocation2 + $0x1268] sm:$0xff]  }
 0x315   :  { %v8646_v9 = vpop.f32.mrb[43].mxu1  ;;  %8963 = vmatpush3.bf16.msra.mxu0 %v9751_v17  ;;  %8946 = vmatprep.subr.bf16.mxu1 %v9754_v24  ;;  %v9784_v7 = vld [vmem:[#allocation2 + $0x1228] sm:$0xff]   ;;  %v274_v24 = vld [vmem:[%s10726_s0 + $0x240] sm:$0xff] }
 0x316   :  { %v6264_v11 = vadd.f32 %v8644_v6, %v10610_v37  ;;  %8964 = vmatprep.subr.bf16.mxu0 %v9753_v22  ;;  %v9762_v37 = vld [vmem:[#allocation2 + $0x11b0] sm:$0xff]   ;;  %v9785_v9 = vld [vmem:[#allocation2 + $0x12e0] sm:$0xff]   ;;  %v9789_v17 = vld [vmem:[#allocation2 + $0x12e8] sm:$0xff]  }
 0x317   :  { %v9791_v19 = vld [vmem:[#allocation2 + $0x12a8] sm:$0xff]  }
 0x318   :  { %8947 = vmatpush3.bf16.msra.mxu1 %v9756_v27  ;;  %v9795_v27 = vld [vmem:[#allocation2 + $0x1340] sm:$0xff]  }
 0x319   :  { %8965 = vmatpush3.bf16.msra.mxu0 %v9755_v26  ;;  %8948 = vmatprep.subr.bf16.mxu1 %v9758_v29  ;;  %v9794_v26 = vld [vmem:[#allocation2 + $0x12b0] sm:$0xff]   ;;  %v9797_v29 = vld [vmem:[#allocation2 + $0x12f8] sm:$0xff]  }
 0x31a   :  { %8966 = vmatprep.subr.bf16.mxu0 %v9757_v28  ;;  %v9796_v28 = vld [vmem:[#allocation2 + $0x1300] sm:$0xff]  }
 0x31b   :  { %v8664_v16 = vpop.f32.mrb[44].mxu0 }
 0x31c   :  { %v8665_v18 = vpop.f32.mrb[45].mxu0  ;;  %8949 = vmatpush3.bf16.msra.mxu1 %v9760_v31  ;;  %v9799_v31 = vld [vmem:[#allocation2 + $0x1348] sm:$0xff]  }
 0x31d   :  { %v8666_v20 = vadd.f32 %v8665_v18, %v8664_v16  ;;  %v8667_v21 = vpop.f32.mrb[46].mxu0  ;;  %8967 = vmatpush3.bf16.msra.mxu0 %v9759_v30  ;;  %8978 = vmatprep.subr.bf16.mxu1 %v9763_v38  ;;  %v9788_v16 = vld [vmem:[#allocation2 + $0x1230] sm:$0xff]   ;;  %v9790_v18 = vld [vmem:[#allocation2 + $0x1278] sm:$0xff]  }
 0x31e   :  { %v8668_v23 = vpop.f32.mrb[47].mxu0  ;;  %8968 = vmatprep.subr.bf16.mxu0 %v9761_v34  ;;  %v275_v21 = vld [vmem:[%s10726_s0 + $0x248] sm:$0xff]  ;;  %v9798_v30 = vld [vmem:[#allocation2 + $0x12b8] sm:$0xff]   ;;  %v276_v34 = vld [vmem:[%s10726_s0 + $0x250] sm:$0xff] }
 0x31f   :  { %v10625_v25 = vadd.f32 %v8666_v20, %v6264_v11  ;;  %6822 = vmatmul.mubr.bf16.vlgmr.msra.gmra.mrb[68].mxu1 %v348_v36  ;;  %v9792_v20 = vld [vmem:[#allocation2 + $0x1238] sm:$0xff]   ;;  %v353_v22 = vpack.c.bf16 %v275_v21, %v275_v21  ;;  %v9793_v23 = vld [vmem:[#allocation2 + $0x12f0] sm:$0xff]   ;;  %v354_v36 = vpack.c.bf16 %v276_v34, %v276_v34 }
 0x320   :  { %8979 = vmatpush3.bf16.msra.mxu1 %v9764_v39  ;;  %v9802_v38 = vld [vmem:[#allocation2 + $0x1310] sm:$0xff]   ;;  %v9803_v39 = vld [vmem:[#allocation2 + $0x1358] sm:$0xff]  }
 0x321   :  { %8969 = vmatpush3.bf16.msra.mxu0 %v9762_v37  ;;  %8980 = vmatprep.subr.bf16.mxu1 %v9767_v42  ;;  %v9801_v37 = vld [vmem:[#allocation2 + $0x1350] sm:$0xff]  }
 0x322   :  { %8970 = vmatprep.subr.bf16.mxu0 %v9765_v40  ;;  %6901 = vmatprep.mubr.bf16.mxu1 %v353_v22  ;;  %v9804_v40 = vld [vmem:[#allocation2 + $0x1318] sm:$0xff]  }
 0x324   :  { %8981 = vmatpush3.bf16.msra.mxu1 %v9768_v43 }
 0x325   :  { %8971 = vmatpush3.bf16.msra.mxu0 %v9766_v41  ;;  %8982 = vmatprep.subr.bf16.mxu1 %v9770_v49  ;;  %v9805_v41 = vld [vmem:[#allocation2 + $0x1360] sm:$0xff]   ;;  %v9807_v49 = vld [vmem:[#allocation2 + $0x1368] sm:$0xff]  }
 0x326   :  { %9000 = vmatprep.subr.bf16.mxu0 %v9769_v48 }
 0x328   :  { %6862 = vmatmul.mubr.bf16.vlgmr.msra.gmra.mrb[72].mxu0 %v350_v47  ;;  %8983 = vmatpush3.bf16.msra.mxu1 %v9772_v51  ;;  %v279_v51 = vld [vmem:[%s10726_s0 + $0x268] sm:$0xff] }
 0x329   :  { %9001 = vmatpush3.bf16.msra.mxu0 %v9771_v50  ;;  %8984 = vmatprep.subr.bf16.mxu1 %v9774_v53  ;;  %v9808_v50 = vld [vmem:[#allocation2 + $0x1328] sm:$0xff]   ;;  %v9809_v53 = vld [vmem:[#allocation2 + $0x1370] sm:$0xff]  }
 0x32a   :  { %9002 = vmatprep.subr.bf16.mxu0 %v9773_v52  ;;  %6941 = vmatprep.mubr.bf16.mxu0 %v355_v35  ;;  %v357_v52 = vpack.c.bf16 %v279_v51, %v279_v51 }
 0x32c   :  { %8985 = vmatpush3.bf16.msra.mxu1 %v9776_v56  ;;  %v9810_v56 = vld [vmem:[#allocation2 + $0x1330] sm:$0xff]  }
 0x32d   :  { %9003 = vmatpush3.bf16.msra.mxu0 %v9775_v54  ;;  %8986 = vmatprep.subr.bf16.mxu1 %v9778_v61 }
 0x32e   :  { %9004 = vmatprep.subr.bf16.mxu0 %v9777_v58 }
 0x330   :  { %8987 = vmatpush3.bf16.msra.mxu1 %v9780_v2 }
 0x331   :  { %9005 = vmatpush3.bf16.msra.mxu0 %v9779_v63  ;;  %8988 = vmatprep.subr.bf16.mxu1 %v9782_v4  ;;  %v278_v63 = vld [vmem:[%s10726_s0 + $0x260] sm:$0xff] }
 0x332   :  { %v8686_v55 = vpop.f32.mrb[44].mxu1  ;;  %9006 = vmatprep.subr.bf16.mxu0 %v9781_v3 }
 0x333   :  { %v8687_v57 = vpop.f32.mrb[45].mxu1 }
 0x334   :  { %v8688_v59 = vadd.f32 %v8687_v57, %v8686_v55  ;;  %v8689_v60 = vpop.f32.mrb[46].mxu1  ;;  %8989 = vmatpush3.bf16.msra.mxu1 %v9784_v7 }
 0x335   :  { %v8690_v62 = vpop.f32.mrb[47].mxu1  ;;  %9007 = vmatpush3.bf16.msra.mxu0 %v9783_v5  ;;  %8990 = vmatprep.subr.bf16.mxu1 %v9786_v12 }
 0x336   :  { %v6344_v0 = vadd.f32 %v8688_v59, %v10625_v25  ;;  %9008 = vmatprep.subr.bf16.mxu0 %v9785_v9  ;;  %v352_v25 = vpack.c.bf16 %v274_v24, %v274_v24  ;;  %v9811_v59 = vld [vmem:[#allocation2 + $0x1378] sm:$0xff]  }
 0x337   :  { %v9812_v62 = vld [vmem:[#allocation2 + $0x1338] sm:$0xff]  }
 0x338   :  { %8991 = vmatpush3.bf16.msra.mxu1 %v9788_v16 }
 0x339   :  { %9009 = vmatpush3.bf16.msra.mxu0 %v9787_v14  ;;  %8992 = vmatprep.subr.bf16.mxu1 %v9790_v18 }
 0x33a   :  { %9010 = vmatprep.subr.bf16.mxu0 %v9789_v17 }
 0x33b   :  { %v8708_v6 = vpop.f32.mrb[48].mxu0 }
 0x33c   :  { %v8709_v8 = vpop.f32.mrb[49].mxu0  ;;  %8993 = vmatpush3.bf16.msra.mxu1 %v9792_v20 }
 0x33d   :  { %v8710_v10 = vadd.f32 %v8709_v8, %v8708_v6  ;;  %v8711_v11 = vpop.f32.mrb[50].mxu0  ;;  %9011 = vmatpush3.bf16.msra.mxu0 %v9791_v19  ;;  %9022 = vmatprep.subr.bf16.mxu1 %v9795_v27 }
 0x33e   :  { %v8712_v13 = vpop.f32.mrb[51].mxu0  ;;  %9012 = vmatprep.subr.bf16.mxu0 %v9793_v23 }
 0x33f   :  { %v6384_v15 = vadd.f32 %v8710_v10, %v6344_v0  ;;  %6902 = vmatmul.mubr.bf16.vlgmr.msra.gmra.mrb[72].mxu1 %v352_v25  ;;  %v356_v0 = vpack.c.bf16 %v278_v63, %v278_v63 }
 0x340   :  { %9023 = vmatpush3.bf16.msra.mxu1 %v9796_v28  ;;  %6981 = vmatprep.mubr.bf16.mxu1 %v357_v52 }
 0x341   :  { %9013 = vmatpush3.bf16.msra.mxu0 %v9794_v26  ;;  %9024 = vmatprep.subr.bf16.mxu1 %v9799_v31 }
 0x342   :  { %9014 = vmatprep.subr.bf16.mxu0 %v9797_v29 }
 0x344   :  { %9025 = vmatpush3.bf16.msra.mxu1 %v9800_v32 }
 0x345   :  { %9015 = vmatpush3.bf16.msra.mxu0 %v9798_v30  ;;  %9026 = vmatprep.subr.bf16.mxu1 %v9801_v37 }
 0x346   :  { %9088 = vmatprep.subr.bf16.mxu0 %v10143_v1 }
 0x348   :  { %6942 = vmatmul.mubr.bf16.vlgmr.msra.gmra.mrb[76].mxu0 %v354_v36  ;;  %9027 = vmatpush3.bf16.msra.mxu1 %v9802_v38  ;;  %v9813_v38 = vld [vmem:[#allocation7] sm:$0xff]  }
 0x349   :  { %9104 = vmatprep.mubr.msk.bf16.mxu0 %vm10142_vm0, %v10143_v1  ;;  %9028 = vmatprep.subr.bf16.mxu1 %v9803_v39  ;;  %v9814_v39 = vld [vmem:[#allocation7 + $0x8] sm:$0xff]  }
 0x34a   :  { %9089 = vmatpush3.bf16.msra.mxu0 %v9813_v38 }
 0x34b   :  { %9090 = vmatprep.subr.bf16.mxu0 %v10143_v1 }
 0x34c   :  { %9029 = vmatpush3.bf16.msra.mxu1 %v9804_v40  ;;  %v9815_v40 = vld [vmem:[#allocation7 + $0x10] sm:$0xff]  }
 0x34d   :  { %9030 = vmatprep.subr.bf16.mxu1 %v9805_v41  ;;  %v9816_v41 = vld [vmem:[#allocation7 + $0x18] sm:$0xff]  }
 0x34e   :  { %9091 = vmatpush3.bf16.msra.mxu0 %v9814_v39 }
 0x34f   :  { %9092 = vmatprep.subr.bf16.mxu0 %v10143_v1 }
 0x350   :  { %9031 = vmatpush3.bf16.msra.mxu1 %v9806_v46 }
 0x351   :  { %9032 = vmatprep.subr.bf16.mxu1 %v9807_v49 }
 0x352   :  { %v8730_v42 = vpop.f32.mrb[48].mxu1  ;;  %9093 = vmatpush3.bf16.msra.mxu0 %v9815_v40 }
 0x353   :  { %v8731_v43 = vpop.f32.mrb[49].mxu1  ;;  %9094 = vmatprep.subr.bf16.mxu0 %v10143_v1 }
 0x354   :  { %v8732_v44 = vadd.f32 %v8731_v43, %v8730_v42  ;;  %v8733_v45 = vpop.f32.mrb[50].mxu1  ;;  %9033 = vmatpush3.bf16.msra.mxu1 %v9808_v50  ;;  %v9817_v42 = vld [vmem:[#allocation7 + $0x20] sm:$0xff]   ;;  %v9819_v50 = vld [vmem:[#allocation7 + $0x30] sm:$0xff]  }
 0x355   :  { %v8734_v47 = vpop.f32.mrb[51].mxu1  ;;  %9034 = vmatprep.subr.bf16.mxu1 %v9809_v53 }
 0x356   :  { %v6424_v48 = vadd.f32 %v8732_v44, %v6384_v15  ;;  %9095 = vmatpush3.bf16.msra.mxu0 %v9816_v41 }
 0x357   :  { %9096 = vmatprep.subr.bf16.mxu0 %v10143_v1 }
 0x358   :  { %9035 = vmatpush3.bf16.msra.mxu1 %v9810_v56  ;;  %v9820_v56 = vld [vmem:[#allocation7 + $0x38] sm:$0xff]  }
 0x359   :  { %9036 = vmatprep.subr.bf16.mxu1 %v9811_v59  ;;  %v9822_v59 = vld [vmem:[%s10733_s7 + $0x8] sm:$0xff]  }
 0x35a   :  { %9097 = vmatpush3.bf16.msra.mxu0 %v9817_v42 }
 0x35b   :  { %v8752_v54 = vpop.f32.mrb[52].mxu0  ;;  %9098 = vmatprep.subr.bf16.mxu0 %v10143_v1 }
 0x35c   :  { %v8753_v55 = vpop.f32.mrb[53].mxu0  ;;  %9037 = vmatpush3.bf16.msra.mxu1 %v9812_v62  ;;  %v9825_v62 = vld [vmem:[%s10733_s7 + $0x20] sm:$0xff]  }
 0x35d   :  { %v8754_v57 = vadd.f32 %v8753_v55, %v8752_v54  ;;  %v8755_v58 = vpop.f32.mrb[54].mxu0  ;;  %9108 = vmatprep.subr.bf16.mxu1 %v10143_v1 }
 0x35e   :  { %v8756_v60 = vpop.f32.mrb[55].mxu0  ;;  %v9821_v58 = vld [vmem:[%s10733_s7] sm:$0xff]  }
 0x35f   :  { %v6464_v61 = vadd.f32 %v8754_v57, %v6424_v48  ;;  %6982 = vmatmul.mubr.bf16.vlgmr.msra.gmra.mrb[76].mxu1 %v356_v0  ;;  %v9818_v48 = vld [vmem:[#allocation7 + $0x28] sm:$0xff]  }
 0x360   :  { %9124 = vmatprep.mubr.msk.bf16.mxu1 %vm10142_vm0, %v10143_v1  ;;  %9099 = vmatpush3.bf16.msra.mxu0 %v9818_v48  ;;  %v9823_v60 = vld [vmem:[%s10733_s7 + $0x10] sm:$0xff]  }
 0x361   :  { %9100 = vmatprep.subr.bf16.mxu0 %v10143_v1  ;;  %9109 = vmatpush3.bf16.msra.mxu1 %v9821_v58 }
 0x362   :  { %9110 = vmatprep.subr.bf16.mxu1 %v10143_v1 }
 0x364   :  { %9101 = vmatpush3.bf16.msra.mxu0 %v9819_v50  ;;  %v9828_v50 = vld [vmem:[%s10733_s7 + $0x38] sm:$0xff]  }
 0x365   :  { %9102 = vmatprep.subr.bf16.mxu0 %v10143_v1  ;;  %9111 = vmatpush3.bf16.msra.mxu1 %v9822_v59 }
 0x366   :  { %9112 = vmatprep.subr.bf16.mxu1 %v10143_v1 }
 0x368   :  { %9103 = vmatpush3.bf16.msra.mxu0 %v9820_v56 }
 0x369   :  { %9128 = vmatprep.subr.bf16.mxu0 %v10143_v1  ;;  %9113 = vmatpush3.bf16.msra.mxu1 %v9823_v60 }
 0x36a   :  { %9114 = vmatprep.subr.bf16.mxu1 %v10143_v1 }
 0x372   :  { %v8774_v2 = vpop.f32.mrb[52].mxu1 }
 0x373   :  { %v8775_v3 = vpop.f32.mrb[53].mxu1 }
 0x374   :  { %v8776_v4 = vadd.f32 %v8775_v3, %v8774_v2  ;;  %v8777_v5 = vpop.f32.mrb[54].mxu1 }
 0x375   :  { %v8778_v6 = vpop.f32.mrb[55].mxu1 }
 0x376   :  { %v6504_v7 = vadd.f32 %v8776_v4, %v6464_v61  ;;  %v9824_v61 = vld [vmem:[%s10733_s7 + $0x18] sm:$0xff]   ;;  %v9826_v4 = vld [vmem:[%s10733_s7 + $0x28] sm:$0xff]  }
 0x377   :  { %9115 = vmatpush3.bf16.msra.mxu1 %v9824_v61 }
 0x378   :  { %9116 = vmatprep.subr.bf16.mxu1 %v10143_v1 }
 0x37b   :  { %v8796_v8 = vpop.f32.mrb[56].mxu0  ;;  %9117 = vmatpush3.bf16.msra.mxu1 %v9825_v62  ;;  %v9831_v62 = vld [vmem:[#allocation12 + $0x10] sm:$0xff]  }
 0x37c   :  { %v8797_v9 = vpop.f32.mrb[57].mxu0  ;;  %9118 = vmatprep.subr.bf16.mxu1 %v10143_v1 }
 0x37d   :  { %v8798_v10 = vadd.f32 %v8797_v9, %v8796_v8  ;;  %v8799_v11 = vpop.f32.mrb[58].mxu0 }
 0x37e   :  { %v8800_v12 = vpop.f32.mrb[59].mxu0 }
 0x37f   :  { %v6544_v13 = vadd.f32 %v8798_v10, %v6504_v7  ;;  %9119 = vmatpush3.bf16.msra.mxu1 %v9826_v4 }
 0x380   :  { %9120 = vmatprep.subr.bf16.mxu1 %v10143_v1 }
 0x392   :  { %v8818_v14 = vpop.f32.mrb[56].mxu1 }
 0x393   :  { %v8819_v15 = vpop.f32.mrb[57].mxu1 }
 0x394   :  { %v8820_v16 = vadd.f32 %v8819_v15, %v8818_v14  ;;  %v8821_v17 = vpop.f32.mrb[58].mxu1 }
 0x395   :  { %v8822_v18 = vpop.f32.mrb[59].mxu1 }
 0x396   :  { %v6584_v19 = vadd.f32 %v8820_v16, %v6544_v13 }
 0x39b   :  { %v8840_v20 = vpop.f32.mrb[60].mxu0 }
 0x39c   :  { %v8841_v21 = vpop.f32.mrb[61].mxu0 }
 0x39d   :  { %v8842_v22 = vadd.f32 %v8841_v21, %v8840_v20  ;;  %v8843_v23 = vpop.f32.mrb[62].mxu0 }
 0x39e   :  { %v8844_v24 = vpop.f32.mrb[63].mxu0 }
 0x39f   :  { %v6624_v25 = vadd.f32 %v8842_v22, %v6584_v19 }
 0x3b2   :  { %v8862_v26 = vpop.f32.mrb[60].mxu1 }
 0x3b3   :  { %v8863_v27 = vpop.f32.mrb[61].mxu1 }
 0x3b4   :  { %v8864_v28 = vadd.f32 %v8863_v27, %v8862_v26  ;;  %v8865_v29 = vpop.f32.mrb[62].mxu1 }
 0x3b5   :  { %v8866_v30 = vpop.f32.mrb[63].mxu1  ;;  %v8144_v29 = vld [vmem:[#allocation6] ss:$0 sm:$0xff] }
 0x3b6   :  { %v6664_v31 = vadd.f32 %v8864_v28, %v6624_v25 }
 0x3bb   :  { %v8884_v32 = vpop.f32.mrb[64].mxu0 }
 0x3bc   :  { %v8885_v33 = vpop.f32.mrb[65].mxu0 }
 0x3bd   :  { %v8886_v34 = vadd.f32 %v8885_v33, %v8884_v32  ;;  %v8887_v35 = vpop.f32.mrb[66].mxu0 }
 0x3be   :  { %v8888_v36 = vpop.f32.mrb[67].mxu0 }
 0x3bf   :  { %v6704_v37 = vadd.f32 %v8886_v34, %v6664_v31 }
 0x3d2   :  { %v8906_v43 = vpop.f32.mrb[64].mxu1 }
 0x3d3   :  { %v8907_v44 = vpop.f32.mrb[65].mxu1 }
 0x3d4   :  { %v8908_v45 = vadd.f32 %v8907_v44, %v8906_v43  ;;  %v8909_v46 = vpop.f32.mrb[66].mxu1 }
 0x3d5   :  { %v8910_v47 = vpop.f32.mrb[67].mxu1 }
 0x3d6   :  { %v6744_v49 = vadd.f32 %v8908_v45, %v6704_v37 }
 0x3db   :  { %v8928_v51 = vpop.f32.mrb[68].mxu0 }
 0x3dc   :  { %v8929_v52 = vpop.f32.mrb[69].mxu0 }
 0x3dd   :  { %v8930_v53 = vadd.f32 %v8929_v52, %v8928_v51  ;;  %v8931_v54 = vpop.f32.mrb[70].mxu0  ;;  %v9829_v51 = vld [vmem:[#allocation12] sm:$0xff]   ;;  %v9830_v52 = vld [vmem:[#allocation12 + $0x8] sm:$0xff]  }
 0x3de   :  { %v8932_v55 = vpop.f32.mrb[71].mxu0 }
 0x3df   :  { %v6784_v57 = vadd.f32 %v8930_v53, %v6744_v49  ;;  %v9827_v49 = vld [vmem:[%s10733_s7 + $0x30] sm:$0xff]   ;;  %v8145_v53 = vld [vmem:[#allocation9] ss:$0 sm:$0xff] }
 0x3e0   :  { %9121 = vmatpush3.bf16.msra.mxu1 %v9827_v49 }
 0x3e1   :  { %9122 = vmatprep.subr.bf16.mxu1 %v10143_v1 }
 0x3e4   :  { %9123 = vmatpush3.bf16.msra.mxu1 %v9828_v50 }
 0x3e5   :  { %9152 = vmatprep.subr.bf16.mxu1 %v10143_v1 }
 0x3f2   :  { %v8950_v63 = vpop.f32.mrb[68].mxu1 }
 0x3f3   :  { %v8951_v0 = vpop.f32.mrb[69].mxu1 }
 0x3f4   :  { %v8952_v2 = vadd.f32 %v8951_v0, %v8950_v63  ;;  %v8953_v3 = vpop.f32.mrb[70].mxu1  ;;  %v9832_v63 = vld [vmem:[#allocation12 + $0x18] sm:$0xff]  }
 0x3f5   :  { %v8954_v5 = vpop.f32.mrb[71].mxu1  ;;  %v8154_v0 = vld [vmem:[#allocation10] ss:$0 sm:$0xff] }
 0x3f6   :  { %v6824_v6 = vadd.f32 %v8952_v2, %v6784_v57 }
 0x3fb   :  { %v8972_v7 = vpop.f32.mrb[72].mxu0 }
 0x3fc   :  { %v8973_v8 = vpop.f32.mrb[73].mxu0 }
 0x3fd   :  { %v8974_v9 = vadd.f32 %v8973_v8, %v8972_v7  ;;  %v8975_v10 = vpop.f32.mrb[74].mxu0 }
 0x3fe   :  { %v8976_v11 = vpop.f32.mrb[75].mxu0 }
 0x3ff   :  { %v6864_v12 = vadd.f32 %v8974_v9, %v6824_v6  ;;  %v9833_v9 = vld [vmem:[#allocation15] sm:$0xff]   ;;  %v9834_v11 = vld [vmem:[#allocation15 + $0x8] sm:$0xff]  }
 0x412   :  { %v8994_v13 = vpop.f32.mrb[72].mxu1 }
 0x413   :  { %v8995_v14 = vpop.f32.mrb[73].mxu1 }
 0x414   :  { %v8996_v15 = vadd.f32 %v8995_v14, %v8994_v13  ;;  %v8997_v16 = vpop.f32.mrb[74].mxu1  ;;  %v9836_v13 = vld [vmem:[#allocation15 + $0x18] sm:$0xff]   ;;  %v9837_v14 = vld [vmem:[#allocation18] sm:$0xff]  }
 0x415   :  { %v8998_v17 = vpop.f32.mrb[75].mxu1  ;;  %v8163_v16 = vld [vmem:[#allocation13] ss:$0 sm:$0xff] }
 0x416   :  { %v6904_v18 = vadd.f32 %v8996_v15, %v6864_v12  ;;  %v9835_v12 = vld [vmem:[#allocation15 + $0x10] sm:$0xff]  }
 0x417   :  { %v9838_v15 = vld [vmem:[#allocation18 + $0x8] sm:$0xff]  }
 0x41b   :  { %v9016_v19 = vpop.f32.mrb[76].mxu0 }
 0x41c   :  { %v9017_v20 = vpop.f32.mrb[77].mxu0 }
 0x41d   :  { %v9018_v21 = vadd.f32 %v9017_v20, %v9016_v19  ;;  %v9019_v22 = vpop.f32.mrb[78].mxu0 }
 0x41e   :  { %v9020_v23 = vpop.f32.mrb[79].mxu0 }
 0x41f   :  { %v6944_v24 = vadd.f32 %v9018_v21, %v6904_v18 }
 0x432   :  { %v9038_v25 = vpop.f32.mrb[76].mxu1 }
 0x433   :  { %v9039_v26 = vpop.f32.mrb[77].mxu1 }
 0x434   :  { %v9040_v27 = vadd.f32 %v9039_v26, %v9038_v25  ;;  %v9041_v28 = vpop.f32.mrb[78].mxu1  ;;  %v9839_v25 = vld [vmem:[#allocation18 + $0x10] sm:$0xff]   ;;  %v9840_v26 = vld [vmem:[#allocation18 + $0x18] sm:$0xff]  }
 0x435   :  { %v9042_v30 = vpop.f32.mrb[79].mxu1 }
 0x436   :  { %v6984_v31 = vadd.f32 %v9040_v27, %v6944_v24  ;;  %v8169_v27 = vld [vmem:[#allocation16] ss:$0 sm:$0xff] }
 0x438   :  { %v6996_v32 = vadd.f32 %v8144_v29, %v6984_v31 }
 0x43a   :  { %v7000_v33 = vand.u32 2147483647, %v6996_v32  ;;  %v6997_v44 = vmax.f32 %v6996_v32, 0.0  ;;  %vm6998_vm3 = vcmp.ne.f32.partialorder %v6996_v32, %v6996_v32 }
 0x43c   :  { %v7001_v34 = vsub.f32 0.0, %v7000_v33 }
 0x43e   :  { %v7002_v35 = vmul.f32 1.442695, %v7001_v34 }
 0x440   :  { %9841 = vpow2.f32 %v7002_v35 }
 0x44a   :  { %v9842_v36 = vpop.eup %9841 }
 0x44b   :  { %v7004_v37 = vadd.f32 1.0, %v9842_v36  ;;  %v7007_v38 = vmul.f32 -0.5, %v9842_v36  ;;  %v7010_v40 = vand.u32 2147483647, %v9842_v36 }
 0x44d   :  { %9843 = vlog2.f32 %v7004_v37  ;;  %v7008_v39 = vadd.f32 1.0, %v7007_v38  ;;  %vm7011_vm2 = vcmp.lt.f32.partialorder %v7010_v40, 0.0004427343 }
 0x44f   :  { %v7009_v43 = vmul.f32 %v9842_v36, %v7008_v39  ;;  %v8175_v36 = vld [vmem:[#allocation19] ss:$0 sm:$0xff] }
 0x457   :  { %v9844_v41 = vpop.eup %9843 }
 0x458   :  { %v7006_v42 = vmul.f32 0.6931472, %v9844_v41 }
 0x45a   :  { %v7012_v45 = vsel %vm7011_vm2, %v7009_v43, %v7006_v42  ;;  %v7501_v42 = vlaneseq }
 0x45b   :  { %v7013_v46 = vadd.f32 %v7012_v45, %v6997_v44 }
 0x45c   :  { %v7502_v43 = vand.u32 127, %v7501_v42 }
 0x45d   :  { %v7014_v47 = vsel %vm6998_vm3, %v6996_v32, %v7013_v46 }
 0x45e   :  { %v7015_v48 = vpack.c.bf16 %v7014_v47, %v7014_v47  ;;  %vm7503_vm9 = vcmp.lt.s32.totalorder %v7502_v43, 32 }
 0x460   :  { %9105 = vmatmul.mubr.bf16.vlgmr.msra.gmra.mrb[80].mxu0 %v7015_v48 }
 0x461   :  { %9136 = vmatprep.mubr.msk.bf16.mxu0 %vm10142_vm0, %v10143_v1  ;;  %9129 = vmatpush3.bf16.msra.mxu0 %v9829_v51 }
 0x462   :  { %9130 = vmatprep.subr.bf16.mxu0 %v10143_v1 }
 0x465   :  { %9131 = vmatpush3.bf16.msra.mxu0 %v9830_v52 }
 0x466   :  { %9132 = vmatprep.subr.bf16.mxu0 %v10143_v1 }
 0x469   :  { %9133 = vmatpush3.bf16.msra.mxu0 %v9831_v62 }
 0x46a   :  { %9134 = vmatprep.subr.bf16.mxu0 %v10143_v1 }
 0x46d   :  { %9135 = vmatpush3.bf16.msra.mxu0 %v9832_v63 }
 0x46e   :  { %9140 = vmatprep.subr.bf16.mxu0 %v10143_v1 }
 0x533   :  { %v7121_v54 = vpop.f32.mrb[80].mxu0 }
 0x534   :  { %v7122_v55 = vadd.f32 %v8145_v53, %v7121_v54  ;;  %v9106_v56 = vpop.f32.mrb[81].mxu0 }
 0x535   :  { %v7124_v57 = vpop.f32.mrb[82].mxu0 }
 0x536   :  { %vm7127_vm4 = vcmp.ge.f32.partialorder %v7122_v55, 0.0  ;;  %v7128_v58 = vmul.f32 0.0001, %v7122_v55  ;;  %v9107_v59 = vpop.f32.mrb[83].mxu0 }
 0x538   :  { %v7129_v60 = vsel %vm7127_vm4, %v7122_v55, %v7128_v58 }
 0x539   :  { %v7130_v61 = vpack.c.bf16 %v7129_v60, %v7129_v60 }
 0x53b   :  { %9125 = vmatmul.mubr.bf16.vlgmr.msra.gmra.mrb[80].mxu1 %v7130_v61 }
 0x53c   :  { %9160 = vmatprep.mubr.msk.bf16.mxu1 %vm10142_vm0, %v10143_v1  ;;  %9153 = vmatpush3.bf16.msra.mxu1 %v9837_v14 }
 0x53d   :  { %9154 = vmatprep.subr.bf16.mxu1 %v10143_v1 }
 0x540   :  { %9155 = vmatpush3.bf16.msra.mxu1 %v9838_v15 }
 0x541   :  { %9156 = vmatprep.subr.bf16.mxu1 %v10143_v1 }
 0x544   :  { %9157 = vmatpush3.bf16.msra.mxu1 %v9839_v25 }
 0x545   :  { %9158 = vmatprep.subr.bf16.mxu1 %v10143_v1 }
 0x548   :  { %9159 = vmatpush3.bf16.msra.mxu1 %v9840_v26 }
 0x60e   :  { %v7236_v2 = vpop.f32.mrb[80].mxu1 }
 0x60f   :  { %v7237_v3 = vadd.f32 %v8154_v0, %v7236_v2  ;;  %v9126_v4 = vpop.f32.mrb[81].mxu1 }
 0x610   :  { %v7239_v5 = vpop.f32.mrb[82].mxu1 }
 0x611   :  { %vm7242_vm5 = vcmp.ge.f32.partialorder %v7237_v3, 0.0  ;;  %v7243_v6 = vmul.f32 0.0001, %v7237_v3  ;;  %v9127_v7 = vpop.f32.mrb[83].mxu1 }
 0x613   :  { %v7244_v8 = vsel %vm7242_vm5, %v7237_v3, %v7243_v6 }
 0x614   :  { %v7245_v10 = vpack.c.bf16 %v7244_v8, %v7244_v8 }
 0x616   :  { %9137 = vmatmul.mubr.msk.bf16.vlgmr.msra.gmra.mrb[84].mxu0 %vm7285_vm6, %v7245_v10 }
 0x617   :  { %9141 = vmatpush3.bf16.msra.mxu0 %v9833_v9  ;;  %9148 = vmatprep.mubr.msk.bf16.mxu0 %vm10142_vm0, %v10143_v1 }
 0x618   :  { %9142 = vmatprep.subr.bf16.mxu0 %v10143_v1 }
 0x61b   :  { %9143 = vmatpush3.bf16.msra.mxu0 %v9834_v11 }
 0x61c   :  { %9144 = vmatprep.subr.bf16.mxu0 %v10143_v1 }
 0x61f   :  { %9145 = vmatpush3.bf16.msra.mxu0 %v9835_v12 }
 0x620   :  { %9146 = vmatprep.subr.bf16.mxu0 %v10143_v1 }
 0x623   :  { %9147 = vmatpush3.bf16.msra.mxu0 %v9836_v13 }
 0x6e9   :  { %v7323_v17 = vpop.f32.mrb[84].mxu0 }
 0x6ea   :  { %v7324_v18 = vadd.f32 %v8163_v16, %v7323_v17  ;;  %v9138_v19 = vpop.f32.mrb[85].mxu0 }
 0x6eb   :  { %v7326_v20 = vpop.f32.mrb[86].mxu0 }
 0x6ec   :  { %vm7329_vm7 = vcmp.ge.f32.partialorder %v7324_v18, 0.0  ;;  %v7330_v21 = vmul.f32 0.0001, %v7324_v18  ;;  %v9139_v22 = vpop.f32.mrb[87].mxu0 }
 0x6ee   :  { %v7331_v23 = vsel %vm7329_vm7, %v7324_v18, %v7330_v21 }
 0x6ef   :  { %v7332_v24 = vpack.c.bf16 %v7331_v23, %v7331_v23 }
 0x6f1   :  { %9149 = vmatmul.mubr.msk.bf16.vlgmr.msra.gmra.mrb[88].mxu0 %vm7285_vm6, %v7332_v24 }
 0x7c4   :  { %v7409_v28 = vpop.f32.mrb[88].mxu0 }
 0x7c5   :  { %v7410_v29 = vadd.f32 %v8169_v27, %v7409_v28  ;;  %v9150_v30 = vpop.f32.mrb[89].mxu0 }
 0x7c6   :  { %v7412_v31 = vpop.f32.mrb[90].mxu0 }
 0x7c7   :  { %vm7415_vm8 = vcmp.ge.f32.partialorder %v7410_v29, 0.0  ;;  %v7416_v32 = vmul.f32 0.0001, %v7410_v29  ;;  %v9151_v33 = vpop.f32.mrb[91].mxu0 }
 0x7c9   :  { %v7417_v34 = vsel %vm7415_vm8, %v7410_v29, %v7416_v32 }
 0x7ca   :  { %v7418_v35 = vpack.c.bf16 %v7417_v34, %v7417_v34 }
 0x7cc   :  { %9161 = vmatmul.mubr.msk.bf16.vlgmr.msra.gmra.mrb[84].mxu1 %vm7285_vm6, %v7418_v35 }
 0x89f   :  { %v7495_v37 = vpop.f32.mrb[84].mxu1 }
 0x8a0   :  { %v7496_v38 = vadd.f32 %v8175_v36, %v7495_v37  ;;  %v9162_v39 = vpop.f32.mrb[85].mxu1 }
 0x8a1   :  { %v7498_v40 = vpop.f32.mrb[86].mxu1 }
 0x8a2   :  { %v7504_v1 = vmul.f32 1.442695, %v7496_v38  ;;  %v9163_v41 = vpop.f32.mrb[87].mxu1 }
 0x8a4   :  { %9845 = vpow2.f32 %v7504_v1 }
 0x8ae   :  { %v9846_v44 = vpop.eup %9845 }
 0x8af   :  { %v7506_v45 = vsel %vm7503_vm9, %v7496_v38, %v9846_v44 }
 0x8b0   :  { %7507 = vst [vmem:[%s10743_s14] sm:$0xff] %v7506_v45 }
 0x8b1   :  { %7512 = vsyncpa [#allocation3], 1 }
 0x8b2   :  { %7513 = vsyncpa [#allocation5], 1 }
 0x8b3   :  { %7514 = vsyncpa [#allocation8], 1 }
 0x8b4   :  { %7515 = vsyncpa [#allocation11], 1 }
 0x8b5   :  { %7516 = vsyncpa [#allocation14], 1 }
 0x8b6   :  { %7517 = vsyncpa [#allocation17], 1 }
 0x8b7   :  { %7518 = vsyncpa [#allocation20], 1 }

</bundles_post_ra>
